<compile_context>
chip_gen: v6e
topology: v6e:2x2x1
jax: 0.10.0
libtpu: 0.0.40
codegen_flags: <defaults>
</compile_context>

<pallas_src>
import jax
import jax.numpy as jnp
from jax import lax
from jax.experimental import pallas as pl
from jax.experimental.pallas import tpu as pltpu

# ---------------- synthetic configuration ----------------
N_PROMPTS = 2                      # "videos" (one prompt each), as in VADER
FRAMES_PER_PROMPT = 128            # frames scored per prompt
B_FRAMES = N_PROMPTS * FRAMES_PER_PROMPT   # 256 frames per pallas_call
TB = 128                           # batch tile per grid step (lane-dense output)

C = 3                              # RGB
H = W = 32                         # raw spatial size
CROP = 16                          # stands in for Resize((224, 224))
PATCH = 8
DS = H // CROP                     # 2x area-downsample factor
GP = CROP // PATCH                 # patch grid per axis
PATCH_DIM = C * PATCH * PATCH      # 192 (channel-major patch layout)
RAW_DIM = C * H * W                # 3072 flattened raw pixels per frame
D_VIS = 128                        # vision encoder width
D_TXT = 128                        # text encoder width
D_OUT = 128                        # shared CLIP embedding dim
MAX_LEN = 16                       # toy tokenizer context length
VOCAB = 256

CLIP_MEAN = jnp.array([0.48145466, 0.4578275, 0.40821073], jnp.float32)
CLIP_STD = jnp.array([0.26862954, 0.26130258, 0.27577711], jnp.float32)


# ---------------- Pallas kernel (per-frame hot path, single fused call) ----------------
def _hps_score_kernel(px_ref, w_ref, b_ref, txt_ref, score_ref):
    """clamp(bf16) -> fused GEMM (resize/pool/normalize/embed/proj) -> L2 norm -> row dot."""
    # 1. (im_pix / 2 + 0.5).clamp(0, 1) in bf16 (reference runs the model in bf16).
    x = jnp.clip(px_ref[...] * 0.5 + 0.5, 0.0, 1.0)                       # (TB, RAW_DIM) bf16
    # 2-4. One MXU pass: resize + patchify + token mean-pool + CLIP normalize +
    #      patch-embed + vision projection, all pre-folded into w_ref / b_ref.
    v = jnp.dot(x, w_ref[...], preferred_element_type=jnp.float32) + b_ref[...]   # (TB, D_OUT) f32
    # L2 normalize (F.normalize-style eps), f32 math, rsqrt on the EUP slot.
    v = v * lax.rsqrt(jnp.sum(v * v, axis=-1, keepdims=True) + 1e-12)
    # 6. scores = diagonal(image_features @ text_features.T) == per-row dot with the
    #    cached, already-L2-normalized text features.
    score_ref[...] = jnp.sum(v * txt_ref[...], axis=-1)[None, :]          # (1, TB) lane-dense


# ---------------- host-side exact weight folding (done once) ----------------
def _build_pool_matrix():
    """(RAW_DIM, PATCH_DIM): flattened raw pixel (c,y,x) -> pooled patch feature (c,i,j).

    Composes the exact 2x area downsample (Resize stand-in) with the patch-grid token
    mean-pool; each pooled feature is the mean of DS*DS*GP*GP raw pixels.
    """
    i_of_y = (jnp.arange(H) % (DS * PATCH)) // DS                          # pooled row per raw row
    j_of_x = (jnp.arange(W) % (DS * PATCH)) // DS
    row_oh = (i_of_y[:, None] == jnp.arange(PATCH)[None, :]).astype(jnp.float32)   # (H, PATCH)
    col_oh = (j_of_x[:, None] == jnp.arange(PATCH)[None, :]).astype(jnp.float32)   # (W, PATCH)
    a_spatial = (row_oh[:, None, :, None] * col_oh[None, :, None, :]).reshape(H * W, PATCH * PATCH)
    a_spatial = a_spatial / float(DS * DS * GP * GP)
    return jnp.kron(jnp.eye(C, dtype=jnp.float32), a_spatial)              # (C*H*W, C*PATCH*PATCH)


def build_params(key):
    k1, k2, k3, k4 = jax.random.split(key, 4)
    # TODO(synk): the real ViT-H-14 image/text towers + HPSv2 checkpoint weights cannot be
    # reproduced here; deterministic synthetic linear encoders keep the forward structure
    # (normalize -> embed -> pool -> proj -> L2 norm -> diagonal dot).
    w_patch = jax.random.normal(k1, (PATCH_DIM, D_VIS), jnp.float32) * 0.02
    w_vis_proj = jax.random.normal(k2, (D_VIS, D_OUT), jnp.float32) * 0.02
    txt_embed = jax.random.normal(k3, (VOCAB, D_TXT), jnp.float32) * 0.02
    w_txt_proj = jax.random.normal(k4, (D_TXT, D_OUT), jnp.float32) * 0.02

    # Fold CLIP Normalize(mean, std) into the patch embed (exact affine fold).
    mean_vec = jnp.repeat(CLIP_MEAN, PATCH * PATCH)                        # (PATCH_DIM,)
    inv_std_vec = jnp.repeat(1.0 / CLIP_STD, PATCH * PATCH)                # (PATCH_DIM,)
    w_fold = inv_std_vec[:, None] * w_patch                                # (PATCH_DIM, D_VIS)
    b_fold = -(mean_vec * inv_std_vec) @ w_patch                           # (D_VIS,)

    # Fold the vision projection (review item 1) and the resize + patch token mean-pool
    # (linear, review item 6) into one (RAW_DIM, D_OUT) bf16 weight + (1, D_OUT) bias.
    w_small = w_fold @ w_vis_proj                                          # (PATCH_DIM, D_OUT)
    b_vis_total = (b_fold @ w_vis_proj)[None, :]                           # (1, D_OUT) f32
    w_vis_total = (_build_pool_matrix() @ w_small).astype(jnp.bfloat16)    # (RAW_DIM, D_OUT) bf16

    return {
        "w_vis_total": w_vis_total,
        "b_vis_total": b_vis_total,
        "txt_embed": txt_embed,
        "w_txt_proj": w_txt_proj,
        # un-folded copies kept only for the f32 reference check
        "w_patch": w_patch,
        "w_vis_proj": w_vis_proj,
    }


# ---------------- frame-invariant text features (computed once per video batch) ----------------
def precompute_text_features(text_token_ids, frames_per_prompt, params):
    """One prompt per video; features cached and broadcast to every frame of that video."""
    # TODO(synk): open_clip tokenizer + ViT-H-14 text transformer (EOT-token pooling,
    # attention masking) has no clean Pallas equivalent; approximated by an embedding
    # lookup + mean pool + linear projection + L2 norm, computed once per prompt.
    pooled = params["txt_embed"][text_token_ids].mean(axis=1)              # (P, D_TXT)
    t = pooled @ params["w_txt_proj"]                                      # (P, D_OUT)
    t = t * lax.rsqrt(jnp.sum(t * t, axis=-1, keepdims=True) + 1e-12)
    return jnp.repeat(t, frames_per_prompt, axis=0)                        # (P*frames, D_OUT) f32


# ---------------- per-frame reward (single fused pallas_call) ----------------
def hps_reward(im_pix, text_features, params):
    """im_pix: (B, C, H, W) float in [-1, 1]; text_features: (B, D_OUT) f32, L2-normalized."""
    b = im_pix.shape[0]
    assert b % TB == 0
    # Free contiguous reshape; bf16 cast halves the dominant pixel DMA (the real VADER
    # decoder can emit bf16 directly, making this a no-op).
    px = im_pix.reshape(b, RAW_DIM).astype(jnp.bfloat16)

    score_row = pl.pallas_call(
        _hps_score_kernel,
        out_shape=jax.ShapeDtypeStruct((1, b), jnp.float32),
        grid_spec=pltpu.PrefetchScalarGridSpec(
            num_scalar_prefetch=0,
            grid=(b // TB,),
            in_specs=[
                pl.BlockSpec((TB, RAW_DIM), lambda i: (i, 0)),     # pixels: streamed per step
                pl.BlockSpec((RAW_DIM, D_OUT), lambda i: (0, 0)),  # fused weight: VMEM-resident
                pl.BlockSpec((1, D_OUT), lambda i: (0, 0)),        # fused bias:   VMEM-resident
                pl.BlockSpec((TB, D_OUT), lambda i: (i, 0)),       # cached text features
            ],
            out_specs=pl.BlockSpec((1, TB), lambda i: (0, i)),     # lane-dense, unmasked stores
        ),
        compiler_params=pltpu.CompilerParams(
            dimension_semantics=("parallel",),                     # megacore sharding on v7x
        ),
    )(px, params["w_vis_total"], params["b_vis_total"], text_features)
    return score_row[0]                                                     # (B,)


# ---------------- straight-line f32 reference (for a sanity check) ----------------
def _reference_scores(im_pix, text_features, params):
    b = im_pix.shape[0]
    x = jnp.clip(im_pix * 0.5 + 0.5, 0.0, 1.0)
    x = x.reshape(b, C, CROP, DS, CROP, DS).mean(axis=(3, 5))              # Resize stand-in
    x = (x - CLIP_MEAN[None, :, None, None]) / CLIP_STD[None, :, None, None]
    x = x.reshape(b, C, GP, PATCH, GP, PATCH).mean(axis=(2, 4))            # patch token mean-pool
    h = x.reshape(b, PATCH_DIM) @ params["w_patch"]
    v = h @ params["w_vis_proj"]
    v = v * lax.rsqrt(jnp.sum(v * v, axis=-1, keepdims=True) + 1e-12)
    return jnp.sum(v * text_features, axis=-1)


if __name__ == "__main__":
    key = jax.random.PRNGKey(0)
    kp, kx = jax.random.split(key)
    params = build_params(kp)

    # Deterministic "tokenization" of one prompt per video (padding to MAX_LEN).
    prompts = ["a cat playing piano", "a dog surfing a wave"]
    ids = []
    for p in prompts:
        toks = [min(ord(ch), VOCAB - 1) for ch in p][:MAX_LEN]
        ids.append(toks + [0] * (MAX_LEN - len(toks)))
    text_token_ids = jnp.array(ids, jnp.int32)                              # (N_PROMPTS, MAX_LEN)

    # Frame-invariant text features, computed once and reused for every frame.
    text_features = precompute_text_features(text_token_ids, FRAMES_PER_PROMPT, params)

    # Frames in [-1, 1], as produced by the diffusion decoder in VADER.
    im_pix = jax.random.uniform(
        kx, (B_FRAMES, C, H, W), jnp.float32, minval=-1.0, maxval=1.0
    )

    score = jax.jit(hps_reward)(im_pix, text_features, params)
    jax.block_until_ready(score)

    assert score.shape == (B_FRAMES,)
    assert bool(jnp.all(jnp.isfinite(score)))
    ref = _reference_scores(im_pix, text_features, params)
    assert float(jnp.max(jnp.abs(score - ref))) < 5e-2, "kernel diverged from f32 reference"
    print("KERNEL_OK")
</pallas_src>

<mosaic_0001>
module attributes {stable_mosaic.version = 11 : i64} {
  func.func @_hps_score_kernel(%arg0: i32, %arg1: memref<128x3072xbf16, #tpu.memory_space<vmem>>, %arg2: memref<3072x128xbf16, #tpu.memory_space<vmem>>, %arg3: memref<1x128xf32, #tpu.memory_space<vmem>>, %arg4: memref<128x128xf32, #tpu.memory_space<vmem>>, %arg5: memref<1x128xf32, #tpu.memory_space<vmem>>) attributes {dimension_semantics = [#tpu.dimension_semantics<parallel>], iteration_bounds = array<i64: 2>, scalar_prefetch = 0 : i64, scratch_operands = 0 : i64, tpu.core_type = #tpu.core_type<tc>, window_params = [{transform_indices = @transform_0, window_bounds = array<i64: 128, 3072>}, {pipeline_mode = #tpu.pipeline_mode<synchronous>, transform_indices = @transform_1, window_bounds = array<i64: 3072, 128>}, {pipeline_mode = #tpu.pipeline_mode<synchronous>, transform_indices = @transform_2, window_bounds = array<i64: 1, 128>}, {transform_indices = @transform_3, window_bounds = array<i64: 128, 128>}, {transform_indices = @transform_4, window_bounds = array<i64: 1, 128>}]} {
    %c0 = arith.constant 0 : index
    %c0_0 = arith.constant 0 : index
    %0 = vector.load %arg1[%c0, %c0_0] : memref<128x3072xbf16, #tpu.memory_space<vmem>>, vector<128x3072xbf16>
    %cst = arith.constant 5.000000e-01 : bf16
    %1 = vector.broadcast %cst : bf16 to vector<128x3072xbf16>
    %2 = arith.mulf %0, %1 : vector<128x3072xbf16>
    %cst_1 = arith.constant 5.000000e-01 : bf16
    %3 = vector.broadcast %cst_1 : bf16 to vector<128x3072xbf16>
    %4 = arith.addf %2, %3 : vector<128x3072xbf16>
    %cst_2 = arith.constant 0.000000e+00 : f32
    %cst_3 = arith.constant 1.000000e+00 : f32
    %5 = arith.truncf %cst_2 : f32 to bf16
    %6 = vector.broadcast %5 : bf16 to vector<128x3072xbf16>
    %7 = arith.maximumf %6, %4 : vector<128x3072xbf16>
    %8 = arith.truncf %cst_3 : f32 to bf16
    %9 = vector.broadcast %8 : bf16 to vector<128x3072xbf16>
    %10 = arith.minimumf %9, %7 : vector<128x3072xbf16>
    %c0_4 = arith.constant 0 : index
    %c0_5 = arith.constant 0 : index
    %11 = vector.load %arg2[%c0_4, %c0_5] : memref<3072x128xbf16, #tpu.memory_space<vmem>>, vector<3072x128xbf16>
    %cst_6 = arith.constant dense<0.000000e+00> : vector<128x128xf32>
    %12 = tpu.matmul %10, %11, %cst_6 {dimension_numbers = #tpu.dot_dimension_numbers<[1], [0], [0], [1], [0, 0, 1, 1], [], []>} : vector<128x3072xbf16>, vector<3072x128xbf16>, vector<128x128xf32> -> vector<128x128xf32>
    %c0_7 = arith.constant 0 : index
    %c0_8 = arith.constant 0 : index
    %13 = vector.load %arg3[%c0_7, %c0_8] : memref<1x128xf32, #tpu.memory_space<vmem>>, vector<1x128xf32>
    %14 = vector.broadcast %13 : vector<1x128xf32> to vector<128x128xf32>
    %15 = arith.addf %12, %14 : vector<128x128xf32>
    %16 = arith.mulf %15, %15 : vector<128x128xf32>
    %cst_9 = arith.constant dense<0.000000e+00> : vector<128xf32>
    %17 = vector.multi_reduction <add>, %16, %cst_9 [1] : vector<128x128xf32> to vector<128xf32>
    %18 = vector.shape_cast %17 : vector<128xf32> to vector<128x1xf32>
    %cst_10 = arith.constant 9.99999996E-13 : f32
    %19 = vector.broadcast %cst_10 : f32 to vector<128x1xf32>
    %20 = arith.addf %18, %19 : vector<128x1xf32>
    %21 = math.rsqrt %20 : vector<128x1xf32>
    %22 = vector.broadcast %21 : vector<128x1xf32> to vector<128x128xf32>
    %23 = arith.mulf %15, %22 : vector<128x128xf32>
    %c0_11 = arith.constant 0 : index
    %c0_12 = arith.constant 0 : index
    %24 = vector.load %arg4[%c0_11, %c0_12] : memref<128x128xf32, #tpu.memory_space<vmem>>, vector<128x128xf32>
    %25 = arith.mulf %23, %24 : vector<128x128xf32>
    %cst_13 = arith.constant dense<0.000000e+00> : vector<128xf32>
    %26 = vector.multi_reduction <add>, %25, %cst_13 [1] : vector<128x128xf32> to vector<128xf32>
    %27 = vector.shape_cast %26 : vector<128xf32> to vector<1x128xf32>
    %c0_14 = arith.constant 0 : index
    %c0_15 = arith.constant 0 : index
    %28 = vector.load %arg5[%c0_14, %c0_15] : memref<1x128xf32, #tpu.memory_space<vmem>>, vector<1x128xf32>
    tpu.vector_store %arg5[%c0_14, %c0_15], %27 {strides = array<i32>} : memref<1x128xf32, #tpu.memory_space<vmem>>, vector<1x128xf32>,
    return
  }
  func.func @transform_0(%arg0: i32) -> (i32, i32) {
    %c0_i32 = arith.constant 0 : i32
    %c0_i32_0 = arith.constant 0 : i32
    return %arg0, %c0_i32 : i32, i32
  }
  func.func @transform_1(%arg0: i32) -> (i32, i32) {
    %c0_i32 = arith.constant 0 : i32
    %c0_i32_0 = arith.constant 0 : i32
    %c0_i32_1 = arith.constant 0 : i32
    return %c0_i32, %c0_i32_0 : i32, i32
  }
  func.func @transform_2(%arg0: i32) -> (i32, i32) {
    %c0_i32 = arith.constant 0 : i32
    %c0_i32_0 = arith.constant 0 : i32
    %c0_i32_1 = arith.constant 0 : i32
    return %c0_i32, %c0_i32_0 : i32, i32
  }
  func.func @transform_3(%arg0: i32) -> (i32, i32) {
    %c0_i32 = arith.constant 0 : i32
    %c0_i32_0 = arith.constant 0 : i32
    return %arg0, %c0_i32 : i32, i32
  }
  func.func @transform_4(%arg0: i32) -> (i32, i32) {
    %c0_i32 = arith.constant 0 : i32
    %c0_i32_0 = arith.constant 0 : i32
    return %c0_i32, %arg0 : i32, i32
  }
}

</mosaic_0001>

<bundles_post_ra>
// kernel: hps_reward.1
= control target key start
LH: loop header
LB: loop body
LE: loop exit
PB: predicated region body
PF: predicated region fallthrough
CT: control target
= control target key end

     0   :  { %9 = vsyncpa [#allocation3], 0  ;;  %s8955_s0 = inlined_call_operand.vmem [shape: bf16[256,3072], index: 0, kind: input, shape index: {}]   ;;  %s8956_s1 = inlined_call_operand.vmem [shape: bf16[3072,128], index: 1, kind: input, shape index: {}]   ;;  %s8957_s2 = inlined_call_operand.vmem [shape: f32[1,128], index: 2, kind: input, shape index: {}]   ;;  %s8958_s3 = inlined_call_operand.vmem [shape: f32[256,128], index: 3, kind: input, shape index: {}]   ;;  %s8959_s4 = inlined_call_operand.hbm [shape: f32[1,256], index: 4, kind: output, shape index: {}]  }
   0x1   :  { %11 = vsyncpa [#allocation3 + $0x1], 0  ;;  %s6741_s15 = smov 0   ;;  %s6743_s16 = smov 0  }
   0x2   :  { %s6745_s17 = smov 0   ;;  %s6747_s18 = smov 0  }
   0x3 LB: > { %s5220_s19 = sadd.s32 4294967295, %s6711_s18   ;;  %s5221_s20 = sadd.s32 4294967294, %s6711_s18   ;;  %s6711_s18 = sphi %s6747_s18, %s9023_s18   ;;  %s6707_s17 = sphi %s6745_s17, %s9022_s17   ;;  %s6703_s16 = sphi %s6743_s16, %s9021_s16   ;;  %s6699_s15 = sphi %s6741_s15, %s9020_s15  }
   0x4   : > { %s6764_s21 = sadd.s32 1, %s6711_s18   ;;  %s118_s22 = sadd.s32 1, %s6707_s17 }
   0x5   : > { %s115_s23 = ssub.s32 %s6711_s18, %s6764_s21  ;;  %p128_p0 = scmp.ne.s32.totalorder %s6707_s17, %s6703_s16 }
   0x6   : > { %p116_p1 = scmp.eq.s32.totalorder %s115_s23, 0  ;;  %p129_p2 = scmp.eq.s32.totalorder %s5220_s19, 1 }
   0x7   : > { %p134_p3 = scmp.ne.s32.totalorder %s6703_s16, %s6699_s15  ;;  %p135_p4 = scmp.eq.s32.totalorder %s5221_s20, 1 }
   0x8   : > { %s6776_s24 = scalar_select %p116_p1, %s6707_s17, %s118_s22  }
   0x9   : > { %p6778_p5 = por %p129_p2, %p128_p0  ;;  %p6782_p6 = por %p135_p4, %p134_p3 }
   0xa   : > { %p5224_p7 = scmp.ge.s32.totalorder %s6711_s18, 1  ;;  %p178_p8 = scmp.lt.s32.totalorder %s6711_s18, 3 }
   0xc   : > { %p179_p9 = pnand %p5224_p7, %p178_p8 }
   0xe   : > { %182 = sbr.rel (%p179_p9) target bundleno = 948 (0x3b4), region = 36 }
  0x13   : > { %v6427_v0 = vld [vmem:[%s8956_s1 + $0x78] sm:$0xff]   ;;  %v6431_v4 = vld [vmem:[%s8956_s1 + $0x70] sm:$0xff]   ;;  %v6435_v8 = vld [vmem:[%s8956_s1 + $0x68] sm:$0xff]   ;;  %s6835_s14 = sshll.u32 %s5220_s19, 4  ;;  %v6713_v45 = vmov 0   ;;  %vm5039_vm0 = vcmask 130112  }
  0x14   : > { %v6428_v1 = vld [vmem:[%s8956_s1 + $0xf8] sm:$0xff]   ;;  %5617 = vmatprep.subr.bf16.mxu0 %v6427_v0  ;;  %v6432_v5 = vld [vmem:[%s8956_s1 + $0xf0] sm:$0xff]   ;;  %v6436_v9 = vld [vmem:[%s8956_s1 + $0xe8] sm:$0xff]   ;;  %p210_p10 = scmp.lt.s32.totalorder %s6835_s14, 31  ;;  %v6714_v51 = vmov 1065369472   ;;  %s8918_s29 = scalar_lea.hbm %s8959_s4, %s6835_s14 }
  0x15   : > { %v6429_v2 = vld [vmem:[%s8956_s1 + $0x38] sm:$0xff]   ;;  %5681 = vmatprep.subr.bf16.mxu1 %v6428_v1  ;;  %v6433_v6 = vld [vmem:[%s8956_s1 + $0x30] sm:$0xff]   ;;  %v6437_v10 = vld [vmem:[%s8956_s1 + $0x28] sm:$0xff]   ;;  %vm5046_vm1 = vcmask 195712   ;;  %vm5053_vm2 = vcmask 261312   ;;  %vm5060_vm3 = vcmask 326912  }
  0x16   : > { %v6430_v3 = vld [vmem:[%s8956_s1 + $0xb8] sm:$0xff]   ;;  %5618 = vmatpush3.bf16.msra.mxu0 %v6429_v2  ;;  %v6434_v7 = vld [vmem:[%s8956_s1 + $0xb0] sm:$0xff]   ;;  %v6438_v11 = vld [vmem:[%s8956_s1 + $0xa8] sm:$0xff]   ;;  %s6860_s11 = scalar_select %p210_p10, %s6835_s14, 31  ;;  %vm5067_vm4 = vcmask 392512   ;;  %vm5074_vm5 = vcmask 458112  }
  0x17   : > { %5682 = vmatpush3.bf16.msra.mxu1 %v6430_v3  ;;  %5619 = vmatprep.subr.bf16.mxu0 %v6431_v4  ;;  %v6439_v12 = vld [vmem:[%s8956_s1 + $0x60] sm:$0xff]   ;;  %v6443_v16 = vld [vmem:[%s8956_s1 + $0x58] sm:$0xff]   ;;  %v6447_v20 = vld [vmem:[%s8956_s1 + $0x50] sm:$0xff]   ;;  %vm5081_vm6 = vcmask 523712   ;;  %vm5088_vm7 = vcmask 589312   ;;  %vm5095_vm8 = vcmask 654912  }
  0x18   : > { %5683 = vmatprep.subr.bf16.mxu1 %v6432_v5  ;;  %v6440_v13 = vld [vmem:[%s8956_s1 + $0xe0] sm:$0xff]   ;;  %v6444_v17 = vld [vmem:[%s8956_s1 + $0xd8] sm:$0xff]   ;;  %v6448_v21 = vld [vmem:[%s8956_s1 + $0xd0] sm:$0xff]   ;;  %s6385_s19 = smul.u32 96, %s6860_s11  ;;  %vm5102_vm9 = vcmask 720512   ;;  %vm5109_vm10 = vcmask 786112  }
  0x19   : > { %v6441_v14 = vld [vmem:[%s8956_s1 + $0x20] sm:$0xff]   ;;  %v6445_v18 = vld [vmem:[%s8956_s1 + $0x18] sm:$0xff]   ;;  %v6449_v22 = vld [vmem:[%s8956_s1 + $0x10] sm:$0xff]   ;;  %vm5116_vm11 = vcmask 851712   ;;  %vm5123_vm12 = vcmask 917312   ;;  %vm5130_vm13 = vcmask 982912  }
  0x1a   : > { %5620 = vmatpush3.bf16.msra.mxu0 %v6433_v6  ;;  %v6442_v15 = vld [vmem:[%s8956_s1 + $0xa0] sm:$0xff]   ;;  %v6446_v19 = vld [vmem:[%s8956_s1 + $0x98] sm:$0xff]   ;;  %v6450_v23 = vld [vmem:[%s8956_s1 + $0x90] sm:$0xff]   ;;  %s6890_s22 = scalar_lea.vmem %s8955_s0, %s6385_s19  ;;  %vm5137_vm14 = vcmask 1048512   ;;  %s6715_s5 = smov [#allocation2]  }
  0x1b   : > { %5684 = vmatpush3.bf16.msra.mxu1 %v6434_v7  ;;  %5621 = vmatprep.subr.bf16.mxu0 %v6435_v8  ;;  %v6451_v24 = vld [vmem:[%s8956_s1 + $0x48] sm:$0xff]   ;;  %v6455_v28 = vld [vmem:[%s8956_s1 + $0x40] sm:$0xff]   ;;  %v6459_v38 = vld [vmem:[%s8956_s1 + $0x178] sm:$0xff]   ;;  %s6655_s6 = sshll.u32 %s6715_s5, 4  ;;  %s6656_s6 = int_to_ptr.vmem [resolvable:$false] %s6655_s6 }
  0x1c   : > { %5685 = vmatprep.subr.bf16.mxu1 %v6436_v9  ;;  %v6452_v25 = vld [vmem:[%s8956_s1 + $0xc8] sm:$0xff]   ;;  %v6456_v29 = vld [vmem:[%s8956_s1 + $0xc0] sm:$0xff]   ;;  %v6461_v50 = vld [vmem:[%s8956_s1 + $0x1f8] sm:$0xff]   ;;  %s6657_s7 = scalar_lea.vmem %s6656_s6, 32 }
  0x1d   : > { %v6453_v26 = vld [vmem:[%s8956_s1 + $0x8] sm:$0xff]   ;;  %v6457_v30 = vld [vmem:[%s8956_s1] sm:$0xff]   ;;  %v6460_v54 = vld [vmem:[%s8956_s1 + $0x138] sm:$0xff]  }
  0x1e   : > { %5622 = vmatpush3.bf16.msra.mxu0 %v6437_v10  ;;  %v6454_v27 = vld [vmem:[%s8956_s1 + $0x88] sm:$0xff]   ;;  %v6458_v31 = vld [vmem:[%s8956_s1 + $0x80] sm:$0xff]   ;;  %v6462_v58 = vld [vmem:[%s8956_s1 + $0x1b8] sm:$0xff]  }
  0x1f   : > { %5686 = vmatpush3.bf16.msra.mxu1 %v6438_v11  ;;  %5623 = vmatprep.subr.bf16.mxu0 %v6439_v12  ;;  %v225_v32 = vld [vmem:[%s6890_s22] sm:$0xff]  ;;  %v226_v34 = vld [vmem:[%s6890_s22 + $0x8] sm:$0xff]  ;;  %v6463_v9 = vld [vmem:[%s8956_s1 + $0x170] sm:$0xff]  }
  0x20   : > { %5687 = vmatprep.subr.bf16.mxu1 %v6440_v13  ;;  %v237_v33 = vld [vmem:[%s6890_s22 + $0x60] sm:$0xff]  ;;  %v417_v35 = vmul.bf16 1056980736, %v225_v32  ;;  %v238_v37 = vld [vmem:[%s6890_s22 + $0x68] sm:$0xff]  ;;  %v418_v39 = vmul.bf16 1056980736, %v226_v34 }
  0x21   : > { %v429_v36 = vmul.bf16 1056980736, %v237_v33  ;;  %v430_v40 = vmul.bf16 1056980736, %v238_v37  ;;  %v249_v55 = vld [vmem:[%s6890_s22 + $0xc0] sm:$0xff]  ;;  %v250_v61 = vld [vmem:[%s6890_s22 + $0xc8] sm:$0xff] }
  0x22   : > { %5624 = vmatpush3.bf16.msra.mxu0 %v6441_v14  ;;  %v609_v41 = vadd.bf16 1056980736, %v417_v35  ;;  %v610_v43 = vadd.bf16 1056980736, %v418_v39  ;;  %v261_v59 = vld [vmem:[%s6890_s22 + $0x120] sm:$0xff]  ;;  %v262_v62 = vld [vmem:[%s6890_s22 + $0x128] sm:$0xff] }
  0x23   : > { %5688 = vmatpush3.bf16.msra.mxu1 %v6442_v15  ;;  %5625 = vmatprep.subr.bf16.mxu0 %v6443_v16  ;;  %v621_v42 = vadd.bf16 1056980736, %v429_v36  ;;  %v622_v44 = vadd.bf16 1056980736, %v430_v40  ;;  %v441_v60 = vmul.bf16 1056980736, %v249_v55 }
  0x24   : > { %5689 = vmatprep.subr.bf16.mxu1 %v6444_v17  ;;  %v801_v46 = vmax.bf16 %v6713_v45, %v609_v41  ;;  %v802_v48 = vmax.bf16 %v6713_v45, %v610_v43  ;;  %v453_v1 = vmul.bf16 1056980736, %v261_v59  ;;  %v442_v2 = vmul.bf16 1056980736, %v250_v61  ;;  %v6464_v10 = vld [vmem:[%s8956_s1 + $0x130] sm:$0xff]   ;;  %v6468_v41 = vld [vmem:[%s8956_s1 + $0x128] sm:$0xff]  }
  0x25   : > { %v813_v47 = vmax.bf16 %v6713_v45, %v621_v42  ;;  %v814_v49 = vmax.bf16 %v6713_v45, %v622_v44  ;;  %v633_v5 = vadd.bf16 1056980736, %v441_v60  ;;  %v454_v6 = vmul.bf16 1056980736, %v262_v62  ;;  %v6465_v15 = vld [vmem:[%s8956_s1 + $0x1f0] sm:$0xff]   ;;  %v6469_v44 = vld [vmem:[%s8956_s1 + $0x1e8] sm:$0xff]  }
  0x26   : > { %5626 = vmatpush3.bf16.msra.mxu0 %v6445_v18  ;;  %v993_v52 = vmin.bf16 %v6714_v51, %v801_v46  ;;  %v994_v56 = vmin.bf16 %v6714_v51, %v802_v48  ;;  %v645_v7 = vadd.bf16 1056980736, %v453_v1  ;;  %v634_v8 = vadd.bf16 1056980736, %v442_v2  ;;  %v6466_v18 = vld [vmem:[%s8956_s1 + $0x1b0] sm:$0xff]   ;;  %v6470_v48 = vld [vmem:[%s8956_s1 + $0x1a8] sm:$0xff]  }
  0x27   : > { %5690 = vmatpush3.bf16.msra.mxu1 %v6446_v19  ;;  %5627 = vmatprep.subr.bf16.mxu0 %v6447_v20  ;;  %v1005_v53 = vmin.bf16 %v6714_v51, %v813_v47  ;;  %v1006_v57 = vmin.bf16 %v6714_v51, %v814_v49  ;;  %v825_v11 = vmax.bf16 %v6713_v45, %v633_v5  ;;  %v646_v12 = vadd.bf16 1056980736, %v454_v6  ;;  %v297_v49 = vld [vmem:[%s6890_s22 + $0x240] sm:$0xff]  ;;  %v298_v55 = vld [vmem:[%s6890_s22 + $0x248] sm:$0xff] }
  0x28   : > { %5691 = vmatprep.subr.bf16.mxu1 %v6448_v21  ;;  %v837_v13 = vmax.bf16 %v6713_v45, %v645_v7  ;;  %v826_v14 = vmax.bf16 %v6713_v45, %v634_v8  ;;  %v273_v21 = vld [vmem:[%s6890_s22 + $0x180] sm:$0xff]  ;;  %v490_v60 = vmul.bf16 1056980736, %v298_v55 }
  0x29   : > { %v5231_v63 = vcombine.high %v993_v52, %v1005_v53  ;;  %v5230_v0 = vcombine.low %v993_v52, %v1005_v53  ;;  %v5233_v3 = vcombine.high %v994_v56, %v1006_v57  ;;  %v5232_v4 = vcombine.low %v994_v56, %v1006_v57  ;;  %v309_v53 = vld [vmem:[%s6890_s22 + $0x2a0] sm:$0xff]  ;;  %v310_v56 = vld [vmem:[%s6890_s22 + $0x2a8] sm:$0xff] }
  0x2a   : > { %5628 = vmatpush3.bf16.msra.mxu0 %v6449_v22  ;;  %v1017_v16 = vmin.bf16 %v6714_v51, %v825_v11  ;;  %v838_v17 = vmax.bf16 %v6713_v45, %v646_v12  ;;  %v1029_v19 = vmin.bf16 %v6714_v51, %v837_v13  ;;  %v1018_v20 = vmin.bf16 %v6714_v51, %v826_v14  ;;  %v285_v22 = vld [vmem:[%s6890_s22 + $0x1e0] sm:$0xff] }
  0x2b   : > { %5692 = vmatpush3.bf16.msra.mxu1 %v6450_v23  ;;  %5629 = vmatprep.subr.bf16.mxu0 %v6451_v24  ;;  %v274_v23 = vld [vmem:[%s6890_s22 + $0x188] sm:$0xff]  ;;  %v501_v59 = vmul.bf16 1056980736, %v309_v53  ;;  %v682_v2 = vadd.bf16 1056980736, %v490_v60  ;;  %v6474_v12 = vld [vmem:[%s8956_s1 + $0x1a0] sm:$0xff]  }
  0x2c   : > { %5693 = vmatprep.subr.bf16.mxu1 %v6452_v25  ;;  %3720 = vmatprep.mubr.bf16.mxu0 %v5231_v63  ;;  %v1030_v24 = vmin.bf16 %v6714_v51, %v838_v17  ;;  %v465_v25 = vmul.bf16 1056980736, %v273_v21  ;;  %v322_v17 = vld [vmem:[%s6890_s22 + $0x308] sm:$0xff] }
  0x2d   : > { %3817 = vmatprep.mubr.bf16.mxu1 %v5233_v3  ;;  %v693_v1 = vadd.bf16 1056980736, %v501_v59  ;;  %v6471_v3 = vld [vmem:[%s8956_s1 + $0x160] sm:$0xff]   ;;  %v874_v8 = vmax.bf16 %v6713_v45, %v682_v2  ;;  %v334_v21 = vld [vmem:[%s6890_s22 + $0x368] sm:$0xff] }
  0x2e   : > { %5630 = vmatpush3.bf16.msra.mxu0 %v6453_v26  ;;  %v477_v26 = vmul.bf16 1056980736, %v285_v22  ;;  %v5257_v33 = vcombine.high %v1018_v20, %v1030_v24  ;;  %v5256_v34 = vcombine.low %v1018_v20, %v1030_v24  ;;  %v657_v35 = vadd.bf16 1056980736, %v465_v25  ;;  %v6475_v22 = vld [vmem:[%s8956_s1 + $0x158] sm:$0xff]  }
  0x2f   : > { %5694 = vmatpush3.bf16.msra.mxu1 %v6454_v27  ;;  %5631 = vmatprep.subr.bf16.mxu0 %v6455_v28  ;;  %v286_v27 = vld [vmem:[%s6890_s22 + $0x1e8] sm:$0xff]  ;;  %v885_v7 = vmax.bf16 %v6713_v45, %v693_v1  ;;  %v1066_v14 = vmin.bf16 %v6714_v51, %v874_v8  ;;  %v514_v25 = vmul.bf16 1056980736, %v322_v17 }
  0x30   : > { %5695 = vmatprep.subr.bf16.mxu1 %v6456_v29  ;;  %v6467_v28 = vld [vmem:[%s8956_s1 + $0x168] sm:$0xff]   ;;  %v5255_v29 = vcombine.high %v1017_v16, %v1029_v19  ;;  %v478_v32 = vmul.bf16 1056980736, %v286_v27  ;;  %v669_v36 = vadd.bf16 1056980736, %v477_v26  ;;  %v849_v39 = vmax.bf16 %v6713_v45, %v657_v35  ;;  %v6476_v35 = vld [vmem:[%s8956_s1 + $0x118] sm:$0xff]  }
  0x31   : > { %v1077_v13 = vmin.bf16 %v6714_v51, %v885_v7  ;;  %v526_v26 = vmul.bf16 1056980736, %v334_v21 }
  0x32   : > { %5632 = vmatpush3.bf16.msra.mxu0 %v6457_v30  ;;  %v5254_v30 = vcombine.low %v1017_v16, %v1029_v19  ;;  %v861_v40 = vmax.bf16 %v6713_v45, %v669_v36  ;;  %v1041_v46 = vmin.bf16 %v6714_v51, %v849_v39  ;;  %v333_v16 = vld [vmem:[%s6890_s22 + $0x360] sm:$0xff] }
  0x33   : > { %5696 = vmatpush3.bf16.msra.mxu1 %v6458_v31  ;;  %5745 = vmatprep.subr.bf16.mxu0 %v6459_v38  ;;  %v466_v31 = vmul.bf16 1056980736, %v274_v23  ;;  %v670_v38 = vadd.bf16 1056980736, %v478_v32  ;;  %v525_v20 = vmul.bf16 1056980736, %v333_v16 }
  0x34   : > { %5809 = vmatprep.subr.bf16.mxu1 %v6461_v50  ;;  %v1053_v47 = vmin.bf16 %v6714_v51, %v861_v40  ;;  %v718_v32 = vadd.bf16 1056980736, %v526_v26  ;;  %v6483_v16 = vld [vmem:[%s8956_s1 + $0x148] sm:$0xff]  }
  0x35   : > { %3721 = vmatmul.mubr.bf16.vlgmr.msra.gmra.mxu0 %v5230_v0  ;;  %v658_v37 = vadd.bf16 1056980736, %v466_v31  ;;  %v862_v43 = vmax.bf16 %v6713_v45, %v670_v38  ;;  %v502_v0 = vmul.bf16 1056980736, %v310_v56  ;;  %v706_v31 = vadd.bf16 1056980736, %v514_v25 }
  0x36   : > { %3818 = vmatmul.mubr.bf16.vlgmr.msra.gmra.mxu1 %v5232_v4  ;;  %5746 = vmatpush3.bf16.msra.mxu0 %v6460_v54  ;;  %v489_v54 = vmul.bf16 1056980736, %v297_v49  ;;  %v5279_v57 = vcombine.high %v1041_v46, %v1053_v47  ;;  %v6472_v4 = vld [vmem:[%s8956_s1 + $0x120] sm:$0xff]   ;;  %v6477_v38 = vld [vmem:[%s8956_s1 + $0x1d8] sm:$0xff]   ;;  %v358_v49 = vld [vmem:[%s6890_s22 + $0x428] sm:$0xff] }
  0x37   : > { %5810 = vmatpush3.bf16.msra.mxu1 %v6462_v58  ;;  %5747 = vmatprep.subr.bf16.mxu0 %v6463_v9  ;;  %v850_v42 = vmax.bf16 %v6713_v45, %v658_v37  ;;  %v1054_v52 = vmin.bf16 %v6714_v51, %v862_v43  ;;  %v5278_v58 = vcombine.low %v1041_v46, %v1053_v47  ;;  %v694_v6 = vadd.bf16 1056980736, %v502_v0  ;;  %v6473_v9 = vld [vmem:[%s8956_s1 + $0x1e0] sm:$0xff]  }
  0x38   : > { %5811 = vmatprep.subr.bf16.mxu1 %v6465_v15  ;;  %3728 = vmatprep.mubr.bf16.mxu0 %v5255_v29  ;;  %v681_v63 = vadd.bf16 1056980736, %v489_v54  ;;  %v321_v15 = vld [vmem:[%s6890_s22 + $0x300] sm:$0xff]  ;;  %v898_v36 = vmax.bf16 %v6713_v45, %v706_v31  ;;  %v910_v37 = vmax.bf16 %v6713_v45, %v718_v32  ;;  %v6485_v32 = vld [vmem:[%s8956_s1 + $0x1c8] sm:$0xff]  }
  0x39   : > { %3825 = vmatprep.mubr.bf16.mxu1 %v5257_v33  ;;  %v1042_v50 = vmin.bf16 %v6714_v51, %v850_v42  ;;  %v886_v11 = vmax.bf16 %v6713_v45, %v694_v6  ;;  %v513_v19 = vmul.bf16 1056980736, %v321_v15  ;;  %v345_v42 = vld [vmem:[%s6890_s22 + $0x3c0] sm:$0xff]  ;;  %v6482_v6 = vld [vmem:[%s8956_s1 + $0x190] sm:$0xff]   ;;  %v382_v15 = vld [vmem:[%s6890_s22 + $0x4e8] sm:$0xff] }
  0x3a   : > { %5748 = vmatpush3.bf16.msra.mxu0 %v6464_v10  ;;  %v873_v5 = vmax.bf16 %v6713_v45, %v681_v63  ;;  %v1090_v43 = vmin.bf16 %v6714_v51, %v898_v36  ;;  %v357_v46 = vld [vmem:[%s6890_s22 + $0x420] sm:$0xff]  ;;  %v537_v47 = vmul.bf16 1056980736, %v345_v42  ;;  %v406_v42 = vld [vmem:[%s6890_s22 + $0x5a8] sm:$0xff] }
  0x3b   : > { %5812 = vmatpush3.bf16.msra.mxu1 %v6466_v18  ;;  %5749 = vmatprep.subr.bf16.mxu0 %v6467_v28  ;;  %v5281_v61 = vcombine.high %v1042_v50, %v1054_v52  ;;  %v5280_v62 = vcombine.low %v1042_v50, %v1054_v52  ;;  %v1078_v18 = vmin.bf16 %v6714_v51, %v886_v11  ;;  %v705_v29 = vadd.bf16 1056980736, %v513_v19  ;;  %v370_v11 = vld [vmem:[%s6890_s22 + $0x488] sm:$0xff]  ;;  %v393_v36 = vld [vmem:[%s6890_s22 + $0x540] sm:$0xff] }
  0x3c   : > { %5813 = vmatprep.subr.bf16.mxu1 %v6469_v44  ;;  %v1065_v10 = vmin.bf16 %v6714_v51, %v873_v5  ;;  %v1102_v44 = vmin.bf16 %v6714_v51, %v910_v37  ;;  %v549_v52 = vmul.bf16 1056980736, %v357_v46  ;;  %v729_v56 = vadd.bf16 1056980736, %v537_v47 }
  0x3d   : > { %3729 = vmatmul.mubr.bf16.gmra.mxu0 %v5254_v30  ;;  %v5305_v27 = vcombine.high %v1066_v14, %v1078_v18  ;;  %v5304_v28 = vcombine.low %v1066_v14, %v1078_v18  ;;  %v717_v30 = vadd.bf16 1056980736, %v525_v20  ;;  %v897_v33 = vmax.bf16 %v6713_v45, %v705_v29  ;;  %v6484_v29 = vld [vmem:[%s8956_s1 + $0x108] sm:$0xff]  }
  0x3e   : > { %3826 = vmatmul.mubr.bf16.gmra.mxu1 %v5256_v34  ;;  %5750 = vmatpush3.bf16.msra.mxu0 %v6468_v41  ;;  %v5303_v23 = vcombine.high %v1065_v10, %v1077_v13  ;;  %v5302_v24 = vcombine.low %v1065_v10, %v1077_v13  ;;  %v6478_v41 = vld [vmem:[%s8956_s1 + $0x198] sm:$0xff]   ;;  %v5329_v54 = vcombine.high %v1090_v43, %v1102_v44  ;;  %v741_v59 = vadd.bf16 1056980736, %v549_v52  ;;  %v381_v10 = vld [vmem:[%s6890_s22 + $0x4e0] sm:$0xff] }
  0x3f   : > { %5814 = vmatpush3.bf16.msra.mxu1 %v6470_v48  ;;  %3736 = vmatprep.mubr.bf16.mxu0 %v5279_v57  ;;  %v909_v34 = vmax.bf16 %v6713_v45, %v717_v30  ;;  %v1089_v39 = vmin.bf16 %v6714_v51, %v897_v33  ;;  %v346_v48 = vld [vmem:[%s6890_s22 + $0x3c8] sm:$0xff]  ;;  %v550_v57 = vmul.bf16 1056980736, %v358_v49  ;;  %v921_v63 = vmax.bf16 %v6713_v45, %v729_v56 }
  0x40   : > { %3833 = vmatprep.mubr.bf16.mxu1 %v5281_v61  ;;  %5751 = vmatprep.subr.bf16.mxu0 %v6471_v3  ;;  %v538_v53 = vmul.bf16 1056980736, %v346_v48  ;;  %v6479_v61 = vld [vmem:[%s8956_s1 + $0x150] sm:$0xff]   ;;  %v933_v1 = vmax.bf16 %v6713_v45, %v741_v59  ;;  %v573_v14 = vmul.bf16 1056980736, %v381_v10  ;;  %v6491_v10 = vld [vmem:[%s8956_s1 + $0x278] sm:$0xff]  }
  0x41   : > { %5815 = vmatprep.subr.bf16.mxu1 %v6473_v9  ;;  %v1101_v40 = vmin.bf16 %v6714_v51, %v909_v34  ;;  %v742_v0 = vadd.bf16 1056980736, %v550_v57  ;;  %v6481_v3 = vld [vmem:[%s8956_s1 + $0x1d0] sm:$0xff]   ;;  %v369_v9 = vld [vmem:[%s6890_s22 + $0x480] sm:$0xff]  ;;  %v562_v18 = vmul.bf16 1056980736, %v370_v11 }
  0x42   : > { %5752 = vmatpush3.bf16.msra.mxu0 %v6472_v4  ;;  %v730_v60 = vadd.bf16 1056980736, %v538_v53  ;;  %v1113_v4 = vmin.bf16 %v6714_v51, %v921_v63  ;;  %v1125_v7 = vmin.bf16 %v6714_v51, %v933_v1  ;;  %v561_v13 = vmul.bf16 1056980736, %v369_v9  ;;  %v240_v9 = vld [vmem:[%s6890_s22 + $0x78] sm:$0xff] }
  0x43   : > { %5816 = vmatpush3.bf16.msra.mxu1 %v6474_v12  ;;  %5753 = vmatprep.subr.bf16.mxu0 %v6475_v22  ;;  %v5327_v50 = vcombine.high %v1089_v39, %v1101_v40  ;;  %v5326_v55 = vcombine.low %v1089_v39, %v1101_v40  ;;  %v934_v5 = vmax.bf16 %v6713_v45, %v742_v0  ;;  %v574_v19 = vmul.bf16 1056980736, %v382_v15  ;;  %v405_v39 = vld [vmem:[%s6890_s22 + $0x5a0] sm:$0xff] }
  0x44   : > { %5817 = vmatprep.subr.bf16.mxu1 %v6477_v38  ;;  %v922_v2 = vmax.bf16 %v6713_v45, %v730_v60  ;;  %v5351_v17 = vcombine.high %v1113_v4, %v1125_v7  ;;  %v5350_v21 = vcombine.low %v1113_v4, %v1125_v7  ;;  %v753_v22 = vadd.bf16 1056980736, %v561_v13  ;;  %v6490_v0 = vld [vmem:[%s8956_s1 + $0x180] sm:$0xff]   ;;  %v239_v4 = vld [vmem:[%s6890_s22 + $0x70] sm:$0xff] }
  0x45   : > { %3737 = vmatmul.mubr.bf16.gmra.mxu0 %v5278_v58  ;;  %v5328_v58 = vcombine.low %v1090_v43, %v1102_v44  ;;  %v1126_v12 = vmin.bf16 %v6714_v51, %v934_v5  ;;  %v754_v25 = vadd.bf16 1056980736, %v562_v18  ;;  %v766_v26 = vadd.bf16 1056980736, %v574_v19  ;;  %v228_v5 = vld [vmem:[%s6890_s22 + $0x18] sm:$0xff] }
  0x46   : > { %3834 = vmatmul.mubr.bf16.gmra.mxu1 %v5280_v62  ;;  %3744 = vmatprep.mubr.bf16.mxu0 %v5303_v23  ;;  %v6480_v62 = vld [vmem:[%s8956_s1 + $0x110] sm:$0xff]   ;;  %v1114_v8 = vmin.bf16 %v6714_v51, %v922_v2  ;;  %v765_v23 = vadd.bf16 1056980736, %v573_v14  ;;  %v585_v40 = vmul.bf16 1056980736, %v393_v36 }
  0x47   : > { %3841 = vmatprep.mubr.bf16.mxu1 %v5305_v27  ;;  %5754 = vmatpush3.bf16.msra.mxu0 %v6476_v35  ;;  %v945_v27 = vmax.bf16 %v6713_v45, %v753_v22  ;;  %v946_v30 = vmax.bf16 %v6713_v45, %v754_v25  ;;  %v958_v31 = vmax.bf16 %v6713_v45, %v766_v26  ;;  %v6486_v35 = vld [vmem:[%s8956_s1 + $0x188] sm:$0xff]   ;;  %v597_v44 = vmul.bf16 1056980736, %v405_v39  ;;  %v6493_v25 = vld [vmem:[%s8956_s1 + $0x2f8] sm:$0xff]  }
  0x48   : > { %5818 = vmatpush3.bf16.msra.mxu1 %v6478_v41  ;;  %5755 = vmatprep.subr.bf16.mxu0 %v6479_v61  ;;  %v5353_v20 = vcombine.high %v1114_v8, %v1126_v12  ;;  %v394_v41 = vld [vmem:[%s6890_s22 + $0x548] sm:$0xff]  ;;  %v777_v48 = vadd.bf16 1056980736, %v585_v40  ;;  %v598_v49 = vmul.bf16 1056980736, %v406_v42  ;;  %v6489_v61 = vld [vmem:[%s8956_s1 + $0x1c0] sm:$0xff]  }
  0x49   : > { %5819 = vmatprep.subr.bf16.mxu1 %v6481_v3  ;;  %v1137_v33 = vmin.bf16 %v6714_v51, %v945_v27  ;;  %v1138_v37 = vmin.bf16 %v6714_v51, %v946_v30  ;;  %v1150_v38 = vmin.bf16 %v6714_v51, %v958_v31  ;;  %v586_v46 = vmul.bf16 1056980736, %v394_v41  ;;  %v227_v3 = vld [vmem:[%s6890_s22 + $0x10] sm:$0xff]  ;;  %v6492_v41 = vld [vmem:[%s8956_s1 + $0x238] sm:$0xff]  }
  0x4a   : > { %v789_v52 = vadd.bf16 1056980736, %v597_v44  ;;  %v969_v57 = vmax.bf16 %v6713_v45, %v777_v48  ;;  %v419_v7 = vmul.bf16 1056980736, %v227_v3  ;;  %v432_v13 = vmul.bf16 1056980736, %v240_v9 }
  0x4b   : > { %5756 = vmatpush3.bf16.msra.mxu0 %v6480_v62  ;;  %v5377_v47 = vcombine.high %v1138_v37, %v1150_v38  ;;  %v778_v53 = vadd.bf16 1056980736, %v586_v46  ;;  %v5376_v56 = vcombine.low %v1138_v37, %v1150_v38  ;;  %v263_v31 = vld [vmem:[%s6890_s22 + $0x130] sm:$0xff]  ;;  %v6494_v46 = vld [vmem:[%s8956_s1 + $0x2b8] sm:$0xff]  }
  0x4c   : > { %5820 = vmatpush3.bf16.msra.mxu1 %v6482_v6  ;;  %5757 = vmatprep.subr.bf16.mxu0 %v6483_v16  ;;  %v981_v59 = vmax.bf16 %v6713_v45, %v789_v52  ;;  %v1161_v62 = vmin.bf16 %v6714_v51, %v969_v57  ;;  %v611_v15 = vadd.bf16 1056980736, %v419_v7  ;;  %v624_v19 = vadd.bf16 1056980736, %v432_v13  ;;  %v288_v3 = vld [vmem:[%s6890_s22 + $0x1f8] sm:$0xff] }
  0x4d   : > { %3745 = vmatmul.mubr.bf16.gmra.mxu0 %v5302_v24  ;;  %v5352_v24 = vcombine.low %v1114_v8, %v1126_v12  ;;  %5821 = vmatprep.subr.bf16.mxu1 %v6485_v32  ;;  %v970_v60 = vmax.bf16 %v6713_v45, %v778_v53  ;;  %v431_v8 = vmul.bf16 1056980736, %v239_v4  ;;  %v420_v12 = vmul.bf16 1056980736, %v228_v5  ;;  %v6495_v53 = vld [vmem:[%s8956_s1 + $0x270] sm:$0xff]   ;;  %v6499_v4 = vld [vmem:[%s8956_s1 + $0x268] sm:$0xff]  }
  0x4e   : > { %3842 = vmatmul.mubr.bf16.gmra.mxu1 %v5304_v28  ;;  %3752 = vmatprep.mubr.bf16.mxu0 %v5327_v50  ;;  %v957_v28 = vmax.bf16 %v6713_v45, %v765_v23  ;;  %v1173_v1 = vmin.bf16 %v6714_v51, %v981_v59  ;;  %v455_v36 = vmul.bf16 1056980736, %v263_v31  ;;  %v6496_v59 = vld [vmem:[%s8956_s1 + $0x230] sm:$0xff]   ;;  %v480_v7 = vmul.bf16 1056980736, %v288_v3 }
  0x4f   : > { %3849 = vmatprep.mubr.bf16.mxu1 %v5329_v54  ;;  %5758 = vmatpush3.bf16.msra.mxu0 %v6484_v29  ;;  %v6487_v54 = vld [vmem:[%s8956_s1 + $0x140] sm:$0xff]   ;;  %v1162_v2 = vmin.bf16 %v6714_v51, %v970_v60  ;;  %v623_v16 = vadd.bf16 1056980736, %v431_v8  ;;  %v612_v18 = vadd.bf16 1056980736, %v420_v12  ;;  %v275_v60 = vld [vmem:[%s6890_s22 + $0x190] sm:$0xff] }
  0x50   : > { %v1149_v34 = vmin.bf16 %v6714_v51, %v957_v28  ;;  %5822 = vmatpush3.bf16.msra.mxu1 %v6486_v35  ;;  %5759 = vmatprep.subr.bf16.mxu0 %v6487_v54  ;;  %v5399_v11 = vcombine.high %v1161_v62, %v1173_v1  ;;  %v251_v28 = vld [vmem:[%s6890_s22 + $0xd0] sm:$0xff]  ;;  %v647_v42 = vadd.bf16 1056980736, %v455_v36  ;;  %v672_v12 = vadd.bf16 1056980736, %v480_v7 }
  0x51   : > { %5823 = vmatprep.subr.bf16.mxu1 %v6489_v61  ;;  %v815_v22 = vmax.bf16 %v6713_v45, %v623_v16  ;;  %v804_v23 = vmax.bf16 %v6713_v45, %v612_v18  ;;  %v443_v32 = vmul.bf16 1056980736, %v251_v28  ;;  %v287_v61 = vld [vmem:[%s6890_s22 + $0x1f0] sm:$0xff]  ;;  %v6500_v16 = vld [vmem:[%s8956_s1 + $0x228] sm:$0xff]  }
  0x52   : > { %v5375_v43 = vcombine.high %v1137_v33, %v1149_v34  ;;  %v5374_v50 = vcombine.low %v1137_v33, %v1149_v34  ;;  %v252_v33 = vld [vmem:[%s6890_s22 + $0xd8] sm:$0xff] }
  0x53   : > { %v1007_v27 = vmin.bf16 %v6714_v51, %v815_v22  ;;  %v996_v29 = vmin.bf16 %v6714_v51, %v804_v23  ;;  %v264_v34 = vld [vmem:[%s6890_s22 + $0x138] sm:$0xff]  ;;  %v444_v37 = vmul.bf16 1056980736, %v252_v33  ;;  %v635_v39 = vadd.bf16 1056980736, %v443_v32  ;;  %v6502_v23 = vld [vmem:[%s8956_s1 + $0x2a8] sm:$0xff]  }
  0x54   : > { %5824 = vmatpush3.bf16.msra.mxu1 %v6490_v0  ;;  %v456_v40 = vmul.bf16 1056980736, %v264_v34  ;;  %v6498_v0 = vld [vmem:[%s8956_s1 + $0x2b0] sm:$0xff]  }
  0x55   : > { %3753 = vmatmul.mubr.bf16.gmra.mxu0 %v5326_v55  ;;  %v6488_v55 = vld [vmem:[%s8956_s1 + $0x100] sm:$0xff]   ;;  %5937 = vmatprep.subr.bf16.mxu1 %v6493_v25 }
  0x56   : > { %3850 = vmatmul.mubr.bf16.gmra.mxu1 %v5328_v58  ;;  %3760 = vmatprep.mubr.bf16.mxu0 %v5351_v17  ;;  %v790_v58 = vadd.bf16 1056980736, %v598_v49  ;;  %v5398_v17 = vcombine.low %v1161_v62, %v1173_v1  ;;  %v648_v48 = vadd.bf16 1056980736, %v456_v40  ;;  %v276_v62 = vld [vmem:[%s6890_s22 + $0x198] sm:$0xff]  ;;  %v6504_v40 = vld [vmem:[%s8956_s1 + $0x220] sm:$0xff]  }
  0x57   : > { %3857 = vmatprep.mubr.bf16.mxu1 %v5353_v20  ;;  %5760 = vmatpush3.bf16.msra.mxu0 %v6488_v55  ;;  %v467_v1 = vmul.bf16 1056980736, %v275_v60 }
  0x58   : > { %v982_v63 = vmax.bf16 %v6713_v45, %v790_v58  ;;  %5873 = vmatprep.subr.bf16.mxu0 %v6491_v10  ;;  %v840_v55 = vmax.bf16 %v6713_v45, %v648_v48 }
  0x59   : > { %v659_v9 = vadd.bf16 1056980736, %v467_v1 }
  0x5a   : > { %v1174_v6 = vmin.bf16 %v6714_v51, %v982_v63  ;;  %v1032_v63 = vmin.bf16 %v6714_v51, %v840_v55  ;;  %v323_v55 = vld [vmem:[%s6890_s22 + $0x310] sm:$0xff] }
  0x5c   : > { %v5401_v14 = vcombine.high %v1162_v2, %v1174_v6  ;;  %v5400_v20 = vcombine.low %v1162_v2, %v1174_v6  ;;  %v479_v2 = vmul.bf16 1056980736, %v287_v61  ;;  %v468_v6 = vmul.bf16 1056980736, %v276_v62  ;;  %v336_v61 = vld [vmem:[%s6890_s22 + $0x378] sm:$0xff] }
  0x5d   : > { %3761 = vmatmul.mubr.bf16.gmra.mxu0 %v5350_v21  ;;  %v803_v21 = vmax.bf16 %v6713_v45, %v611_v15  ;;  %v6507_v62 = vld [vmem:[%s8956_s1 + $0x258] sm:$0xff]   ;;  %v528_v1 = vmul.bf16 1056980736, %v336_v61 }
  0x5e   : > { %3858 = vmatmul.mubr.bf16.gmra.mxu1 %v5352_v24  ;;  %3768 = vmatprep.mubr.bf16.mxu0 %v5375_v43  ;;  %v816_v24 = vmax.bf16 %v6713_v45, %v624_v19  ;;  %v636_v43 = vadd.bf16 1056980736, %v444_v37  ;;  %v671_v10 = vadd.bf16 1056980736, %v479_v2  ;;  %v864_v19 = vmax.bf16 %v6713_v45, %v672_v12 }
  0x5f   : > { %3865 = vmatprep.mubr.bf16.mxu1 %v5377_v47  ;;  %v995_v26 = vmin.bf16 %v6714_v51, %v803_v21  ;;  %v827_v47 = vmax.bf16 %v6713_v45, %v635_v39  ;;  %v6503_v39 = vld [vmem:[%s8956_s1 + $0x260] sm:$0xff]  }
  0x60   : > { %v1008_v30 = vmin.bf16 %v6714_v51, %v816_v24  ;;  %v828_v52 = vmax.bf16 %v6713_v45, %v636_v43  ;;  %v863_v15 = vmax.bf16 %v6713_v45, %v671_v10  ;;  %v299_v24 = vld [vmem:[%s6890_s22 + $0x250] sm:$0xff] }
  0x61   : > { %v5235_v35 = vcombine.high %v995_v26, %v1007_v27  ;;  %v5234_v44 = vcombine.low %v995_v26, %v1007_v27  ;;  %v1019_v54 = vmin.bf16 %v6714_v51, %v827_v47  ;;  %v1056_v26 = vmin.bf16 %v6714_v51, %v864_v19  ;;  %v311_v27 = vld [vmem:[%s6890_s22 + $0x2b0] sm:$0xff]  ;;  %v6505_v47 = vld [vmem:[%s8956_s1 + $0x2e0] sm:$0xff]  }
  0x62   : > { %v5237_v38 = vcombine.high %v996_v29, %v1008_v30  ;;  %v5236_v49 = vcombine.low %v996_v29, %v1008_v30  ;;  %v1020_v58 = vmin.bf16 %v6714_v51, %v828_v52  ;;  %v1055_v22 = vmin.bf16 %v6714_v51, %v863_v15  ;;  %v300_v29 = vld [vmem:[%s6890_s22 + $0x258] sm:$0xff]  ;;  %v6506_v52 = vld [vmem:[%s8956_s1 + $0x2a0] sm:$0xff]  }
  0x63   : > { %v491_v28 = vmul.bf16 1056980736, %v299_v24  ;;  %v312_v30 = vld [vmem:[%s6890_s22 + $0x2b8] sm:$0xff]  ;;  %v503_v32 = vmul.bf16 1056980736, %v311_v27 }
  0x64   : > { %v5261_v8 = vcombine.high %v1020_v58, %v1032_v63  ;;  %v492_v33 = vmul.bf16 1056980736, %v300_v29  ;;  %v504_v36 = vmul.bf16 1056980736, %v312_v30  ;;  %v360_v24 = vld [vmem:[%s6890_s22 + $0x438] sm:$0xff] }
  0x65   : > { %3769 = vmatmul.mubr.bf16.gmra.mxu0 %v5374_v50  ;;  %v839_v50 = vmax.bf16 %v6713_v45, %v647_v42  ;;  %v695_v37 = vadd.bf16 1056980736, %v503_v32  ;;  %v552_v30 = vmul.bf16 1056980736, %v360_v24 }
  0x66   : > { %3866 = vmatmul.mubr.bf16.gmra.mxu1 %v5376_v56  ;;  %3776 = vmatprep.mubr.bf16.mxu0 %v5399_v11  ;;  %v6497_v56 = vld [vmem:[%s8956_s1 + $0x2f0] sm:$0xff]   ;;  %v660_v11 = vadd.bf16 1056980736, %v468_v6  ;;  %v696_v42 = vadd.bf16 1056980736, %v504_v36 }
  0x67   : > { %3873 = vmatprep.mubr.bf16.mxu1 %v5401_v14  ;;  %v1031_v57 = vmin.bf16 %v6714_v51, %v839_v50  ;;  %v851_v14 = vmax.bf16 %v6713_v45, %v659_v9  ;;  %v720_v6 = vadd.bf16 1056980736, %v528_v1  ;;  %v6508_v9 = vld [vmem:[%s8956_s1 + $0x218] sm:$0xff]   ;;  %v744_v36 = vadd.bf16 1056980736, %v552_v30 }
  0x68   : > { %v852_v18 = vmax.bf16 %v6713_v45, %v660_v11  ;;  %v888_v50 = vmax.bf16 %v6713_v45, %v696_v42 }
  0x69   : > { %v5259_v5 = vcombine.high %v1019_v54, %v1031_v57  ;;  %v5258_v13 = vcombine.low %v1019_v54, %v1031_v57  ;;  %v1043_v21 = vmin.bf16 %v6714_v51, %v851_v14  ;;  %v324_v57 = vld [vmem:[%s6890_s22 + $0x318] sm:$0xff]  ;;  %v912_v12 = vmax.bf16 %v6713_v45, %v720_v6  ;;  %v6517_v6 = vld [vmem:[%s8956_s1 + $0x2c8] sm:$0xff]  }
  0x6a   : > { %v1044_v25 = vmin.bf16 %v6714_v51, %v852_v18  ;;  %v347_v18 = vld [vmem:[%s6890_s22 + $0x3d0] sm:$0xff]  ;;  %v936_v42 = vmax.bf16 %v6713_v45, %v744_v36  ;;  %v6522_v36 = vld [vmem:[%s8956_s1 + $0x280] sm:$0xff]  }
  0x6b   : > { %v5283_v31 = vcombine.high %v1043_v21, %v1055_v22  ;;  %v5282_v43 = vcombine.low %v1043_v21, %v1055_v22  ;;  %v359_v21 = vld [vmem:[%s6890_s22 + $0x430] sm:$0xff]  ;;  %v539_v22 = vmul.bf16 1056980736, %v347_v18  ;;  %v408_v18 = vld [vmem:[%s6890_s22 + $0x5b8] sm:$0xff] }
  0x6c   : > { %v5285_v34 = vcombine.high %v1044_v25, %v1056_v26  ;;  %v5284_v48 = vcombine.low %v1044_v25, %v1056_v26  ;;  %v551_v26 = vmul.bf16 1056980736, %v359_v21  ;;  %v600_v24 = vmul.bf16 1056980736, %v408_v18 }
  0x6d   : > { %3777 = vmatmul.mubr.bf16.gmra.mxu0 %v5398_v17  ;;  %v5260_v17 = vcombine.low %v1020_v58, %v1032_v63  ;;  %v1080_v58 = vmin.bf16 %v6714_v51, %v888_v50  ;;  %v731_v29 = vadd.bf16 1056980736, %v539_v22  ;;  %v372_v50 = vld [vmem:[%s6890_s22 + $0x498] sm:$0xff] }
  0x6e   : > { %3874 = vmatmul.mubr.bf16.gmra.mxu1 %v5400_v20  ;;  %3914 = vmatprep.mubr.bf16.mxu0 %v5235_v35  ;;  %v6501_v20 = vld [vmem:[%s8956_s1 + $0x2e8] sm:$0xff]   ;;  %v683_v35 = vadd.bf16 1056980736, %v491_v28  ;;  %v792_v30 = vadd.bf16 1056980736, %v600_v24 }
  0x6f   : > { %4011 = vmatprep.mubr.bf16.mxu1 %v5237_v38  ;;  %v684_v38 = vadd.bf16 1056980736, %v492_v33  ;;  %v6511_v33 = vld [vmem:[%s8956_s1 + $0x250] sm:$0xff]  }
  0x75   : > { %3915 = vmatmul.mubr.bf16.vlgmr.msra.gmra.mxu0 %v5234_v44  ;;  %v887_v44 = vmax.bf16 %v6713_v45, %v695_v37 }
  0x76   : > { %4012 = vmatmul.mubr.bf16.vlgmr.msra.gmra.mxu1 %v5236_v49  ;;  %5874 = vmatpush3.bf16.msra.mxu0 %v6492_v41  ;;  %v875_v41 = vmax.bf16 %v6713_v45, %v683_v35  ;;  %v923_v35 = vmax.bf16 %v6713_v45, %v731_v29 }
  0x77   : > { %5938 = vmatpush3.bf16.msra.mxu1 %v6494_v46  ;;  %5875 = vmatprep.subr.bf16.mxu0 %v6495_v53  ;;  %v876_v46 = vmax.bf16 %v6713_v45, %v684_v38  ;;  %v1079_v53 = vmin.bf16 %v6714_v51, %v887_v44 }
  0x78   : > { %3922 = vmatprep.mubr.bf16.mxu0 %v5259_v5  ;;  %5939 = vmatprep.subr.bf16.mxu1 %v6497_v56  ;;  %v1067_v49 = vmin.bf16 %v6714_v51, %v875_v41  ;;  %v335_v56 = vld [vmem:[%s6890_s22 + $0x370] sm:$0xff]  ;;  %v1115_v41 = vmin.bf16 %v6714_v51, %v923_v35  ;;  %v984_v35 = vmax.bf16 %v6713_v45, %v792_v30  ;;  %v278_v30 = vld [vmem:[%s6890_s22 + $0x1a8] sm:$0xff] }
  0x79   : > { %4019 = vmatprep.mubr.bf16.mxu1 %v5261_v8  ;;  %v1068_v54 = vmin.bf16 %v6714_v51, %v876_v46  ;;  %v527_v60 = vmul.bf16 1056980736, %v335_v56  ;;  %v6515_v56 = vld [vmem:[%s8956_s1 + $0x248] sm:$0xff]  }
  0x7a   : > { %5876 = vmatpush3.bf16.msra.mxu0 %v6496_v59  ;;  %v515_v59 = vmul.bf16 1056980736, %v323_v55  ;;  %v5307_v63 = vcombine.high %v1067_v49, %v1079_v53  ;;  %v5306_v10 = vcombine.low %v1067_v49, %v1079_v53  ;;  %v383_v49 = vld [vmem:[%s6890_s22 + $0x4f0] sm:$0xff]  ;;  %v384_v55 = vld [vmem:[%s6890_s22 + $0x4f8] sm:$0xff] }
  0x7b   : > { %5940 = vmatpush3.bf16.msra.mxu1 %v6498_v0  ;;  %5877 = vmatprep.subr.bf16.mxu0 %v6499_v4  ;;  %v516_v0 = vmul.bf16 1056980736, %v324_v57  ;;  %v5309_v2 = vcombine.high %v1068_v54, %v1080_v58  ;;  %v719_v4 = vadd.bf16 1056980736, %v527_v60  ;;  %v5308_v14 = vcombine.low %v1068_v54, %v1080_v58 }
  0x7c   : > { %5941 = vmatprep.subr.bf16.mxu1 %v6501_v20  ;;  %v707_v3 = vadd.bf16 1056980736, %v515_v59  ;;  %v1104_v20 = vmin.bf16 %v6714_v51, %v912_v12  ;;  %v575_v54 = vmul.bf16 1056980736, %v383_v49  ;;  %v564_v58 = vmul.bf16 1056980736, %v372_v50 }
  0x7d   : > { %3923 = vmatmul.mubr.bf16.gmra.mxu0 %v5258_v13  ;;  %v708_v5 = vadd.bf16 1056980736, %v516_v0  ;;  %v911_v8 = vmax.bf16 %v6713_v45, %v719_v4  ;;  %v6509_v13 = vld [vmem:[%s8956_s1 + $0x2d8] sm:$0xff]   ;;  %v576_v59 = vmul.bf16 1056980736, %v384_v55 }
  0x7e   : > { %4020 = vmatmul.mubr.bf16.gmra.mxu1 %v5260_v17  ;;  %5878 = vmatpush3.bf16.msra.mxu0 %v6500_v16  ;;  %v899_v7 = vmax.bf16 %v6713_v45, %v707_v3  ;;  %v6510_v17 = vld [vmem:[%s8956_s1 + $0x298] sm:$0xff]   ;;  %v6516_v3 = vld [vmem:[%s8956_s1 + $0x208] sm:$0xff]  }
  0x7f   : > { %3930 = vmatprep.mubr.bf16.mxu0 %v5283_v31  ;;  %5942 = vmatpush3.bf16.msra.mxu1 %v6502_v23  ;;  %v900_v11 = vmax.bf16 %v6713_v45, %v708_v5  ;;  %v1103_v16 = vmin.bf16 %v6714_v51, %v911_v8  ;;  %v348_v23 = vld [vmem:[%s6890_s22 + $0x3d8] sm:$0xff]  ;;  %v743_v31 = vadd.bf16 1056980736, %v551_v26  ;;  %v768_v0 = vadd.bf16 1056980736, %v576_v59 }
  0x80   : > { %4027 = vmatprep.mubr.bf16.mxu1 %v5285_v34  ;;  %5879 = vmatprep.subr.bf16.mxu0 %v6503_v39  ;;  %v1091_v15 = vmin.bf16 %v6714_v51, %v899_v7  ;;  %v540_v27 = vmul.bf16 1056980736, %v348_v23  ;;  %v6512_v34 = vld [vmem:[%s8956_s1 + $0x210] sm:$0xff]   ;;  %v6523_v49 = vld [vmem:[%s8956_s1 + $0x378] sm:$0xff]  }
  0x81   : > { %5943 = vmatprep.subr.bf16.mxu1 %v6505_v47  ;;  %v1092_v19 = vmin.bf16 %v6714_v51, %v900_v11  ;;  %v935_v37 = vmax.bf16 %v6713_v45, %v743_v31  ;;  %v6513_v39 = vld [vmem:[%s8956_s1 + $0x2d0] sm:$0xff]   ;;  %v960_v5 = vmax.bf16 %v6713_v45, %v768_v0 }
  0x82   : > { %5880 = vmatpush3.bf16.msra.mxu0 %v6504_v40  ;;  %v5331_v25 = vcombine.high %v1091_v15, %v1103_v16  ;;  %v732_v32 = vadd.bf16 1056980736, %v540_v27  ;;  %v5330_v40 = vcombine.low %v1091_v15, %v1103_v16  ;;  %v395_v11 = vld [vmem:[%s6890_s22 + $0x550] sm:$0xff]  ;;  %v6519_v27 = vld [vmem:[%s8956_s1 + $0x240] sm:$0xff]  }
  0x83   : > { %5944 = vmatpush3.bf16.msra.mxu1 %v6506_v52  ;;  %5881 = vmatprep.subr.bf16.mxu0 %v6507_v62  ;;  %v5333_v28 = vcombine.high %v1092_v19, %v1104_v20  ;;  %v5332_v44 = vcombine.low %v1092_v19, %v1104_v20  ;;  %v1127_v46 = vmin.bf16 %v6714_v51, %v935_v37  ;;  %v767_v62 = vadd.bf16 1056980736, %v575_v54  ;;  %v407_v15 = vld [vmem:[%s6890_s22 + $0x5b0] sm:$0xff] }
  0x84   : > { %5945 = vmatprep.subr.bf16.mxu1 %v6509_v13  ;;  %v924_v38 = vmax.bf16 %v6713_v45, %v732_v32  ;;  %v1128_v52 = vmin.bf16 %v6714_v51, %v936_v42  ;;  %v587_v16 = vmul.bf16 1056980736, %v395_v11  ;;  %v599_v20 = vmul.bf16 1056980736, %v407_v15  ;;  %v230_v42 = vld [vmem:[%s6890_s22 + $0x28] sm:$0xff] }
  0x85   : > { %3931 = vmatmul.mubr.bf16.gmra.mxu0 %v5282_v43  ;;  %v6514_v43 = vld [vmem:[%s8956_s1 + $0x290] sm:$0xff]   ;;  %v5355_v57 = vcombine.high %v1115_v41, %v1127_v46  ;;  %v5354_v7 = vcombine.low %v1115_v41, %v1127_v46  ;;  %v241_v41 = vld [vmem:[%s6890_s22 + $0x80] sm:$0xff] }
  0x86   : > { %4028 = vmatmul.mubr.bf16.gmra.mxu1 %v5284_v48  ;;  %3938 = vmatprep.mubr.bf16.mxu0 %v5307_v63  ;;  %v1116_v47 = vmin.bf16 %v6714_v51, %v924_v38  ;;  %v371_v48 = vld [vmem:[%s6890_s22 + $0x490] sm:$0xff]  ;;  %v756_v63 = vadd.bf16 1056980736, %v564_v58  ;;  %v779_v23 = vadd.bf16 1056980736, %v587_v16 }
  0x87   : > { %4035 = vmatprep.mubr.bf16.mxu1 %v5309_v2  ;;  %5882 = vmatpush3.bf16.msra.mxu0 %v6508_v9  ;;  %v563_v53 = vmul.bf16 1056980736, %v371_v48  ;;  %v959_v2 = vmax.bf16 %v6713_v45, %v767_v62  ;;  %v242_v48 = vld [vmem:[%s6890_s22 + $0x88] sm:$0xff] }
  0x88   : > { %5946 = vmatpush3.bf16.msra.mxu1 %v6510_v17  ;;  %5883 = vmatprep.subr.bf16.mxu0 %v6511_v33  ;;  %v5357_v60 = vcombine.high %v1116_v47, %v1128_v52  ;;  %v948_v4 = vmax.bf16 %v6713_v45, %v756_v63  ;;  %v5356_v12 = vcombine.low %v1116_v47, %v1128_v52  ;;  %v396_v17 = vld [vmem:[%s6890_s22 + $0x558] sm:$0xff]  ;;  %v6521_v33 = vld [vmem:[%s8956_s1 + $0x2c0] sm:$0xff]   ;;  %v433_v47 = vmul.bf16 1056980736, %v241_v41 }
  0x89   : > { %5947 = vmatprep.subr.bf16.mxu1 %v6513_v39  ;;  %v755_v61 = vadd.bf16 1056980736, %v563_v53  ;;  %v1151_v9 = vmin.bf16 %v6714_v51, %v959_v2  ;;  %v588_v21 = vmul.bf16 1056980736, %v396_v17  ;;  %v971_v29 = vmax.bf16 %v6713_v45, %v779_v23  ;;  %v6525_v63 = vld [vmem:[%s8956_s1 + $0x3f8] sm:$0xff]   ;;  %v253_v2 = vld [vmem:[%s6890_s22 + $0xe0] sm:$0xff] }
  0x8a   : > { %v1140_v13 = vmin.bf16 %v6714_v51, %v948_v4  ;;  %v422_v52 = vmul.bf16 1056980736, %v230_v42  ;;  %v434_v53 = vmul.bf16 1056980736, %v242_v48  ;;  %v6529_v42 = vld [vmem:[%s8956_s1 + $0x3f0] sm:$0xff]  }
  0x8b   : > { %5884 = vmatpush3.bf16.msra.mxu0 %v6512_v34  ;;  %v947_v1 = vmax.bf16 %v6713_v45, %v755_v61  ;;  %v780_v26 = vadd.bf16 1056980736, %v588_v21  ;;  %v1163_v34 = vmin.bf16 %v6714_v51, %v971_v29  ;;  %v289_v29 = vld [vmem:[%s6890_s22 + $0x200] sm:$0xff] }
  0x8c   : > { %5948 = vmatpush3.bf16.msra.mxu1 %v6514_v43  ;;  %5885 = vmatprep.subr.bf16.mxu0 %v6515_v56  ;;  %v625_v56 = vadd.bf16 1056980736, %v433_v47  ;;  %v626_v58 = vadd.bf16 1056980736, %v434_v53  ;;  %v6528_v47 = vld [vmem:[%s8956_s1 + $0x330] sm:$0xff]  }
  0x8d   : > { %3939 = vmatmul.mubr.bf16.gmra.mxu0 %v5306_v10  ;;  %v1139_v8 = vmin.bf16 %v6714_v51, %v947_v1  ;;  %v6518_v10 = vld [vmem:[%s8956_s1 + $0x288] sm:$0xff]   ;;  %5949 = vmatprep.subr.bf16.mxu1 %v6517_v6  ;;  %v972_v32 = vmax.bf16 %v6713_v45, %v780_v26  ;;  %v265_v6 = vld [vmem:[%s6890_s22 + $0x140] sm:$0xff] }
  0x8e   : > { %4036 = vmatmul.mubr.bf16.gmra.mxu1 %v5308_v14  ;;  %3946 = vmatprep.mubr.bf16.mxu0 %v5331_v25  ;;  %v1152_v14 = vmin.bf16 %v6714_v51, %v960_v5  ;;  %v791_v25 = vadd.bf16 1056980736, %v599_v20  ;;  %v818_v62 = vmax.bf16 %v6713_v45, %v626_v58 }
  0x8f   : > { %4043 = vmatprep.mubr.bf16.mxu1 %v5333_v28  ;;  %5886 = vmatpush3.bf16.msra.mxu0 %v6516_v3  ;;  %v5379_v19 = vcombine.high %v1139_v8, %v1151_v9  ;;  %v6520_v28 = vld [vmem:[%s8956_s1 + $0x200] sm:$0xff]   ;;  %v5378_v37 = vcombine.low %v1139_v8, %v1151_v9  ;;  %v1164_v39 = vmin.bf16 %v6714_v51, %v972_v32  ;;  %v254_v8 = vld [vmem:[%s6890_s22 + $0xe8] sm:$0xff]  ;;  %v6526_v32 = vld [vmem:[%s8956_s1 + $0x3b8] sm:$0xff]  }
  0x90   : > { %5950 = vmatpush3.bf16.msra.mxu1 %v6518_v10  ;;  %v5381_v22 = vcombine.high %v1140_v13, %v1152_v14  ;;  %v983_v31 = vmax.bf16 %v6713_v45, %v791_v25  ;;  %5887 = vmatprep.subr.bf16.mxu0 %v6519_v27  ;;  %v5380_v43 = vcombine.low %v1140_v13, %v1152_v14  ;;  %v266_v9 = vld [vmem:[%s6890_s22 + $0x148] sm:$0xff]  ;;  %v446_v13 = vmul.bf16 1056980736, %v254_v8  ;;  %v6524_v25 = vld [vmem:[%s8956_s1 + $0x338] sm:$0xff]  }
  0x91   : > { %5951 = vmatprep.subr.bf16.mxu1 %v6521_v33  ;;  %v1010_v5 = vmin.bf16 %v6714_v51, %v818_v62  ;;  %v458_v16 = vmul.bf16 1056980736, %v266_v9 }
  0x92   : > { %v1175_v38 = vmin.bf16 %v6714_v51, %v983_v31  ;;  %v638_v18 = vadd.bf16 1056980736, %v446_v13 }
  0x93   : > { %5888 = vmatpush3.bf16.msra.mxu0 %v6520_v28  ;;  %v650_v20 = vadd.bf16 1056980736, %v458_v16  ;;  %v277_v28 = vld [vmem:[%s6890_s22 + $0x1a0] sm:$0xff] }
  0x94   : > { %5952 = vmatpush3.bf16.msra.mxu1 %v6522_v36  ;;  %v5403_v50 = vcombine.high %v1163_v34, %v1175_v38  ;;  %6001 = vmatprep.subr.bf16.mxu0 %v6523_v49  ;;  %v5402_v3 = vcombine.low %v1163_v34, %v1175_v38  ;;  %v469_v34 = vmul.bf16 1056980736, %v277_v28  ;;  %v290_v36 = vld [vmem:[%s6890_s22 + $0x208] sm:$0xff]  ;;  %v6527_v38 = vld [vmem:[%s8956_s1 + $0x370] sm:$0xff]   ;;  %v337_v28 = vld [vmem:[%s6890_s22 + $0x380] sm:$0xff] }
  0x95   : > { %3947 = vmatmul.mubr.bf16.gmra.mxu0 %v5330_v40  ;;  %v229_v40 = vld [vmem:[%s6890_s22 + $0x20] sm:$0xff]  ;;  %6065 = vmatprep.subr.bf16.mxu1 %v6525_v63  ;;  %v842_v24 = vmax.bf16 %v6713_v45, %v650_v20 }
  0x96   : > { %4044 = vmatmul.mubr.bf16.gmra.mxu1 %v5332_v44  ;;  %3954 = vmatprep.mubr.bf16.mxu0 %v5355_v57  ;;  %v1176_v44 = vmin.bf16 %v6714_v51, %v984_v35  ;;  %v421_v46 = vmul.bf16 1056980736, %v229_v40  ;;  %v614_v57 = vadd.bf16 1056980736, %v422_v52  ;;  %v481_v35 = vmul.bf16 1056980736, %v289_v29 }
  0x97   : > { %4051 = vmatprep.mubr.bf16.mxu1 %v5357_v60  ;;  %v817_v60 = vmax.bf16 %v6713_v45, %v625_v56  ;;  %v7327_v33 = vmin.bf16 %v6714_v51, %v842_v24  ;;  %v482_v40 = vmul.bf16 1056980736, %v290_v36  ;;  %v6531_v56 = vld [vmem:[%s8956_s1 + $0x368] sm:$0xff]   ;;  %v313_v63 = vld [vmem:[%s6890_s22 + $0x2c0] sm:$0xff] }
  0x98   : > { %v5405_v54 = vcombine.high %v1164_v39, %v1176_v44  ;;  %v613_v55 = vadd.bf16 1056980736, %v421_v46  ;;  %v806_v61 = vmax.bf16 %v6713_v45, %v614_v57  ;;  %v5404_v10 = vcombine.low %v1164_v39, %v1176_v44  ;;  %v6536_v20 = vld [vmem:[%s8956_s1 + $0x320] sm:$0xff]   ;;  %v326_v29 = vld [vmem:[%s6890_s22 + $0x328] sm:$0xff] }
  0x99   : > { %v1009_v1 = vmin.bf16 %v6714_v51, %v817_v60  ;;  %v470_v39 = vmul.bf16 1056980736, %v278_v30  ;;  %v673_v44 = vadd.bf16 1056980736, %v481_v35  ;;  %v674_v49 = vadd.bf16 1056980736, %v482_v40 }
  0x9a   : > { %v805_v59 = vmax.bf16 %v6713_v45, %v613_v55  ;;  %v998_v4 = vmin.bf16 %v6714_v51, %v806_v61  ;;  %v301_v60 = vld [vmem:[%s6890_s22 + $0x260] sm:$0xff]  ;;  %v518_v36 = vmul.bf16 1056980736, %v326_v29 }
  0x9b   : > { %v662_v48 = vadd.bf16 1056980736, %v470_v39  ;;  %v865_v53 = vmax.bf16 %v6713_v45, %v673_v44  ;;  %v866_v55 = vmax.bf16 %v6713_v45, %v674_v49  ;;  %v6538_v24 = vld [vmem:[%s8956_s1 + $0x3a0] sm:$0xff]  }
  0x9c   : > { %v997_v0 = vmin.bf16 %v6714_v51, %v805_v59  ;;  %v5241_v14 = vcombine.high %v998_v4, %v1010_v5  ;;  %v6533_v59 = vld [vmem:[%s8956_s1 + $0x3e8] sm:$0xff]  }
  0x9d   : > { %3955 = vmatmul.mubr.bf16.gmra.mxu0 %v5354_v7  ;;  %v445_v7 = vmul.bf16 1056980736, %v253_v2  ;;  %v7357_v58 = vmin.bf16 %v6714_v51, %v865_v53  ;;  %v7367_v62 = vmin.bf16 %v6714_v51, %v866_v55  ;;  %v314_v2 = vld [vmem:[%s6890_s22 + $0x2c8] sm:$0xff]  ;;  %v6542_v55 = vld [vmem:[%s8956_s1 + $0x398] sm:$0xff]  }
  0x9e   : > { %4052 = vmatmul.mubr.bf16.gmra.mxu1 %v5356_v12  ;;  %3962 = vmatprep.mubr.bf16.mxu0 %v5379_v19  ;;  %v5239_v11 = vcombine.high %v997_v0, %v1009_v1  ;;  %v457_v12 = vmul.bf16 1056980736, %v265_v6  ;;  %v5238_v31 = vcombine.low %v997_v0, %v1009_v1  ;;  %v493_v0 = vmul.bf16 1056980736, %v301_v60  ;;  %v302_v1 = vld [vmem:[%s6890_s22 + $0x268] sm:$0xff] }
  0x9f   : > { %4059 = vmatprep.mubr.bf16.mxu1 %v5381_v22  ;;  %v637_v15 = vadd.bf16 1056980736, %v445_v7  ;;  %v830_v22 = vmax.bf16 %v6713_v45, %v638_v18  ;;  %v494_v6 = vmul.bf16 1056980736, %v302_v1 }
  0xa0   : > { %v649_v17 = vadd.bf16 1056980736, %v457_v12  ;;  %v685_v9 = vadd.bf16 1056980736, %v493_v0  ;;  %v6534_v12 = vld [vmem:[%s8956_s1 + $0x3a8] sm:$0xff]  }
  0xa1   : > { %v829_v19 = vmax.bf16 %v6713_v45, %v637_v15  ;;  %v7318_v27 = vmin.bf16 %v6714_v51, %v830_v22  ;;  %v6535_v15 = vld [vmem:[%s8956_s1 + $0x360] sm:$0xff]  }
  0xa2   : > { %v841_v21 = vmax.bf16 %v6713_v45, %v649_v17  ;;  %v877_v16 = vmax.bf16 %v6713_v45, %v685_v9  ;;  %v6544_v9 = vld [vmem:[%s8956_s1 + $0x310] sm:$0xff]  }
  0xa3   : > { %v7308_v23 = vmin.bf16 %v6714_v51, %v829_v19  ;;  %v5265_v46 = vcombine.high %v7318_v27, %v7327_v33  ;;  %v5264_v7 = vcombine.low %v7318_v27, %v7327_v33  ;;  %v325_v27 = vld [vmem:[%s6890_s22 + $0x320] sm:$0xff]  ;;  %v338_v33 = vld [vmem:[%s6890_s22 + $0x388] sm:$0xff] }
  0xa4   : > { %v7315_v26 = vmin.bf16 %v6714_v51, %v841_v21  ;;  %v6537_v21 = vld [vmem:[%s8956_s1 + $0x3e0] sm:$0xff]   ;;  %v7399_v22 = vmin.bf16 %v6714_v51, %v877_v16 }
  0xa5   : > { %3963 = vmatmul.mubr.bf16.gmra.mxu0 %v5378_v37  ;;  %v5240_v37 = vcombine.low %v998_v4, %v1010_v5  ;;  %v6532_v4 = vld [vmem:[%s8956_s1 + $0x328] sm:$0xff]   ;;  %v505_v5 = vmul.bf16 1056980736, %v313_v63 }
  0xa6   : > { %4060 = vmatmul.mubr.bf16.gmra.mxu1 %v5380_v43  ;;  %3970 = vmatprep.mubr.bf16.mxu0 %v5403_v50  ;;  %v5263_v41 = vcombine.high %v7308_v23, %v7315_v26  ;;  %v661_v43 = vadd.bf16 1056980736, %v469_v34  ;;  %v6530_v50 = vld [vmem:[%s8956_s1 + $0x3b0] sm:$0xff]   ;;  %v6539_v34 = vld [vmem:[%s8956_s1 + $0x358] sm:$0xff]  }
  0xa7   : > { %4067 = vmatprep.mubr.bf16.mxu1 %v5405_v54  ;;  %v854_v54 = vmax.bf16 %v6713_v45, %v662_v48  ;;  %v697_v13 = vadd.bf16 1056980736, %v505_v5  ;;  %v6540_v48 = vld [vmem:[%s8956_s1 + $0x318] sm:$0xff]  }
  0xa8   : > { %v853_v52 = vmax.bf16 %v6713_v45, %v661_v43  ;;  %v710_v43 = vadd.bf16 1056980736, %v518_v36 }
  0xa9   : > { %v7364_v61 = vmin.bf16 %v6714_v51, %v854_v54  ;;  %v889_v18 = vmax.bf16 %v6713_v45, %v697_v13 }
  0xaa   : > { %v7354_v57 = vmin.bf16 %v6714_v51, %v853_v52  ;;  %v902_v49 = vmax.bf16 %v6713_v45, %v710_v43  ;;  %v6541_v52 = vld [vmem:[%s8956_s1 + $0x3d8] sm:$0xff]  }
  0xac   : > { %v5287_v8 = vcombine.high %v7354_v57, %v7357_v58  ;;  %v5286_v35 = vcombine.low %v7354_v57, %v7357_v58  ;;  %v7450_v57 = vmin.bf16 %v6714_v51, %v902_v49 }
  0xad   : > { %3971 = vmatmul.mubr.bf16.gmra.mxu0 %v5402_v3  ;;  %v5262_v3 = vcombine.low %v7308_v23, %v7315_v26 }
  0xae   : > { %4068 = vmatmul.mubr.bf16.gmra.mxu1 %v5404_v10  ;;  %4108 = vmatprep.mubr.bf16.mxu0 %v5239_v11  ;;  %v506_v10 = vmul.bf16 1056980736, %v314_v2  ;;  %v5289_v11 = vcombine.high %v7364_v61, %v7367_v62 }
  0xaf   : > { %4205 = vmatprep.mubr.bf16.mxu1 %v5241_v14  ;;  %v686_v14 = vadd.bf16 1056980736, %v494_v6 }
  0xb0   : > { %v698_v17 = vadd.bf16 1056980736, %v506_v10 }
  0xb1   : > { %v878_v19 = vmax.bf16 %v6713_v45, %v686_v14 }
  0xb2   : > { %v890_v23 = vmax.bf16 %v6713_v45, %v698_v17  ;;  %v6546_v17 = vld [vmem:[%s8956_s1 + $0x390] sm:$0xff]  }
  0xb3   : > { %v7409_v26 = vmin.bf16 %v6714_v51, %v878_v19 }
  0xb4   : > { %v7415_v30 = vmin.bf16 %v6714_v51, %v890_v23 }
  0xb5   : > { %4109 = vmatmul.mubr.bf16.vlgmr.msra.gmra.mxu0 %v5238_v31  ;;  %v517_v31 = vmul.bf16 1056980736, %v325_v27  ;;  %v386_v27 = vld [vmem:[%s6890_s22 + $0x508] sm:$0xff] }
  0xb6   : > { %4206 = vmatmul.mubr.bf16.vlgmr.msra.gmra.mxu1 %v5240_v37  ;;  %6002 = vmatpush3.bf16.msra.mxu0 %v6524_v25  ;;  %v7406_v25 = vmin.bf16 %v6714_v51, %v889_v18  ;;  %v530_v37 = vmul.bf16 1056980736, %v338_v33 }
  0xb7   : > { %6066 = vmatpush3.bf16.msra.mxu1 %v6526_v32  ;;  %4116 = vmatprep.mubr.bf16.mxu0 %v5263_v41  ;;  %v529_v32 = vmul.bf16 1056980736, %v337_v28  ;;  %v709_v40 = vadd.bf16 1056980736, %v517_v31  ;;  %v6547_v28 = vld [vmem:[%s8956_s1 + $0x348] sm:$0xff]  }
  0xb8   : > { %4213 = vmatprep.mubr.bf16.mxu1 %v5265_v46  ;;  %6003 = vmatprep.subr.bf16.mxu0 %v6527_v38  ;;  %v5288_v38 = vcombine.low %v7364_v61, %v7367_v62  ;;  %v5311_v39 = vcombine.high %v7399_v22, %v7406_v25  ;;  %v722_v44 = vadd.bf16 1056980736, %v530_v37  ;;  %v350_v61 = vld [vmem:[%s6890_s22 + $0x3e8] sm:$0xff]  ;;  %v5310_v1 = vcombine.low %v7399_v22, %v7406_v25 }
  0xb9   : > { %6067 = vmatprep.subr.bf16.mxu1 %v6529_v42  ;;  %v721_v41 = vadd.bf16 1056980736, %v529_v32  ;;  %v5313_v42 = vcombine.high %v7409_v26, %v7415_v30  ;;  %v901_v46 = vmax.bf16 %v6713_v45, %v709_v40  ;;  %v362_v62 = vld [vmem:[%s6890_s22 + $0x448] sm:$0xff]  ;;  %v542_v0 = vmul.bf16 1056980736, %v350_v61 }
  0xba   : > { %6004 = vmatpush3.bf16.msra.mxu0 %v6528_v47  ;;  %v374_v22 = vld [vmem:[%s6890_s22 + $0x4a8] sm:$0xff] }
  0xbb   : > { %6068 = vmatpush3.bf16.msra.mxu1 %v6530_v50  ;;  %6005 = vmatprep.subr.bf16.mxu0 %v6531_v56  ;;  %v913_v47 = vmax.bf16 %v6713_v45, %v721_v41  ;;  %v914_v50 = vmax.bf16 %v6713_v45, %v722_v44  ;;  %v7440_v53 = vmin.bf16 %v6714_v51, %v901_v46  ;;  %v349_v56 = vld [vmem:[%s6890_s22 + $0x3e0] sm:$0xff]  ;;  %v566_v29 = vmul.bf16 1056980736, %v374_v22  ;;  %v6548_v41 = vld [vmem:[%s8956_s1 + $0x308] sm:$0xff]  }
  0xbc   : > { %6069 = vmatprep.subr.bf16.mxu1 %v6533_v59  ;;  %v361_v59 = vld [vmem:[%s6890_s22 + $0x440] sm:$0xff]  ;;  %v541_v60 = vmul.bf16 1056980736, %v349_v56  ;;  %v6549_v44 = vld [vmem:[%s8956_s1 + $0x3c8] sm:$0xff]  }
  0xbd   : > { %4117 = vmatmul.mubr.bf16.gmra.mxu0 %v5262_v3  ;;  %v7443_v54 = vmin.bf16 %v6714_v51, %v913_v47  ;;  %v7453_v58 = vmin.bf16 %v6714_v51, %v914_v50  ;;  %v553_v63 = vmul.bf16 1056980736, %v361_v59  ;;  %v554_v3 = vmul.bf16 1056980736, %v362_v62  ;;  %v6550_v46 = vld [vmem:[%s8956_s1 + $0x388] sm:$0xff]   ;;  %v397_v47 = vld [vmem:[%s6890_s22 + $0x560] sm:$0xff] }
  0xbe   : > { %4214 = vmatmul.mubr.bf16.gmra.mxu1 %v5264_v7  ;;  %4124 = vmatprep.mubr.bf16.mxu0 %v5287_v8  ;;  %v733_v2 = vadd.bf16 1056980736, %v541_v60  ;;  %v734_v7 = vadd.bf16 1056980736, %v542_v0  ;;  %v6543_v8 = vld [vmem:[%s8956_s1 + $0x350] sm:$0xff]   ;;  %v409_v50 = vld [vmem:[%s6890_s22 + $0x5c0] sm:$0xff] }
  0xbf   : > { %4221 = vmatprep.mubr.bf16.mxu1 %v5289_v11  ;;  %6006 = vmatpush3.bf16.msra.mxu0 %v6532_v4  ;;  %v5312_v4 = vcombine.low %v7409_v26, %v7415_v30  ;;  %v5335_v5 = vcombine.high %v7440_v53, %v7443_v54  ;;  %v745_v6 = vadd.bf16 1056980736, %v553_v63  ;;  %v5337_v10 = vcombine.high %v7450_v57, %v7453_v58  ;;  %v6551_v0 = vld [vmem:[%s8956_s1 + $0x340] sm:$0xff]  }
  0xc0   : > { %6070 = vmatpush3.bf16.msra.mxu1 %v6534_v12  ;;  %6007 = vmatprep.subr.bf16.mxu0 %v6535_v15  ;;  %v925_v11 = vmax.bf16 %v6713_v45, %v733_v2  ;;  %v746_v12 = vadd.bf16 1056980736, %v554_v3  ;;  %v926_v14 = vmax.bf16 %v6713_v45, %v734_v7  ;;  %v6545_v15 = vld [vmem:[%s8956_s1 + $0x3d0] sm:$0xff]   ;;  %v578_v30 = vmul.bf16 1056980736, %v386_v27 }
  0xc1   : > { %6071 = vmatprep.subr.bf16.mxu1 %v6537_v21  ;;  %v937_v13 = vmax.bf16 %v6713_v45, %v745_v6  ;;  %v385_v21 = vld [vmem:[%s6890_s22 + $0x500] sm:$0xff]  ;;  %v5334_v31 = vcombine.low %v7440_v53, %v7443_v54  ;;  %v758_v36 = vadd.bf16 1056980736, %v566_v29  ;;  %v398_v53 = vld [vmem:[%s6890_s22 + $0x568] sm:$0xff] }
  0xc2   : > { %v938_v16 = vmax.bf16 %v6713_v45, %v746_v12  ;;  %v7483_v18 = vmin.bf16 %v6714_v51, %v925_v11  ;;  %v7492_v23 = vmin.bf16 %v6714_v51, %v926_v14  ;;  %v577_v26 = vmul.bf16 1056980736, %v385_v21  ;;  %v410_v54 = vld [vmem:[%s6890_s22 + $0x5c8] sm:$0xff]  ;;  %v6554_v11 = vld [vmem:[%s8956_s1 + $0x380] sm:$0xff]   ;;  %v231_v12 = vld [vmem:[%s6890_s22 + $0x30] sm:$0xff] }
  0xc3   : > { %6008 = vmatpush3.bf16.msra.mxu0 %v6536_v20  ;;  %v7486_v19 = vmin.bf16 %v6714_v51, %v937_v13  ;;  %v373_v20 = vld [vmem:[%s6890_s22 + $0x4a0] sm:$0xff]  ;;  %v770_v37 = vadd.bf16 1056980736, %v578_v30  ;;  %v602_v60 = vmul.bf16 1056980736, %v410_v54  ;;  %v243_v13 = vld [vmem:[%s6890_s22 + $0x90] sm:$0xff] }
  0xc4   : > { %6072 = vmatpush3.bf16.msra.mxu1 %v6538_v24  ;;  %6009 = vmatprep.subr.bf16.mxu0 %v6539_v34  ;;  %v7495_v24 = vmin.bf16 %v6714_v51, %v938_v16  ;;  %v565_v25 = vmul.bf16 1056980736, %v373_v20  ;;  %v769_v33 = vadd.bf16 1056980736, %v577_v26  ;;  %v5336_v34 = vcombine.low %v7450_v57, %v7453_v58  ;;  %v232_v14 = vld [vmem:[%s6890_s22 + $0x38] sm:$0xff] }
  0xc5   : > { %4125 = vmatmul.mubr.bf16.gmra.mxu0 %v5286_v35  ;;  %6073 = vmatprep.subr.bf16.mxu1 %v6541_v52  ;;  %v5359_v35 = vcombine.high %v7483_v18, %v7486_v19  ;;  %v962_v43 = vmax.bf16 %v6713_v45, %v770_v37  ;;  %v589_v52 = vmul.bf16 1056980736, %v397_v47  ;;  %v601_v57 = vmul.bf16 1056980736, %v409_v50  ;;  %v6555_v20 = vld [vmem:[%s8956_s1 + $0x478] sm:$0xff]  }
  0xc6   : > { %4222 = vmatmul.mubr.bf16.gmra.mxu1 %v5288_v38  ;;  %4132 = vmatprep.mubr.bf16.mxu0 %v5311_v39  ;;  %v757_v32 = vadd.bf16 1056980736, %v565_v25  ;;  %v5361_v38 = vcombine.high %v7492_v23, %v7495_v24  ;;  %v961_v40 = vmax.bf16 %v6713_v45, %v769_v33  ;;  %v590_v58 = vmul.bf16 1056980736, %v398_v53  ;;  %v6557_v37 = vld [vmem:[%s8956_s1 + $0x4f8] sm:$0xff]  }
  0xc7   : > { %4229 = vmatprep.mubr.bf16.mxu1 %v5313_v42  ;;  %6010 = vmatpush3.bf16.msra.mxu0 %v6540_v48  ;;  %v950_v42 = vmax.bf16 %v6713_v45, %v758_v36  ;;  %v7536_v56 = vmin.bf16 %v6714_v51, %v962_v43  ;;  %v781_v59 = vadd.bf16 1056980736, %v589_v52  ;;  %v5358_v61 = vcombine.low %v7483_v18, %v7486_v19  ;;  %v244_v19 = vld [vmem:[%s6890_s22 + $0x98] sm:$0xff] }
  0xc8   : > { %6074 = vmatpush3.bf16.msra.mxu1 %v6542_v55  ;;  %6011 = vmatprep.subr.bf16.mxu0 %v6543_v8  ;;  %v949_v39 = vmax.bf16 %v6713_v45, %v757_v32  ;;  %v7527_v49 = vmin.bf16 %v6714_v51, %v961_v40  ;;  %v793_v62 = vadd.bf16 1056980736, %v601_v57  ;;  %v782_v63 = vadd.bf16 1056980736, %v590_v58  ;;  %v256_v40 = vld [vmem:[%s6890_s22 + $0xf8] sm:$0xff] }
  0xc9   : > { %6075 = vmatprep.subr.bf16.mxu1 %v6545_v15  ;;  %v7533_v55 = vmin.bf16 %v6714_v51, %v950_v42  ;;  %v5360_v2 = vcombine.low %v7492_v23, %v7495_v24  ;;  %v435_v18 = vmul.bf16 1056980736, %v243_v13  ;;  %v424_v23 = vmul.bf16 1056980736, %v232_v14 }
  0xca   : > { %v7524_v48 = vmin.bf16 %v6714_v51, %v949_v39  ;;  %v985_v7 = vmax.bf16 %v6713_v45, %v793_v62  ;;  %v974_v8 = vmax.bf16 %v6713_v45, %v782_v63  ;;  %v436_v24 = vmul.bf16 1056980736, %v244_v19  ;;  %v267_v39 = vld [vmem:[%s6890_s22 + $0x150] sm:$0xff] }
  0xcb   : > { %6012 = vmatpush3.bf16.msra.mxu0 %v6544_v9  ;;  %v5385_v6 = vcombine.high %v7533_v55, %v7536_v56  ;;  %v6553_v9 = vld [vmem:[%s8956_s1 + $0x3c0] sm:$0xff]   ;;  %v627_v26 = vadd.bf16 1056980736, %v435_v18  ;;  %v5384_v30 = vcombine.low %v7533_v55, %v7536_v56 }
  0xcc   : > { %6076 = vmatpush3.bf16.msra.mxu1 %v6546_v17  ;;  %6013 = vmatprep.subr.bf16.mxu0 %v6547_v28  ;;  %v5383_v3 = vcombine.high %v7524_v48, %v7527_v49  ;;  %v1177_v16 = vmin.bf16 %v6714_v51, %v985_v7  ;;  %v423_v17 = vmul.bf16 1056980736, %v231_v12  ;;  %v1166_v21 = vmin.bf16 %v6714_v51, %v974_v8 }
  0xcd   : > { %4133 = vmatmul.mubr.bf16.gmra.mxu0 %v5310_v1  ;;  %6077 = vmatprep.subr.bf16.mxu1 %v6549_v44  ;;  %v6552_v1 = vld [vmem:[%s8956_s1 + $0x300] sm:$0xff]   ;;  %v5382_v27 = vcombine.low %v7524_v48, %v7527_v49  ;;  %v616_v28 = vadd.bf16 1056980736, %v424_v23  ;;  %v628_v29 = vadd.bf16 1056980736, %v436_v24  ;;  %v819_v33 = vmax.bf16 %v6713_v45, %v627_v26  ;;  %v6561_v24 = vld [vmem:[%s8956_s1 + $0x4f0] sm:$0xff]  }
  0xce   : > { %4230 = vmatmul.mubr.bf16.gmra.mxu1 %v5312_v4  ;;  %4140 = vmatprep.mubr.bf16.mxu0 %v5335_v5  ;;  %v973_v4 = vmax.bf16 %v6713_v45, %v781_v59  ;;  %v794_v5 = vadd.bf16 1056980736, %v602_v60  ;;  %v615_v25 = vadd.bf16 1056980736, %v423_v17  ;;  %v459_v44 = vmul.bf16 1056980736, %v267_v39 }
  0xcf   : > { %4237 = vmatprep.mubr.bf16.mxu1 %v5337_v10  ;;  %6014 = vmatpush3.bf16.msra.mxu0 %v6548_v41  ;;  %v820_v36 = vmax.bf16 %v6713_v45, %v628_v29  ;;  %v1011_v42 = vmin.bf16 %v6714_v51, %v819_v33  ;;  %v448_v49 = vmul.bf16 1056980736, %v256_v40  ;;  %v6558_v17 = vld [vmem:[%s8956_s1 + $0x4b8] sm:$0xff]   ;;  %v303_v29 = vld [vmem:[%s6890_s22 + $0x270] sm:$0xff]  ;;  %v7641_v33 = vld [vmem:[%s8957_s2] ss:$0 sm:$0xff] }
  0xd0   : > { %6078 = vmatpush3.bf16.msra.mxu1 %v6550_v46  ;;  %6015 = vmatprep.subr.bf16.mxu0 %v6551_v0  ;;  %v986_v10 = vmax.bf16 %v6713_v45, %v794_v5  ;;  %v1165_v15 = vmin.bf16 %v6714_v51, %v973_v4  ;;  %v807_v32 = vmax.bf16 %v6713_v45, %v615_v25  ;;  %v268_v46 = vld [vmem:[%s6890_s22 + $0x158] sm:$0xff]  ;;  %v651_v53 = vadd.bf16 1056980736, %v459_v44  ;;  %v279_v0 = vld [vmem:[%s6890_s22 + $0x1b0] sm:$0xff] }
  0xd1   : > { %6079 = vmatprep.subr.bf16.mxu1 %v6553_v9  ;;  %v1012_v48 = vmin.bf16 %v6714_v51, %v820_v36  ;;  %v460_v50 = vmul.bf16 1056980736, %v268_v46  ;;  %v640_v55 = vadd.bf16 1056980736, %v448_v49  ;;  %v292_v4 = vld [vmem:[%s6890_s22 + $0x218] sm:$0xff] }
  0xd2   : > { %v1178_v22 = vmin.bf16 %v6714_v51, %v986_v10  ;;  %v999_v41 = vmin.bf16 %v6714_v51, %v807_v32  ;;  %v5406_v54 = vcombine.low %v1165_v15, %v1177_v16  ;;  %v484_v10 = vmul.bf16 1056980736, %v292_v4  ;;  %v6567_v4 = vld [vmem:[%s8956_s1 + $0x460] sm:$0xff]  }
  0xd3   : > { %6016 = vmatpush3.bf16.msra.mxu0 %v6552_v1  ;;  %v652_v56 = vadd.bf16 1056980736, %v460_v50  ;;  %v832_v62 = vmax.bf16 %v6713_v45, %v640_v55  ;;  %v291_v1 = vld [vmem:[%s6890_s22 + $0x210] sm:$0xff]  ;;  %v495_v36 = vmul.bf16 1056980736, %v303_v29 }
  0xd4   : > { %6080 = vmatpush3.bf16.msra.mxu1 %v6554_v11  ;;  %6129 = vmatprep.subr.bf16.mxu0 %v6555_v20  ;;  %v5408_v57 = vcombine.low %v1166_v21, %v1178_v22  ;;  %v5243_v58 = vcombine.high %v999_v41, %v1011_v42  ;;  %v483_v5 = vmul.bf16 1056980736, %v291_v1  ;;  %v6556_v11 = vld [vmem:[%s8956_s1 + $0x438] sm:$0xff]   ;;  %v676_v18 = vadd.bf16 1056980736, %v484_v10  ;;  %v6559_v20 = vld [vmem:[%s8956_s1 + $0x470] sm:$0xff]  }
  0xd5   : > { %4141 = vmatmul.mubr.bf16.gmra.mxu0 %v5334_v31  ;;  %v5407_v31 = vcombine.high %v1165_v15, %v1177_v16  ;;  %6193 = vmatprep.subr.bf16.mxu1 %v6557_v37  ;;  %v844_v63 = vmax.bf16 %v6713_v45, %v652_v56  ;;  %v7610_v12 = vmin.bf16 %v6714_v51, %v832_v62  ;;  %v687_v49 = vadd.bf16 1056980736, %v495_v36  ;;  %v6566_v1 = vld [vmem:[%s8956_s1 + $0x4a8] sm:$0xff]  }
  0xd6   : > { %4238 = vmatmul.mubr.bf16.gmra.mxu1 %v5336_v34  ;;  %4148 = vmatprep.mubr.bf16.mxu0 %v5359_v35  ;;  %v5409_v34 = vcombine.high %v1166_v21, %v1178_v22  ;;  %v808_v35 = vmax.bf16 %v6713_v45, %v616_v28  ;;  %v675_v14 = vadd.bf16 1056980736, %v483_v5  ;;  %v5242_v16 = vcombine.low %v999_v41, %v1011_v42  ;;  %v6560_v28 = vld [vmem:[%s8956_s1 + $0x430] sm:$0xff]   ;;  %v6565_v42 = vld [vmem:[%s8956_s1 + $0x4e8] sm:$0xff]  }
  0xd7   : > { %4245 = vmatprep.mubr.bf16.mxu1 %v5361_v38  ;;  %v255_v38 = vld [vmem:[%s6890_s22 + $0xf0] sm:$0xff]  ;;  %v7613_v13 = vmin.bf16 %v6714_v51, %v844_v63  ;;  %v868_v26 = vmax.bf16 %v6713_v45, %v676_v18 }
  0xd8   : > { %v447_v43 = vmul.bf16 1056980736, %v255_v38  ;;  %v1000_v47 = vmin.bf16 %v6714_v51, %v808_v35  ;;  %v867_v22 = vmax.bf16 %v6713_v45, %v675_v14  ;;  %v6563_v35 = vld [vmem:[%s8956_s1 + $0x468] sm:$0xff]   ;;  %v316_v38 = vld [vmem:[%s6890_s22 + $0x2d8] sm:$0xff] }
  0xd9   : > { %v508_v44 = vmul.bf16 1056980736, %v316_v38  ;;  %v328_v14 = vld [vmem:[%s6890_s22 + $0x338] sm:$0xff] }
  0xda   : > { %v639_v52 = vadd.bf16 1056980736, %v447_v43  ;;  %v5245_v59 = vcombine.high %v1000_v47, %v1012_v48  ;;  %v5244_v19 = vcombine.low %v1000_v47, %v1012_v48  ;;  %v7654_v41 = vmin.bf16 %v6714_v51, %v867_v22 }
  0xdb   : > { %v7663_v48 = vmin.bf16 %v6714_v51, %v868_v26  ;;  %v700_v55 = vadd.bf16 1056980736, %v508_v44 }
  0xdc   : > { %v831_v60 = vmax.bf16 %v6713_v45, %v639_v52 }
  0xdd   : > { %4149 = vmatmul.mubr.bf16.gmra.mxu0 %v5358_v61  ;;  %v843_v61 = vmax.bf16 %v6713_v45, %v651_v53 }
  0xde   : > { %4246 = vmatmul.mubr.bf16.gmra.mxu1 %v5360_v2  ;;  %4156 = vmatprep.mubr.bf16.mxu0 %v5383_v3  ;;  %v471_v2 = vmul.bf16 1056980736, %v279_v0  ;;  %v280_v3 = vld [vmem:[%s6890_s22 + $0x1b8] sm:$0xff]  ;;  %v7601_v7 = vmin.bf16 %v6714_v51, %v831_v60  ;;  %v6564_v60 = vld [vmem:[%s8956_s1 + $0x428] sm:$0xff]  }
  0xdf   : > { %4253 = vmatprep.mubr.bf16.mxu1 %v5385_v6  ;;  %v472_v6 = vmul.bf16 1056980736, %v280_v3  ;;  %v7604_v8 = vmin.bf16 %v6714_v51, %v843_v61  ;;  %v879_v61 = vmax.bf16 %v6713_v45, %v687_v49  ;;  %v6572_v49 = vld [vmem:[%s8956_s1 + $0x418] sm:$0xff]  }
  0xe0   : > { %v663_v9 = vadd.bf16 1056980736, %v471_v2 }
  0xe1   : > { %v664_v15 = vadd.bf16 1056980736, %v472_v6  ;;  %v5267_v23 = vcombine.high %v7601_v7, %v7604_v8  ;;  %v7697_v18 = vmin.bf16 %v6714_v51, %v879_v61 }
  0xe2   : > { %v855_v21 = vmax.bf16 %v6713_v45, %v663_v9  ;;  %v327_v9 = vld [vmem:[%s6890_s22 + $0x330] sm:$0xff] }
  0xe3   : > { %v856_v25 = vmax.bf16 %v6713_v45, %v664_v15  ;;  %v340_v15 = vld [vmem:[%s6890_s22 + $0x398] sm:$0xff] }
  0xe4   : > { %v7651_v40 = vmin.bf16 %v6714_v51, %v855_v21 }
  0xe5   : > { %4157 = vmatmul.mubr.bf16.gmra.mxu0 %v5382_v27  ;;  %v5269_v27 = vcombine.high %v7610_v12, %v7613_v13  ;;  %v7660_v47 = vmin.bf16 %v6714_v51, %v856_v25  ;;  %v6570_v25 = vld [vmem:[%s8956_s1 + $0x4a0] sm:$0xff]  }
  0xe6   : > { %4254 = vmatmul.mubr.bf16.gmra.mxu1 %v5384_v30  ;;  %4164 = vmatprep.mubr.bf16.mxu0 %v5407_v31  ;;  %v315_v30 = vld [vmem:[%s6890_s22 + $0x2d0] sm:$0xff]  ;;  %v304_v31 = vld [vmem:[%s6890_s22 + $0x278] sm:$0xff]  ;;  %v5291_v0 = vcombine.high %v7651_v40, %v7654_v41 }
  0xe7   : > { %4261 = vmatprep.mubr.bf16.mxu1 %v5409_v34  ;;  %v6562_v34 = vld [vmem:[%s8956_s1 + $0x4b0] sm:$0xff]   ;;  %v507_v37 = vmul.bf16 1056980736, %v315_v30  ;;  %v496_v43 = vmul.bf16 1056980736, %v304_v31  ;;  %v5293_v6 = vcombine.high %v7660_v47, %v7663_v48 }
  0xe8   : > { %v520_v31 = vmul.bf16 1056980736, %v328_v14 }
  0xe9   : > { %v699_v50 = vadd.bf16 1056980736, %v507_v37  ;;  %v5290_v37 = vcombine.low %v7651_v40, %v7654_v41  ;;  %v5292_v40 = vcombine.low %v7660_v47, %v7663_v48  ;;  %v6574_v48 = vld [vmem:[%s8956_s1 + $0x498] sm:$0xff]  }
  0xea   : > { %v712_v44 = vadd.bf16 1056980736, %v520_v31 }
  0xeb   : > { %v891_v2 = vmax.bf16 %v6713_v45, %v699_v50 }
  0xed   : > { %4165 = vmatmul.mubr.bf16.gmra.mxu0 %v5406_v54  ;;  %v688_v54 = vadd.bf16 1056980736, %v496_v43 }
  0xee   : > { %4262 = vmatmul.mubr.bf16.gmra.mxu1 %v5408_v57  ;;  %4302 = vmatprep.mubr.bf16.mxu0 %v5243_v58  ;;  %v5266_v58 = vcombine.low %v7601_v7, %v7604_v8  ;;  %v892_v7 = vmax.bf16 %v6713_v45, %v700_v55  ;;  %v6569_v8 = vld [vmem:[%s8956_s1 + $0x4e0] sm:$0xff]  }
  0xef   : > { %4399 = vmatprep.mubr.bf16.mxu1 %v5245_v59  ;;  %v5268_v59 = vcombine.low %v7610_v12, %v7613_v13  ;;  %v880_v3 = vmax.bf16 %v6713_v45, %v688_v54  ;;  %v339_v13 = vld [vmem:[%s6890_s22 + $0x390] sm:$0xff]  ;;  %v6573_v54 = vld [vmem:[%s8956_s1 + $0x4d8] sm:$0xff]  }
  0xf0   : > { %v531_v26 = vmul.bf16 1056980736, %v339_v13  ;;  %v7716_v29 = vmin.bf16 %v6714_v51, %v892_v7  ;;  %v6575_v7 = vld [vmem:[%s8956_s1 + $0x450] sm:$0xff]  }
  0xf2   : > { %v723_v38 = vadd.bf16 1056980736, %v531_v26 }
  0xf5   : > { %v5633_v32 = vpop.f32.mrf.mxu0  ;;  %4303 = vmatmul.mubr.bf16.vlgmr.msra.gmra.mxu0 %v5242_v16 }
  0xf6   : > { %v5697_v39 = vpop.f32.mrf.mxu1  ;;  %4400 = vmatmul.mubr.bf16.vlgmr.msra.gmra.mxu1 %v5244_v19  ;;  %6130 = vmatpush3.bf16.msra.mxu0 %v6556_v11  ;;  %v6568_v19 = vld [vmem:[%s8956_s1 + $0x420] sm:$0xff]  }
  0xf7   : > { %v5634_v46 = vpop.f32.mrf.mxu0  ;;  %6194 = vmatpush3.bf16.msra.mxu1 %v6558_v17  ;;  %4310 = vmatprep.mubr.bf16.mxu0 %v5267_v23  ;;  %v7704_v23 = vmin.bf16 %v6714_v51, %v891_v2 }
  0xf8   : > { %v5635_v52 = vadd.f32 %v5634_v46, %v5633_v32  ;;  %v5698_v53 = vpop.f32.mrf.mxu1  ;;  %4407 = vmatprep.mubr.bf16.mxu1 %v5269_v27  ;;  %6131 = vmatprep.subr.bf16.mxu0 %v6559_v20  ;;  %v519_v20 = vmul.bf16 1056980736, %v327_v9  ;;  %v6571_v27 = vld [vmem:[%s8956_s1 + $0x458] sm:$0xff]   ;;  %v532_v32 = vmul.bf16 1056980736, %v340_v15 }
  0xf9   : > { %v5699_v56 = vadd.f32 %v5698_v53, %v5697_v39  ;;  %v5636_v57 = vpop.f32.mrf.mxu0  ;;  %6195 = vmatprep.subr.bf16.mxu1 %v6561_v24  ;;  %v7707_v24 = vmin.bf16 %v6714_v51, %v880_v3  ;;  %v5315_v41 = vcombine.high %v7697_v18, %v7704_v23  ;;  %v915_v53 = vmax.bf16 %v6713_v45, %v723_v38 }
  0xfa   : > { %v3723_v62 = vadd.f32 %v5635_v52, %v7641_v33  ;;  %v5700_v63 = vpop.f32.mrf.mxu1  ;;  %6132 = vmatpush3.bf16.msra.mxu0 %v6560_v28  ;;  %v711_v30 = vadd.bf16 1056980736, %v519_v20  ;;  %v724_v46 = vadd.bf16 1056980736, %v532_v32 }
  0xfb   : > { %v5637_v5 = vpop.f32.mrf.mxu0  ;;  %6196 = vmatpush3.bf16.msra.mxu1 %v6562_v34  ;;  %6133 = vmatprep.subr.bf16.mxu0 %v6563_v35 }
  0xfc   : > { %v7691_v10 = vadd.f32 %v5699_v56, %v3723_v62  ;;  %v5638_v11 = vadd.f32 %v5637_v5, %v5636_v57  ;;  %v5701_v12 = vpop.f32.mrf.mxu1  ;;  %6197 = vmatprep.subr.bf16.mxu1 %v6565_v42  ;;  %v903_v43 = vmax.bf16 %v6713_v45, %v711_v30  ;;  %v5317_v56 = vcombine.high %v7707_v24, %v7716_v29 }
  0xfd   : > { %v5702_v16 = vadd.f32 %v5701_v12, %v5700_v63  ;;  %v5639_v17 = vpop.f32.mrf.mxu0  ;;  %4311 = vmatmul.mubr.bf16.gmra.mxu0 %v5266_v58  ;;  %v904_v57 = vmax.bf16 %v6713_v45, %v712_v44  ;;  %v916_v47 = vmax.bf16 %v6713_v45, %v724_v46  ;;  %v351_v58 = vld [vmem:[%s6890_s22 + $0x3f0] sm:$0xff]  ;;  %v7752_v5 = vmin.bf16 %v6714_v51, %v915_v53 }
  0xfe   : > { %v3726_v21 = vadd.f32 %v5638_v11, %v7641_v33  ;;  %v5703_v22 = vpop.f32.mrf.mxu1  ;;  %4408 = vmatmul.mubr.bf16.gmra.mxu1 %v5268_v59  ;;  %4318 = vmatprep.mubr.bf16.mxu0 %v5291_v0  ;;  %v363_v59 = vld [vmem:[%s6890_s22 + $0x450] sm:$0xff]  ;;  %v543_v63 = vmul.bf16 1056980736, %v351_v58  ;;  %v352_v0 = vld [vmem:[%s6890_s22 + $0x3f8] sm:$0xff]  ;;  %v6580_v58 = vld [vmem:[%s8956_s1 + $0x408] sm:$0xff]  }
  0xff   : > { %v5640_v28 = vpop.f32.mrf.mxu0  ;;  %4415 = vmatprep.mubr.bf16.mxu1 %v5293_v6  ;;  %6134 = vmatpush3.bf16.msra.mxu0 %v6564_v60  ;;  %v555_v6 = vmul.bf16 1056980736, %v363_v59  ;;  %v7762_v12 = vmin.bf16 %v6714_v51, %v904_v57  ;;  %v7765_v13 = vmin.bf16 %v6714_v51, %v916_v47  ;;  %v544_v20 = vmul.bf16 1056980736, %v352_v0 }
 0x100   : > { %v7718_v34 = vadd.f32 %v5702_v16, %v3726_v21  ;;  %v5641_v35 = vadd.f32 %v5640_v28, %v5639_v17  ;;  %v5704_v36 = vpop.f32.mrf.mxu1  ;;  %6198 = vmatpush3.bf16.msra.mxu1 %v6566_v1  ;;  %6135 = vmatprep.subr.bf16.mxu0 %v6567_v4  ;;  %v364_v1 = vld [vmem:[%s6890_s22 + $0x458] sm:$0xff]  ;;  %v7749_v4 = vmin.bf16 %v6714_v51, %v903_v43  ;;  %v735_v14 = vadd.bf16 1056980736, %v543_v63 }
 0x101   : > { %v5705_v39 = vadd.f32 %v5704_v36, %v5703_v22  ;;  %v5642_v42 = vpop.f32.mrf.mxu0  ;;  %6199 = vmatprep.subr.bf16.mxu1 %v6569_v8  ;;  %v6576_v8 = vld [vmem:[%s8956_s1 + $0x410] sm:$0xff]   ;;  %v5314_v16 = vcombine.low %v7697_v18, %v7704_v23  ;;  %v5316_v17 = vcombine.low %v7707_v24, %v7716_v29  ;;  %v736_v31 = vadd.bf16 1056980736, %v544_v20  ;;  %v376_v43 = vld [vmem:[%s6890_s22 + $0x4b8] sm:$0xff] }
 0x102   : > { %v3731_v50 = vadd.f32 %v5641_v35, %v7641_v33  ;;  %v5706_v52 = vpop.f32.mrf.mxu1  ;;  %v927_v26 = vmax.bf16 %v6713_v45, %v735_v14  ;;  %v6577_v18 = vld [vmem:[%s8956_s1 + $0x4d0] sm:$0xff]   ;;  %v5339_v29 = vcombine.high %v7749_v4, %v7752_v5  ;;  %v5341_v36 = vcombine.high %v7762_v12, %v7765_v13  ;;  %v6581_v14 = vld [vmem:[%s8956_s1 + $0x4c8] sm:$0xff]  }
 0x103   : > { %v5643_v55 = vpop.f32.mrf.mxu0  ;;  %6136 = vmatpush3.bf16.msra.mxu0 %v6568_v19  ;;  %v747_v19 = vadd.bf16 1056980736, %v555_v6  ;;  %v6578_v23 = vld [vmem:[%s8956_s1 + $0x490] sm:$0xff]   ;;  %v568_v57 = vmul.bf16 1056980736, %v376_v43  ;;  %v6584_v43 = vld [vmem:[%s8956_s1 + $0x400] sm:$0xff]  }
 0x104   : > { %v7744_v60 = vadd.f32 %v5705_v39, %v3731_v50  ;;  %v5644_v61 = vadd.f32 %v5643_v55, %v5642_v42  ;;  %v5707_v62 = vpop.f32.mrf.mxu1  ;;  %6200 = vmatpush3.bf16.msra.mxu1 %v6570_v25  ;;  %6137 = vmatprep.subr.bf16.mxu0 %v6571_v27  ;;  %v556_v27 = vmul.bf16 1056980736, %v364_v1  ;;  %v375_v39 = vld [vmem:[%s6890_s22 + $0x4b0] sm:$0xff] }
 0x105   : > { %v5708_v2 = vadd.f32 %v5707_v62, %v5706_v52  ;;  %v5645_v3 = vpop.f32.mrf.mxu0  ;;  %4319 = vmatmul.mubr.bf16.gmra.mxu0 %v5290_v37  ;;  %6201 = vmatprep.subr.bf16.mxu1 %v6573_v54  ;;  %v939_v30 = vmax.bf16 %v6713_v45, %v747_v19  ;;  %v7787_v37 = vmin.bf16 %v6714_v51, %v927_v26  ;;  %v387_v42 = vld [vmem:[%s6890_s22 + $0x510] sm:$0xff]  ;;  %v567_v50 = vmul.bf16 1056980736, %v375_v39 }
 0x106   : > { %v3734_v9 = vadd.f32 %v5644_v61, %v7641_v33  ;;  %v5709_v11 = vpop.f32.mrf.mxu1  ;;  %4416 = vmatmul.mubr.bf16.gmra.mxu1 %v5292_v40  ;;  %4326 = vmatprep.mubr.bf16.mxu0 %v5315_v41  ;;  %v748_v38 = vadd.bf16 1056980736, %v556_v27  ;;  %v579_v52 = vmul.bf16 1056980736, %v387_v42  ;;  %v388_v40 = vld [vmem:[%s6890_s22 + $0x518] sm:$0xff]  ;;  %v6579_v41 = vld [vmem:[%s8956_s1 + $0x448] sm:$0xff]   ;;  %v5338_v62 = vcombine.low %v7749_v4, %v7752_v5 }
 0x107   : > { %v5646_v15 = vpop.f32.mrf.mxu0  ;;  %4423 = vmatprep.mubr.bf16.mxu1 %v5317_v56  ;;  %6138 = vmatpush3.bf16.msra.mxu0 %v6572_v49  ;;  %v7793_v46 = vmin.bf16 %v6714_v51, %v939_v30  ;;  %v928_v49 = vmax.bf16 %v6713_v45, %v736_v31  ;;  %v759_v63 = vadd.bf16 1056980736, %v567_v50  ;;  %v580_v6 = vmul.bf16 1056980736, %v388_v40  ;;  %v6583_v42 = vld [vmem:[%s8956_s1 + $0x440] sm:$0xff]  }
 0x108   : > { %v7771_v21 = vadd.f32 %v5708_v2, %v3734_v9  ;;  %v5647_v22 = vadd.f32 %v5646_v15, %v5645_v3  ;;  %v5710_v25 = vpop.f32.mrf.mxu1  ;;  %6202 = vmatpush3.bf16.msra.mxu1 %v6574_v48  ;;  %6139 = vmatprep.subr.bf16.mxu0 %v6575_v7  ;;  %v940_v56 = vmax.bf16 %v6713_v45, %v748_v38  ;;  %v771_v0 = vadd.bf16 1056980736, %v579_v52 }
 0x109   : > { %v5711_v24 = vadd.f32 %v5710_v25, %v5709_v11  ;;  %v5648_v28 = vpop.f32.mrf.mxu0  ;;  %6203 = vmatprep.subr.bf16.mxu1 %v6577_v18  ;;  %v7810_v2 = vmin.bf16 %v6714_v51, %v928_v49  ;;  %v760_v7 = vadd.bf16 1056980736, %v568_v57  ;;  %v5340_v4 = vcombine.low %v7762_v12, %v7765_v13  ;;  %v6582_v12 = vld [vmem:[%s8956_s1 + $0x488] sm:$0xff]   ;;  %v399_v13 = vld [vmem:[%s6890_s22 + $0x570] sm:$0xff] }
 0x10a   : > { %v3739_v32 = vadd.f32 %v5647_v22, %v7641_v33  ;;  %v5712_v35 = vpop.f32.mrf.mxu1  ;;  %v7813_v3 = vmin.bf16 %v6714_v51, %v940_v56  ;;  %v5363_v5 = vcombine.high %v7787_v37, %v7793_v46  ;;  %v963_v19 = vmax.bf16 %v6713_v45, %v771_v0  ;;  %v411_v22 = vld [vmem:[%s6890_s22 + $0x5d0] sm:$0xff] }
 0x10b   : > { %v5649_v44 = vpop.f32.mrf.mxu0  ;;  %6140 = vmatpush3.bf16.msra.mxu0 %v6576_v8  ;;  %v772_v20 = vadd.bf16 1056980736, %v580_v6  ;;  %v952_v27 = vmax.bf16 %v6713_v45, %v760_v7  ;;  %v591_v18 = vmul.bf16 1056980736, %v399_v13 }
 0x10c   : > { %v7800_v53 = vadd.f32 %v5711_v24, %v3739_v32  ;;  %v5650_v54 = vadd.f32 %v5649_v44, %v5648_v28  ;;  %v5713_v55 = vpop.f32.mrf.mxu1  ;;  %6204 = vmatpush3.bf16.msra.mxu1 %v6578_v23  ;;  %6141 = vmatprep.subr.bf16.mxu0 %v6579_v41  ;;  %v603_v23 = vmul.bf16 1056980736, %v411_v22  ;;  %v400_v24 = vld [vmem:[%s6890_s22 + $0x578] sm:$0xff]  ;;  %v5365_v30 = vcombine.high %v7810_v2, %v7813_v3 }
 0x10d   : > { %v5714_v47 = vadd.f32 %v5713_v55, %v5712_v35  ;;  %v5651_v48 = vpop.f32.mrf.mxu0  ;;  %4327 = vmatmul.mubr.bf16.gmra.mxu0 %v5314_v16  ;;  %6205 = vmatprep.subr.bf16.mxu1 %v6581_v14  ;;  %v412_v28 = vld [vmem:[%s6890_s22 + $0x5d8] sm:$0xff]  ;;  %v964_v31 = vmax.bf16 %v6713_v45, %v772_v20  ;;  %v592_v32 = vmul.bf16 1056980736, %v400_v24  ;;  %v783_v39 = vadd.bf16 1056980736, %v591_v18 }
 0x10e   : > { %v3742_v59 = vadd.f32 %v5650_v54, %v7641_v33  ;;  %v5715_v61 = vpop.f32.mrf.mxu1  ;;  %4424 = vmatmul.mubr.bf16.gmra.mxu1 %v5316_v17  ;;  %4334 = vmatprep.mubr.bf16.mxu0 %v5339_v29  ;;  %v951_v17 = vmax.bf16 %v6713_v45, %v759_v63  ;;  %v7850_v52 = vmin.bf16 %v6714_v51, %v963_v19  ;;  %v795_v56 = vadd.bf16 1056980736, %v603_v23 }
 0x10f   : > { %v5652_v1 = vpop.f32.mrf.mxu0  ;;  %4431 = vmatprep.mubr.bf16.mxu1 %v5341_v36  ;;  %6142 = vmatpush3.bf16.msra.mxu0 %v6580_v58  ;;  %v7853_v40 = vmin.bf16 %v6714_v51, %v952_v27  ;;  %v7857_v55 = vmin.bf16 %v6714_v51, %v964_v31  ;;  %v604_v57 = vmul.bf16 1056980736, %v412_v28  ;;  %v5364_v6 = vcombine.low %v7810_v2, %v7813_v3 }
 0x110   : > { %v7815_v8 = vadd.f32 %v5714_v47, %v3742_v59  ;;  %v5653_v9 = vadd.f32 %v5652_v1, %v5651_v48  ;;  %v5716_v11 = vpop.f32.mrf.mxu1  ;;  %6206 = vmatpush3.bf16.msra.mxu1 %v6582_v12  ;;  %v7847_v50 = vmin.bf16 %v6714_v51, %v951_v17  ;;  %v6585_v47 = vld [vmem:[%s8956_s1 + $0x4c0] sm:$0xff]   ;;  %v5362_v59 = vcombine.low %v7787_v37, %v7793_v46  ;;  %v6587_v17 = vld [vmem:[%s8956_s1 + $0x578] sm:$0xff]  }
 0x111   : > { %v5717_v15 = vadd.f32 %v5716_v11, %v5715_v61  ;;  %v5654_v16 = vpop.f32.mrf.mxu0  ;;  %v6586_v48 = vld [vmem:[%s8956_s1 + $0x480] sm:$0xff]   ;;  %v975_v61 = vmax.bf16 %v6713_v45, %v783_v39  ;;  %6143 = vmatprep.subr.bf16.mxu0 %v6583_v42  ;;  %v987_v7 = vmax.bf16 %v6713_v45, %v795_v56  ;;  %v796_v14 = vadd.bf16 1056980736, %v604_v57  ;;  %6207 = vmatprep.subr.bf16.mxu1 %v6585_v47 }
 0x112   : > { %v3747_v25 = vadd.f32 %v5653_v9, %v7641_v33  ;;  %v5718_v26 = vpop.f32.mrf.mxu1  ;;  %v233_v9 = vld [vmem:[%s6890_s22 + $0x40] sm:$0xff]  ;;  %v5387_v46 = vcombine.high %v7847_v50, %v7850_v52  ;;  %v5389_v19 = vcombine.high %v7853_v40, %v7857_v55 }
 0x113   : > { %v5655_v29 = vpop.f32.mrf.mxu0  ;;  %6144 = vmatpush3.bf16.msra.mxu0 %v6584_v43  ;;  %v245_v11 = vld [vmem:[%s6890_s22 + $0xa0] sm:$0xff]  ;;  %v7886_v22 = vmin.bf16 %v6714_v51, %v975_v61  ;;  %v7893_v28 = vmin.bf16 %v6714_v51, %v987_v7  ;;  %v6589_v43 = vld [vmem:[%s8956_s1 + $0x5f8] sm:$0xff]  }
 0x114   : > { %v7838_v35 = vadd.f32 %v5717_v15, %v3747_v25  ;;  %v5656_v36 = vadd.f32 %v5655_v29, %v5654_v16  ;;  %v5719_v38 = vpop.f32.mrf.mxu1  ;;  %v425_v15 = vmul.bf16 1056980736, %v233_v9  ;;  %v246_v16 = vld [vmem:[%s6890_s22 + $0xa8] sm:$0xff]  ;;  %6208 = vmatpush3.bf16.msra.mxu1 %v6586_v48  ;;  %v437_v20 = vmul.bf16 1056980736, %v245_v11  ;;  %6257 = vmatprep.subr.bf16.mxu0 %v6587_v17  ;;  %v257_v57 = vld [vmem:[%s6890_s22 + $0x100] sm:$0xff] }
 0x115   : > { %v5720_v44 = vadd.f32 %v5719_v38, %v5718_v26  ;;  %v5657_v49 = vpop.f32.mrf.mxu0  ;;  %4335 = vmatmul.mubr.bf16.gmra.mxu0 %v5338_v62  ;;  %v784_v62 = vadd.bf16 1056980736, %v592_v32  ;;  %v988_v26 = vmax.bf16 %v6713_v45, %v796_v14  ;;  %v438_v27 = vmul.bf16 1056980736, %v246_v16  ;;  %6321 = vmatprep.subr.bf16.mxu1 %v6589_v43 }
 0x116   : > { %v3750_v41 = vadd.f32 %v5656_v36, %v7641_v33  ;;  %v5721_v54 = vpop.f32.mrf.mxu1  ;;  %4432 = vmatmul.mubr.bf16.gmra.mxu1 %v5340_v4  ;;  %4342 = vmatprep.mubr.bf16.mxu0 %v5363_v5  ;;  %v234_v4 = vld [vmem:[%s6890_s22 + $0x48] sm:$0xff]  ;;  %v617_v29 = vadd.bf16 1056980736, %v425_v15  ;;  %v629_v32 = vadd.bf16 1056980736, %v437_v20 }
 0x117   : > { %v5658_v58 = vpop.f32.mrf.mxu0  ;;  %4439 = vmatprep.mubr.bf16.mxu1 %v5365_v30  ;;  %v426_v12 = vmul.bf16 1056980736, %v234_v4  ;;  %v976_v25 = vmax.bf16 %v6713_v45, %v784_v62  ;;  %v630_v42 = vadd.bf16 1056980736, %v438_v27  ;;  %v7907_v56 = vmin.bf16 %v6714_v51, %v988_v26  ;;  %v270_v4 = vld [vmem:[%s6890_s22 + $0x168] sm:$0xff] }
 0x118   : > { %v7868_v63 = vadd.f32 %v5720_v44, %v3750_v41  ;;  %v5659_v0 = vadd.f32 %v5658_v58, %v5657_v49  ;;  %v5722_v1 = vpop.f32.mrf.mxu1  ;;  %v5386_v49 = vcombine.low %v7847_v50, %v7850_v52  ;;  %v5388_v41 = vcombine.low %v7853_v40, %v7857_v55  ;;  %v269_v52 = vld [vmem:[%s6890_s22 + $0x160] sm:$0xff]  ;;  %v258_v40 = vld [vmem:[%s6890_s22 + $0x108] sm:$0xff] }
 0x119   : > { %v5723_v5 = vadd.f32 %v5722_v1, %v5721_v54  ;;  %v5660_v37 = vpop.f32.mrf.mxu0  ;;  %v618_v39 = vadd.bf16 1056980736, %v426_v12  ;;  %v7904_v54 = vmin.bf16 %v6714_v51, %v976_v25  ;;  %v809_v50 = vmax.bf16 %v6713_v45, %v617_v29  ;;  %v281_v29 = vld [vmem:[%s6890_s22 + $0x1c0] sm:$0xff] }
 0x11a   : > { %v3755_v2 = vadd.f32 %v5659_v0, %v7641_v33  ;;  %v5724_v3 = vpop.f32.mrf.mxu1  ;;  %v821_v62 = vmax.bf16 %v6713_v45, %v629_v32  ;;  %v449_v0 = vmul.bf16 1056980736, %v257_v57  ;;  %v461_v1 = vmul.bf16 1056980736, %v269_v52 }
 0x11b   : > { %v5661_v13 = vpop.f32.mrf.mxu0  ;;  %v810_v9 = vmax.bf16 %v6713_v45, %v618_v39  ;;  %v822_v11 = vmax.bf16 %v6713_v45, %v630_v42  ;;  %v5410_v57 = vcombine.low %v7886_v22, %v7893_v28 }
 0x11c   : > { %v7890_v18 = vadd.f32 %v5723_v5, %v3755_v2  ;;  %v5662_v23 = vadd.f32 %v5661_v13, %v5660_v37  ;;  %v5725_v24 = vpop.f32.mrf.mxu1  ;;  %v450_v5 = vmul.bf16 1056980736, %v258_v40  ;;  %v641_v14 = vadd.bf16 1056980736, %v449_v0 }
 0x11d   : > { %v5726_v30 = vadd.f32 %v5725_v24, %v5724_v3  ;;  %v5663_v31 = vpop.f32.mrf.mxu0  ;;  %4343 = vmatmul.mubr.bf16.gmra.mxu0 %v5362_v59  ;;  %v5411_v59 = vcombine.high %v7886_v22, %v7893_v28  ;;  %v7927_v2 = vmin.bf16 %v6714_v51, %v809_v50  ;;  %v7930_v20 = vmin.bf16 %v6714_v51, %v821_v62 }
 0x11e   : > { %v3758_v36 = vadd.f32 %v5662_v23, %v7641_v33  ;;  %v5727_v38 = vpop.f32.mrf.mxu1  ;;  %4440 = vmatmul.mubr.bf16.gmra.mxu1 %v5364_v6  ;;  %4350 = vmatprep.mubr.bf16.mxu0 %v5387_v46  ;;  %v5413_v46 = vcombine.high %v7904_v54, %v7907_v56  ;;  %v653_v12 = vadd.bf16 1056980736, %v461_v1  ;;  %v462_v13 = vmul.bf16 1056980736, %v270_v4 }
 0x11f   : > { %v5664_v44 = vpop.f32.mrf.mxu0  ;;  %4447 = vmatprep.mubr.bf16.mxu1 %v5389_v19  ;;  %v7934_v27 = vmin.bf16 %v6714_v51, %v810_v9  ;;  %v7937_v23 = vmin.bf16 %v6714_v51, %v822_v11  ;;  %v642_v24 = vadd.bf16 1056980736, %v450_v5  ;;  %v5412_v50 = vcombine.low %v7904_v54, %v7907_v56  ;;  %v305_v5 = vld [vmem:[%s6890_s22 + $0x280] sm:$0xff] }
 0x120   : > { %v7910_v47 = vadd.f32 %v5726_v30, %v3758_v36  ;;  %v5665_v48 = vadd.f32 %v5664_v44, %v5663_v31  ;;  %v5728_v58 = vpop.f32.mrf.mxu1  ;;  %v293_v30 = vld [vmem:[%s6890_s22 + $0x220] sm:$0xff]  ;;  %v654_v32 = vadd.bf16 1056980736, %v462_v13  ;;  %v473_v36 = vmul.bf16 1056980736, %v281_v29  ;;  %v294_v44 = vld [vmem:[%s6890_s22 + $0x228] sm:$0xff] }
 0x121   : > { %v5729_v55 = vadd.f32 %v5728_v58, %v5727_v38  ;;  %v5666_v61 = vpop.f32.mrf.mxu0  ;;  %v282_v38 = vld [vmem:[%s6890_s22 + $0x1c8] sm:$0xff]  ;;  %v5247_v52 = vcombine.high %v7927_v2, %v7930_v20  ;;  %v5249_v40 = vcombine.high %v7934_v27, %v7937_v23  ;;  %v845_v62 = vmax.bf16 %v6713_v45, %v653_v12 }
 0x122   : > { %v3763_v6 = vadd.f32 %v5665_v48, %v7641_v33  ;;  %v5730_v7 = vpop.f32.mrf.mxu1  ;;  %v485_v48 = vmul.bf16 1056980736, %v293_v30  ;;  %v474_v22 = vmul.bf16 1056980736, %v282_v38  ;;  %v486_v28 = vmul.bf16 1056980736, %v294_v44 }
 0x123   : > { %v5667_v37 = vpop.f32.mrf.mxu0  ;;  %v834_v54 = vmax.bf16 %v6713_v45, %v642_v24  ;;  %v846_v56 = vmax.bf16 %v6713_v45, %v654_v32  ;;  %v665_v11 = vadd.bf16 1056980736, %v473_v36  ;;  %v7970_v13 = vmin.bf16 %v6714_v51, %v845_v62  ;;  %v318_v24 = vld [vmem:[%s6890_s22 + $0x2e8] sm:$0xff] }
 0x124   : > { %v7924_v15 = vadd.f32 %v5729_v55, %v3763_v6  ;;  %v5668_v16 = vadd.f32 %v5667_v37, %v5666_v61  ;;  %v5731_v17 = vpop.f32.mrf.mxu1  ;;  %v833_v61 = vmax.bf16 %v6713_v45, %v641_v14  ;;  %v677_v4 = vadd.bf16 1056980736, %v485_v48  ;;  %v6591_v48 = vld [vmem:[%s8956_s1 + $0x570] sm:$0xff]  }
 0x125   : > { %v5732_v3 = vadd.f32 %v5731_v17, %v5730_v7  ;;  %v5669_v19 = vpop.f32.mrf.mxu0  ;;  %4351 = vmatmul.mubr.bf16.gmra.mxu0 %v5386_v49  ;;  %v5246_v14 = vcombine.low %v7927_v2, %v7930_v20  ;;  %v317_v17 = vld [vmem:[%s6890_s22 + $0x2e0] sm:$0xff]  ;;  %v6588_v2 = vld [vmem:[%s8956_s1 + $0x538] sm:$0xff]   ;;  %v7979_v20 = vmin.bf16 %v6714_v51, %v834_v54  ;;  %v7982_v32 = vmin.bf16 %v6714_v51, %v846_v56 }
 0x126   : > { %v3766_v25 = vadd.f32 %v5668_v16, %v7641_v33  ;;  %v5733_v26 = vpop.f32.mrf.mxu1  ;;  %4448 = vmatmul.mubr.bf16.gmra.mxu1 %v5388_v41  ;;  %4358 = vmatprep.mubr.bf16.mxu0 %v5411_v59  ;;  %v666_v16 = vadd.bf16 1056980736, %v474_v22  ;;  %v7967_v12 = vmin.bf16 %v6714_v51, %v833_v61  ;;  %v329_v54 = vld [vmem:[%s6890_s22 + $0x340] sm:$0xff] }
 0x127   : > { %v5670_v31 = vpop.f32.mrf.mxu0  ;;  %4455 = vmatprep.mubr.bf16.mxu1 %v5413_v46 }
 0x128   : > { %v7942_v39 = vadd.f32 %v5732_v3, %v3766_v25  ;;  %v5671_v42 = vadd.f32 %v5670_v31, %v5669_v19  ;;  %v5734_v43 = vpop.f32.mrf.mxu1  ;;  %v306_v3 = vld [vmem:[%s6890_s22 + $0x288] sm:$0xff]  ;;  %v678_v25 = vadd.bf16 1056980736, %v486_v28  ;;  %v5273_v28 = vcombine.high %v7979_v20, %v7982_v32 }
 0x129   : > { %v5735_v49 = vadd.f32 %v5734_v43, %v5733_v26  ;;  %v5672_v41 = vpop.f32.mrf.mxu0  ;;  %v497_v26 = vmul.bf16 1056980736, %v305_v5  ;;  %v509_v43 = vmul.bf16 1056980736, %v317_v17  ;;  %v498_v44 = vmul.bf16 1056980736, %v306_v3 }
 0x12a   : > { %v3771_v58 = vadd.f32 %v5671_v42, %v7641_v33  ;;  %v5736_v59 = vpop.f32.mrf.mxu1  ;;  %v5248_v42 = vcombine.low %v7934_v27, %v7937_v23  ;;  %v5271_v23 = vcombine.high %v7967_v12, %v7970_v13  ;;  %v341_v5 = vld [vmem:[%s6890_s22 + $0x3a0] sm:$0xff]  ;;  %v6594_v17 = vld [vmem:[%s8956_s1 + $0x5b0] sm:$0xff]  }
 0x12b   : > { %v5673_v55 = vpop.f32.mrf.mxu0 }
 0x12c   : > { %v7956_v0 = vadd.f32 %v5735_v49, %v3771_v58  ;;  %v5674_v1 = vadd.f32 %v5673_v55, %v5672_v41  ;;  %v5737_v6 = vpop.f32.mrf.mxu1  ;;  %v857_v58 = vmax.bf16 %v6713_v45, %v665_v11  ;;  %v689_v55 = vadd.bf16 1056980736, %v497_v26  ;;  %v6597_v26 = vld [vmem:[%s8956_s1 + $0x5e8] sm:$0xff]  }
 0x12d   : > { %v5738_v7 = vadd.f32 %v5737_v6, %v5736_v59  ;;  %v5675_v9 = vpop.f32.mrf.mxu0  ;;  %4359 = vmatmul.mubr.bf16.gmra.mxu0 %v5410_v57  ;;  %v6590_v57 = vld [vmem:[%s8956_s1 + $0x5b8] sm:$0xff]   ;;  %v869_v59 = vmax.bf16 %v6713_v45, %v677_v4  ;;  %v6593_v6 = vld [vmem:[%s8956_s1 + $0x5f0] sm:$0xff]   ;;  %v701_v11 = vadd.bf16 1056980736, %v509_v43  ;;  %v690_v4 = vadd.bf16 1056980736, %v498_v44 }
 0x12e   : > { %v3774_v37 = vadd.f32 %v5674_v1, %v7641_v33  ;;  %v5739_v46 = vpop.f32.mrf.mxu1  ;;  %4456 = vmatmul.mubr.bf16.gmra.mxu1 %v5412_v50  ;;  %4496 = vmatprep.mubr.bf16.mxu0 %v5247_v52  ;;  %v510_v50 = vmul.bf16 1056980736, %v318_v24  ;;  %v858_v52 = vmax.bf16 %v6713_v45, %v666_v16  ;;  %v6592_v1 = vld [vmem:[%s8956_s1 + $0x530] sm:$0xff]   ;;  %v8019_v3 = vmin.bf16 %v6714_v51, %v857_v58 }
 0x12f   : > { %v5676_v19 = vpop.f32.mrf.mxu0  ;;  %4593 = vmatprep.mubr.bf16.mxu1 %v5249_v40  ;;  %v870_v40 = vmax.bf16 %v6713_v45, %v678_v25  ;;  %v881_v24 = vmax.bf16 %v6713_v45, %v689_v55  ;;  %v882_v58 = vmax.bf16 %v6713_v45, %v690_v4  ;;  %v6599_v55 = vld [vmem:[%s8956_s1 + $0x560] sm:$0xff]  }
 0x130   : > { %v7973_v29 = vadd.f32 %v5738_v7, %v3774_v37  ;;  %v5677_v30 = vadd.f32 %v5676_v19, %v5675_v9  ;;  %v5740_v31 = vpop.f32.mrf.mxu1  ;;  %v5270_v9 = vcombine.low %v7967_v12, %v7970_v13  ;;  %v330_v37 = vld [vmem:[%s6890_s22 + $0x348] sm:$0xff]  ;;  %v702_v12 = vadd.bf16 1056980736, %v510_v50 }
 0x131   : > { %v5741_v36 = vadd.f32 %v5740_v31, %v5739_v46  ;;  %v5678_v38 = vpop.f32.mrf.mxu0  ;;  %v6595_v19 = vld [vmem:[%s8956_s1 + $0x568] sm:$0xff]   ;;  %v8028_v13 = vmin.bf16 %v6714_v51, %v858_v52  ;;  %v8031_v25 = vmin.bf16 %v6714_v51, %v870_v40  ;;  %v522_v43 = vmul.bf16 1056980736, %v330_v37  ;;  %v6600_v37 = vld [vmem:[%s8956_s1 + $0x520] sm:$0xff]  }
 0x132   : > { %v3779_v49 = vadd.f32 %v5677_v30, %v7641_v33  ;;  %v5742_v41 = vpop.f32.mrf.mxu1  ;;  %v521_v30 = vmul.bf16 1056980736, %v329_v54  ;;  %v342_v31 = vld [vmem:[%s6890_s22 + $0x3a8] sm:$0xff]  ;;  %v8057_v40 = vmin.bf16 %v6714_v51, %v881_v24  ;;  %v353_v54 = vld [vmem:[%s6890_s22 + $0x400] sm:$0xff] }
 0x133   : > { %v5679_v27 = vpop.f32.mrf.mxu0 }
 0x134   : > { %v7999_v61 = vadd.f32 %v5741_v36, %v3779_v49  ;;  %v5680_v62 = vadd.f32 %v5679_v27, %v5678_v38  ;;  %v5743_v22 = vpop.f32.mrf.mxu1 }
 0x135   : > { %v5744_v56 = vadd.f32 %v5743_v22, %v5742_v41  ;;  %v5761_v7 = vpop.f32.mrf.mxu0  ;;  %4497 = vmatmul.mubr.bf16.vlgmr.msra.gmra.mxu0 %v5246_v14  ;;  %v8022_v14 = vmin.bf16 %v6714_v51, %v869_v59  ;;  %v5272_v41 = vcombine.low %v7979_v20, %v7982_v32  ;;  %v6598_v20 = vld [vmem:[%s8956_s1 + $0x5a8] sm:$0xff]   ;;  %v894_v32 = vmax.bf16 %v6713_v45, %v702_v12 }
 0x136   : > { %v3782_v46 = vadd.f32 %v5680_v62, %v7641_v33  ;;  %v5825_v16 = vpop.f32.mrf.mxu1  ;;  %4594 = vmatmul.mubr.bf16.vlgmr.msra.gmra.mxu1 %v5248_v42  ;;  %6258 = vmatpush3.bf16.msra.mxu0 %v6588_v2  ;;  %v533_v42 = vmul.bf16 1056980736, %v341_v5  ;;  %v8070_v5 = vmin.bf16 %v6714_v51, %v882_v58 }
 0x137   : > { %v5762_v33 = vpop.f32.mrf.mxu0  ;;  %6322 = vmatpush3.bf16.msra.mxu1 %v6590_v57  ;;  %4504 = vmatprep.mubr.bf16.mxu0 %v5271_v23  ;;  %v893_v57 = vmax.bf16 %v6713_v45, %v701_v11  ;;  %v5295_v27 = vcombine.high %v8019_v3, %v8022_v14  ;;  %v534_v23 = vmul.bf16 1056980736, %v342_v31  ;;  %v8081_v12 = vmin.bf16 %v6714_v51, %v894_v32  ;;  %v6604_v32 = vld [vmem:[%s8956_s1 + $0x518] sm:$0xff]  }
 0x138   : > { %v8038_v2 = vadd.f32 %v5744_v56, %v3782_v46  ;;  %v5763_v36 = vadd.f32 %v5762_v33, %v5761_v7  ;;  %v5826_v38 = vpop.f32.mrf.mxu1  ;;  %4601 = vmatprep.mubr.bf16.mxu1 %v5273_v28  ;;  %6259 = vmatprep.subr.bf16.mxu0 %v6591_v48  ;;  %v6596_v48 = vld [vmem:[%s8956_s1 + $0x528] sm:$0xff]   ;;  %v365_v56 = vld [vmem:[%s6890_s22 + $0x460] sm:$0xff] }
 0x139   : > { %v5827_v44 = vadd.f32 %v5826_v38, %v5825_v16  ;;  %v5764_v49 = vpop.f32.mrf.mxu0  ;;  %6323 = vmatprep.subr.bf16.mxu1 %v6593_v6  ;;  %v725_v6 = vadd.bf16 1056980736, %v533_v42  ;;  %v8067_v4 = vmin.bf16 %v6714_v51, %v893_v57  ;;  %v6601_v46 = vld [vmem:[%s8956_s1 + $0x5e0] sm:$0xff]   ;;  %v714_v16 = vadd.bf16 1056980736, %v522_v43 }
 0x13a   : > { %v3917_v59 = vadd.f32 %v5763_v36, %v7691_v10  ;;  %v5828_v50 = vpop.f32.mrf.mxu1  ;;  %6260 = vmatpush3.bf16.msra.mxu0 %v6592_v1  ;;  %v5297_v10 = vcombine.high %v8028_v13, %v8031_v25  ;;  %v713_v1 = vadd.bf16 1056980736, %v521_v30  ;;  %v726_v33 = vadd.bf16 1056980736, %v534_v23  ;;  %v6602_v30 = vld [vmem:[%s8956_s1 + $0x5a0] sm:$0xff]   ;;  %v366_v36 = vld [vmem:[%s6890_s22 + $0x468] sm:$0xff] }
 0x13b   : > { %v5765_v52 = vpop.f32.mrf.mxu0  ;;  %6324 = vmatpush3.bf16.msra.mxu1 %v6594_v17  ;;  %6261 = vmatprep.subr.bf16.mxu0 %v6595_v19  ;;  %v354_v17 = vld [vmem:[%s6890_s22 + $0x408] sm:$0xff]  ;;  %v557_v31 = vmul.bf16 1056980736, %v365_v56  ;;  %v5294_v43 = vcombine.low %v8019_v3, %v8022_v14  ;;  %v5319_v3 = vcombine.high %v8057_v40, %v8067_v4  ;;  %v558_v23 = vmul.bf16 1056980736, %v366_v36 }
 0x13c   : > { %v8062_v62 = vadd.f32 %v5827_v44, %v3917_v59  ;;  %v5766_v22 = vadd.f32 %v5765_v52, %v5764_v49  ;;  %v5829_v28 = vpop.f32.mrf.mxu1  ;;  %6325 = vmatprep.subr.bf16.mxu1 %v6597_v26  ;;  %v545_v26 = vmul.bf16 1056980736, %v353_v54  ;;  %v6603_v44 = vld [vmem:[%s8956_s1 + $0x558] sm:$0xff]   ;;  %v5296_v59 = vcombine.low %v8028_v13, %v8031_v25  ;;  %v377_v13 = vld [vmem:[%s6890_s22 + $0x4c0] sm:$0xff] }
 0x13d   : > { %v5830_v7 = vadd.f32 %v5829_v28, %v5828_v50  ;;  %v5767_v11 = vpop.f32.mrf.mxu0  ;;  %4505 = vmatmul.mubr.bf16.gmra.mxu0 %v5270_v9  ;;  %v6605_v49 = vld [vmem:[%s8956_s1 + $0x5d8] sm:$0xff]   ;;  %v905_v14 = vmax.bf16 %v6713_v45, %v713_v1  ;;  %v906_v52 = vmax.bf16 %v6713_v45, %v714_v16  ;;  %v6607_v28 = vld [vmem:[%s8956_s1 + $0x550] sm:$0xff]   ;;  %v569_v16 = vmul.bf16 1056980736, %v377_v13 }
 0x13e   : > { %v3920_v19 = vadd.f32 %v5766_v22, %v7718_v34  ;;  %v5831_v9 = vpop.f32.mrf.mxu1  ;;  %4602 = vmatmul.mubr.bf16.gmra.mxu1 %v5272_v41  ;;  %4512 = vmatprep.mubr.bf16.mxu0 %v5295_v27  ;;  %v546_v41 = vmul.bf16 1056980736, %v354_v17  ;;  %v749_v22 = vadd.bf16 1056980736, %v557_v31  ;;  %v5318_v31 = vcombine.low %v8057_v40, %v8067_v4  ;;  %v6611_v40 = vld [vmem:[%s8956_s1 + $0x548] sm:$0xff]  }
 0x13f   : > { %v5768_v24 = vpop.f32.mrf.mxu0  ;;  %4609 = vmatprep.mubr.bf16.mxu1 %v5297_v10  ;;  %6262 = vmatpush3.bf16.msra.mxu0 %v6596_v48  ;;  %v5321_v48 = vcombine.high %v8070_v5, %v8081_v12  ;;  %v918_v10 = vmax.bf16 %v6713_v45, %v726_v33  ;;  %v8140_v36 = vmin.bf16 %v6714_v51, %v906_v52 }
 0x140   : > { %v8087_v38 = vadd.f32 %v5830_v7, %v3920_v19  ;;  %v5769_v34 = vadd.f32 %v5768_v24, %v5767_v11  ;;  %v5832_v42 = vpop.f32.mrf.mxu1  ;;  %6326 = vmatpush3.bf16.msra.mxu1 %v6598_v20  ;;  %6263 = vmatprep.subr.bf16.mxu0 %v6599_v55  ;;  %v917_v20 = vmax.bf16 %v6713_v45, %v725_v6  ;;  %v737_v55 = vadd.bf16 1056980736, %v545_v26  ;;  %v6609_v7 = vld [vmem:[%s8956_s1 + $0x5d0] sm:$0xff]   ;;  %v389_v11 = vld [vmem:[%s6890_s22 + $0x520] sm:$0xff] }
 0x141   : > { %v5833_v57 = vadd.f32 %v5832_v42, %v5831_v9  ;;  %v5770_v58 = vpop.f32.mrf.mxu0  ;;  %6327 = vmatprep.subr.bf16.mxu1 %v6601_v46  ;;  %v738_v56 = vadd.bf16 1056980736, %v546_v41  ;;  %v8126_v9 = vmin.bf16 %v6714_v51, %v905_v14  ;;  %v750_v26 = vadd.bf16 1056980736, %v558_v23  ;;  %v6608_v24 = vld [vmem:[%s8956_s1 + $0x510] sm:$0xff]   ;;  %v6613_v23 = vld [vmem:[%s8956_s1 + $0x5c8] sm:$0xff]  }
 0x142   : > { %v3925_v50 = vadd.f32 %v5769_v34, %v7744_v60  ;;  %v5834_v27 = vpop.f32.mrf.mxu1  ;;  %v6606_v60 = vld [vmem:[%s8956_s1 + $0x598] sm:$0xff]   ;;  %v8129_v33 = vmin.bf16 %v6714_v51, %v917_v20  ;;  %v8143_v34 = vmin.bf16 %v6714_v51, %v918_v10  ;;  %v581_v42 = vmul.bf16 1056980736, %v389_v11  ;;  %v6614_v10 = vld [vmem:[%s8956_s1 + $0x588] sm:$0xff]  }
 0x143   : > { %v5771_v25 = vpop.f32.mrf.mxu0  ;;  %6264 = vmatpush3.bf16.msra.mxu0 %v6600_v37  ;;  %v941_v14 = vmax.bf16 %v6713_v45, %v749_v22  ;;  %v942_v52 = vmax.bf16 %v6713_v45, %v750_v26  ;;  %v402_v26 = vld [vmem:[%s6890_s22 + $0x588] sm:$0xff] }
 0x144   : > { %v8118_v1 = vadd.f32 %v5833_v57, %v3925_v50  ;;  %v5772_v6 = vadd.f32 %v5771_v25, %v5770_v58  ;;  %v5835_v54 = vpop.f32.mrf.mxu1  ;;  %6328 = vmatpush3.bf16.msra.mxu1 %v6602_v30  ;;  %6265 = vmatprep.subr.bf16.mxu0 %v6603_v44  ;;  %v390_v44 = vld [vmem:[%s6890_s22 + $0x528] sm:$0xff]  ;;  %v5320_v58 = vcombine.low %v8070_v5, %v8081_v12  ;;  %v761_v50 = vadd.bf16 1056980736, %v569_v16 }
 0x145   : > { %v5836_v37 = vadd.f32 %v5835_v54, %v5834_v27  ;;  %v5773_v46 = vpop.f32.mrf.mxu0  ;;  %4513 = vmatmul.mubr.bf16.gmra.mxu0 %v5294_v43  ;;  %6329 = vmatprep.subr.bf16.mxu1 %v6605_v49  ;;  %v378_v43 = vld [vmem:[%s6890_s22 + $0x4c8] sm:$0xff]  ;;  %v5343_v5 = vcombine.high %v8126_v9, %v8129_v33  ;;  %v582_v20 = vmul.bf16 1056980736, %v390_v44  ;;  %v5345_v25 = vcombine.high %v8140_v36, %v8143_v34  ;;  %v6615_v54 = vld [vmem:[%s8956_s1 + $0x540] sm:$0xff]  }
 0x146   : > { %v3928_v17 = vadd.f32 %v5772_v6, %v7771_v21  ;;  %v5837_v19 = vpop.f32.mrf.mxu1  ;;  %4610 = vmatmul.mubr.bf16.gmra.mxu1 %v5296_v59  ;;  %4520 = vmatprep.mubr.bf16.mxu0 %v5319_v3  ;;  %v6610_v21 = vld [vmem:[%s8956_s1 + $0x590] sm:$0xff]   ;;  %v929_v3 = vmax.bf16 %v6713_v45, %v737_v55  ;;  %v570_v12 = vmul.bf16 1056980736, %v378_v43  ;;  %v401_v6 = vld [vmem:[%s6890_s22 + $0x580] sm:$0xff] }
 0x147   : > { %v5774_v30 = vpop.f32.mrf.mxu0  ;;  %4617 = vmatprep.mubr.bf16.mxu1 %v5321_v48  ;;  %6266 = vmatpush3.bf16.msra.mxu0 %v6604_v32  ;;  %v6612_v32 = vld [vmem:[%s8956_s1 + $0x508] sm:$0xff]   ;;  %v774_v43 = vadd.bf16 1056980736, %v582_v20  ;;  %v6617_v44 = vld [vmem:[%s8956_s1 + $0x5c0] sm:$0xff]  }
 0x148   : > { %v8147_v49 = vadd.f32 %v5836_v37, %v3928_v17  ;;  %v5775_v41 = vadd.f32 %v5774_v30, %v5773_v46  ;;  %v5838_v57 = vpop.f32.mrf.mxu1  ;;  %6330 = vmatpush3.bf16.msra.mxu1 %v6606_v60  ;;  %6267 = vmatprep.subr.bf16.mxu0 %v6607_v28  ;;  %v773_v28 = vadd.bf16 1056980736, %v581_v42  ;;  %v8179_v11 = vmin.bf16 %v6714_v51, %v929_v3 }
 0x149   : > { %v5839_v4 = vadd.f32 %v5838_v57, %v5837_v19  ;;  %v5776_v59 = vpop.f32.mrf.mxu0  ;;  %6331 = vmatprep.subr.bf16.mxu1 %v6609_v7  ;;  %v8182_v37 = vmin.bf16 %v6714_v51, %v941_v14  ;;  %v762_v17 = vadd.bf16 1056980736, %v570_v12  ;;  %v413_v19 = vld [vmem:[%s6890_s22 + $0x5e0] sm:$0xff]  ;;  %v5342_v30 = vcombine.low %v8126_v9, %v8129_v33 }
 0x14a   : > { %v3933_v27 = vadd.f32 %v5775_v41, %v7800_v53  ;;  %v5840_v48 = vpop.f32.mrf.mxu1  ;;  %v930_v53 = vmax.bf16 %v6713_v45, %v738_v56  ;;  %v8194_v42 = vmin.bf16 %v6714_v51, %v942_v52  ;;  %v5344_v33 = vcombine.low %v8140_v36, %v8143_v34 }
 0x14b   : > { %v5777_v13 = vpop.f32.mrf.mxu0  ;;  %6268 = vmatpush3.bf16.msra.mxu0 %v6608_v24  ;;  %v414_v24 = vld [vmem:[%s6890_s22 + $0x5e8] sm:$0xff]  ;;  %v953_v3 = vmax.bf16 %v6713_v45, %v761_v50  ;;  %v605_v14 = vmul.bf16 1056980736, %v413_v19  ;;  %v965_v36 = vmax.bf16 %v6713_v45, %v773_v28  ;;  %v594_v34 = vmul.bf16 1056980736, %v402_v26 }
 0x14c   : > { %v8172_v60 = vadd.f32 %v5839_v4, %v3933_v27  ;;  %v5778_v55 = vadd.f32 %v5777_v13, %v5776_v59  ;;  %v5841_v22 = vpop.f32.mrf.mxu1  ;;  %6332 = vmatpush3.bf16.msra.mxu1 %v6610_v21  ;;  %6269 = vmatprep.subr.bf16.mxu0 %v6611_v40  ;;  %v5367_v59 = vcombine.high %v8179_v11, %v8182_v37  ;;  %v6618_v27 = vld [vmem:[%s8956_s1 + $0x580] sm:$0xff]   ;;  %v606_v12 = vmul.bf16 1056980736, %v414_v24 }
 0x14d   : > { %v5842_v56 = vadd.f32 %v5841_v22, %v5840_v48  ;;  %v5779_v7 = vpop.f32.mrf.mxu0  ;;  %4521 = vmatmul.mubr.bf16.gmra.mxu0 %v5318_v31  ;;  %v8191_v31 = vmin.bf16 %v6714_v51, %v930_v53  ;;  %6333 = vmatprep.subr.bf16.mxu1 %v6613_v23  ;;  %v954_v50 = vmax.bf16 %v6713_v45, %v762_v17  ;;  %v797_v22 = vadd.bf16 1056980736, %v605_v14 }
 0x14e   : > { %v3936_v46 = vadd.f32 %v5778_v55, %v7815_v8  ;;  %v5843_v16 = vpop.f32.mrf.mxu1  ;;  %4618 = vmatmul.mubr.bf16.gmra.mxu1 %v5320_v58  ;;  %4528 = vmatprep.mubr.bf16.mxu0 %v5343_v5  ;;  %v6616_v8 = vld [vmem:[%s8956_s1 + $0x500] sm:$0xff]   ;;  %v593_v58 = vmul.bf16 1056980736, %v401_v6  ;;  %v966_v23 = vmax.bf16 %v6713_v45, %v774_v43  ;;  %v8221_v55 = vmin.bf16 %v6714_v51, %v953_v3 }
 0x14f   : > { %v5780_v21 = vpop.f32.mrf.mxu0  ;;  %4625 = vmatprep.mubr.bf16.mxu1 %v5345_v25  ;;  %6270 = vmatpush3.bf16.msra.mxu0 %v6612_v32  ;;  %v5369_v32 = vcombine.high %v8191_v31, %v8194_v42  ;;  %v5366_v19 = vcombine.low %v8179_v11, %v8182_v37  ;;  %v8232_v26 = vmin.bf16 %v6714_v51, %v954_v50 }
 0x150   : > { %v8202_v41 = vadd.f32 %v5842_v56, %v3936_v46  ;;  %v5781_v57 = vadd.f32 %v5780_v21, %v5779_v7  ;;  %v5844_v9 = vpop.f32.mrf.mxu1  ;;  %6334 = vmatpush3.bf16.msra.mxu1 %v6614_v10  ;;  %6271 = vmatprep.subr.bf16.mxu0 %v6615_v54  ;;  %v785_v53 = vadd.bf16 1056980736, %v593_v58  ;;  %v8225_v54 = vmin.bf16 %v6714_v51, %v965_v36  ;;  %v235_v46 = vld [vmem:[%s6890_s22 + $0x50] sm:$0xff] }
 0x151   : > { %v5845_v40 = vadd.f32 %v5844_v9, %v5843_v16  ;;  %v5782_v4 = vpop.f32.mrf.mxu0  ;;  %6335 = vmatprep.subr.bf16.mxu1 %v6617_v44  ;;  %v786_v56 = vadd.bf16 1056980736, %v594_v34  ;;  %v798_v7 = vadd.bf16 1056980736, %v606_v12  ;;  %v247_v16 = vld [vmem:[%s6890_s22 + $0xb0] sm:$0xff]  ;;  %v5368_v43 = vcombine.low %v8191_v31, %v8194_v42  ;;  %v236_v44 = vld [vmem:[%s6890_s22 + $0x58] sm:$0xff] }
 0x152   : > { %v3941_v48 = vadd.f32 %v5781_v57, %v7838_v35  ;;  %v5846_v5 = vpop.f32.mrf.mxu1  ;;  %v248_v57 = vld [vmem:[%s6890_s22 + $0xb8] sm:$0xff]  ;;  %v989_v11 = vmax.bf16 %v6713_v45, %v797_v22  ;;  %v427_v37 = vmul.bf16 1056980736, %v235_v46  ;;  %v439_v58 = vmul.bf16 1056980736, %v247_v16 }
 0x153   : > { %v5783_v20 = vpop.f32.mrf.mxu0  ;;  %6272 = vmatpush3.bf16.msra.mxu0 %v6616_v8  ;;  %v977_v8 = vmax.bf16 %v6713_v45, %v785_v53  ;;  %v978_v3 = vmax.bf16 %v6713_v45, %v786_v56  ;;  %v990_v31 = vmax.bf16 %v6713_v45, %v798_v7  ;;  %v271_v56 = vld [vmem:[%s6890_s22 + $0x170] sm:$0xff]  ;;  %v5390_v16 = vcombine.low %v8221_v55, %v8225_v54 }
 0x154   : > { %v8218_v13 = vadd.f32 %v5845_v40, %v3941_v48  ;;  %v5784_v25 = vadd.f32 %v5783_v20, %v5782_v4  ;;  %v5847_v35 = vpop.f32.mrf.mxu1  ;;  %6336 = vmatpush3.bf16.msra.mxu1 %v6618_v27  ;;  %v428_v27 = vmul.bf16 1056980736, %v236_v44  ;;  %v440_v48 = vmul.bf16 1056980736, %v248_v57 }
 0x155   : > { %v5848_v52 = vadd.f32 %v5847_v35, %v5846_v5  ;;  %v5785_v10 = vpop.f32.mrf.mxu0  ;;  %4529 = vmatmul.mubr.bf16.gmra.mxu0 %v5342_v30  ;;  %v619_v50 = vadd.bf16 1056980736, %v427_v37  ;;  %v8262_v53 = vmin.bf16 %v6714_v51, %v978_v3 }
 0x156   : > { %v3944_v28 = vadd.f32 %v5784_v25, %v7868_v63  ;;  %v5849_v6 = vpop.f32.mrf.mxu1  ;;  %4626 = vmatmul.mubr.bf16.gmra.mxu1 %v5344_v33  ;;  %4536 = vmatprep.mubr.bf16.mxu0 %v5367_v59  ;;  %v8235_v63 = vmin.bf16 %v6714_v51, %v966_v23  ;;  %v5391_v59 = vcombine.high %v8221_v55, %v8225_v54  ;;  %v631_v23 = vadd.bf16 1056980736, %v439_v58 }
 0x157   : > { %v5786_v17 = vpop.f32.mrf.mxu0  ;;  %4633 = vmatprep.mubr.bf16.mxu1 %v5369_v32  ;;  %v8258_v32 = vmin.bf16 %v6714_v51, %v989_v11  ;;  %v463_v54 = vmul.bf16 1056980736, %v271_v56 }
 0x158   : > { %v8237_v24 = vadd.f32 %v5848_v52, %v3944_v28  ;;  %v5787_v21 = vadd.f32 %v5786_v17, %v5785_v10  ;;  %v5850_v30 = vpop.f32.mrf.mxu1  ;;  %v5393_v14 = vcombine.high %v8232_v26, %v8235_v63  ;;  %v8265_v52 = vmin.bf16 %v6714_v51, %v990_v31  ;;  %v259_v10 = vld [vmem:[%s6890_s22 + $0x110] sm:$0xff] }
 0x159   : > { %v5851_v9 = vadd.f32 %v5850_v30, %v5849_v6  ;;  %v5788_v33 = vpop.f32.mrf.mxu0  ;;  %v620_v28 = vadd.bf16 1056980736, %v428_v27  ;;  %v632_v6 = vadd.bf16 1056980736, %v440_v48  ;;  %v5392_v17 = vcombine.low %v8232_v26, %v8235_v63  ;;  %v283_v48 = vld [vmem:[%s6890_s22 + $0x1d0] sm:$0xff] }
 0x15a   : > { %v3949_v40 = vadd.f32 %v5787_v21, %v7890_v18  ;;  %v5852_v4 = vpop.f32.mrf.mxu1  ;;  %v8255_v18 = vmin.bf16 %v6714_v51, %v977_v8  ;;  %v272_v21 = vld [vmem:[%s6890_s22 + $0x178] sm:$0xff]  ;;  %v811_v8 = vmax.bf16 %v6713_v45, %v619_v50  ;;  %v823_v44 = vmax.bf16 %v6713_v45, %v631_v23  ;;  %v295_v50 = vld [vmem:[%s6890_s22 + $0x230] sm:$0xff] }
 0x15b   : > { %v5789_v42 = vpop.f32.mrf.mxu0  ;;  %v451_v57 = vmul.bf16 1056980736, %v259_v10  ;;  %v5417_v55 = vcombine.high %v8262_v53, %v8265_v52  ;;  %v812_v63 = vmax.bf16 %v6713_v45, %v620_v28  ;;  %v824_v37 = vmax.bf16 %v6713_v45, %v632_v6  ;;  %v284_v28 = vld [vmem:[%s6890_s22 + $0x1d8] sm:$0xff] }
 0x15c   : > { %v8252_v5 = vadd.f32 %v5851_v9, %v3949_v40  ;;  %v5790_v36 = vadd.f32 %v5789_v42, %v5788_v33  ;;  %v5853_v34 = vpop.f32.mrf.mxu1  ;;  %v5415_v11 = vcombine.high %v8255_v18, %v8258_v32  ;;  %v464_v40 = vmul.bf16 1056980736, %v272_v21 }
 0x15d   : > { %v5854_v12 = vadd.f32 %v5853_v34, %v5852_v4  ;;  %v5791_v20 = vpop.f32.mrf.mxu0  ;;  %4537 = vmatmul.mubr.bf16.gmra.mxu0 %v5366_v19  ;;  %v260_v19 = vld [vmem:[%s6890_s22 + $0x118] sm:$0xff]  ;;  %v8289_v42 = vmin.bf16 %v6714_v51, %v811_v8  ;;  %v643_v27 = vadd.bf16 1056980736, %v451_v57  ;;  %v487_v21 = vmul.bf16 1056980736, %v295_v50 }
 0x15e   : > { %v3952_v25 = vadd.f32 %v5790_v36, %v7910_v47  ;;  %v5855_v35 = vpop.f32.mrf.mxu1  ;;  %4634 = vmatmul.mubr.bf16.gmra.mxu1 %v5368_v43  ;;  %4544 = vmatprep.mubr.bf16.mxu0 %v5391_v59  ;;  %v452_v58 = vmul.bf16 1056980736, %v260_v19 }
 0x15f   : > { %v5792_v22 = vpop.f32.mrf.mxu0  ;;  %4641 = vmatprep.mubr.bf16.mxu1 %v5393_v14  ;;  %v8292_v14 = vmin.bf16 %v6714_v51, %v823_v44  ;;  %v835_v19 = vmax.bf16 %v6713_v45, %v643_v27  ;;  %v476_v44 = vmul.bf16 1056980736, %v284_v28  ;;  %v307_v27 = vld [vmem:[%s6890_s22 + $0x290] sm:$0xff]  ;;  %v308_v28 = vld [vmem:[%s6890_s22 + $0x298] sm:$0xff] }
 0x160   : > { %v8269_v7 = vadd.f32 %v5854_v12, %v3952_v25  ;;  %v5793_v47 = vadd.f32 %v5792_v22, %v5791_v20  ;;  %v5856_v46 = vpop.f32.mrf.mxu1  ;;  %v5414_v12 = vcombine.low %v8255_v18, %v8258_v32  ;;  %v655_v20 = vadd.bf16 1056980736, %v463_v54 }
 0x161   : > { %v5857_v30 = vadd.f32 %v5856_v46, %v5855_v35  ;;  %v5794_v43 = vpop.f32.mrf.mxu0  ;;  %v8300_v25 = vmin.bf16 %v6714_v51, %v812_v63  ;;  %v8303_v35 = vmin.bf16 %v6714_v51, %v824_v37  ;;  %v644_v10 = vadd.bf16 1056980736, %v452_v58 }
 0x162   : > { %v3957_v9 = vadd.f32 %v5793_v47, %v7924_v15  ;;  %v5858_v33 = vpop.f32.mrf.mxu1  ;;  %v656_v22 = vadd.bf16 1056980736, %v464_v40  ;;  %v5416_v18 = vcombine.low %v8262_v53, %v8265_v52  ;;  %v475_v32 = vmul.bf16 1056980736, %v283_v48  ;;  %v319_v48 = vld [vmem:[%s6890_s22 + $0x2f0] sm:$0xff] }
 0x163   : > { %v5795_v26 = vpop.f32.mrf.mxu0  ;;  %v847_v8 = vmax.bf16 %v6713_v45, %v655_v20  ;;  %v5253_v53 = vcombine.high %v8300_v25, %v8303_v35  ;;  %v836_v52 = vmax.bf16 %v6713_v45, %v644_v10  ;;  %v8323_v37 = vmin.bf16 %v6714_v51, %v835_v19 }
 0x164   : > { %v8286_v4 = vadd.f32 %v5857_v30, %v3957_v9  ;;  %v5796_v15 = vadd.f32 %v5795_v26, %v5794_v43  ;;  %v5859_v59 = vpop.f32.mrf.mxu1  ;;  %v679_v58 = vadd.bf16 1056980736, %v487_v21  ;;  %v5252_v10 = vcombine.low %v8300_v25, %v8303_v35 }
 0x165   : > { %v5860_v3 = vadd.f32 %v5859_v59, %v5858_v33  ;;  %v5797_v31 = vpop.f32.mrf.mxu0  ;;  %4545 = vmatmul.mubr.bf16.gmra.mxu0 %v5390_v16  ;;  %v848_v33 = vmax.bf16 %v6713_v45, %v656_v22  ;;  %v8327_v59 = vmin.bf16 %v6714_v51, %v847_v8  ;;  %v500_v21 = vmul.bf16 1056980736, %v308_v28 }
 0x166   : > { %v3960_v36 = vadd.f32 %v5796_v15, %v7942_v39  ;;  %v5861_v34 = vpop.f32.mrf.mxu1  ;;  %4642 = vmatmul.mubr.bf16.gmra.mxu1 %v5392_v17  ;;  %4552 = vmatprep.mubr.bf16.mxu0 %v5415_v11  ;;  %v296_v39 = vld [vmem:[%s6890_s22 + $0x238] sm:$0xff]  ;;  %v5251_v17 = vcombine.high %v8289_v42, %v8292_v14 }
 0x167   : > { %v5798_v23 = vpop.f32.mrf.mxu0  ;;  %4649 = vmatprep.mubr.bf16.mxu1 %v5417_v55  ;;  %v488_v57 = vmul.bf16 1056980736, %v296_v39  ;;  %v320_v39 = vld [vmem:[%s6890_s22 + $0x2f8] sm:$0xff] }
 0x168   : > { %v8307_v6 = vadd.f32 %v5860_v3, %v3960_v36  ;;  %v5799_v56 = vadd.f32 %v5798_v23, %v5797_v31  ;;  %v5862_v47 = vpop.f32.mrf.mxu1  ;;  %v668_v3 = vadd.bf16 1056980736, %v476_v44 }
 0x169   : > { %v5863_v46 = vadd.f32 %v5862_v47, %v5861_v34  ;;  %v5800_v16 = vpop.f32.mrf.mxu0  ;;  %v680_v31 = vadd.bf16 1056980736, %v488_v57  ;;  %v5250_v34 = vcombine.low %v8289_v42, %v8292_v14  ;;  %v871_v14 = vmax.bf16 %v6713_v45, %v679_v58 }
 0x16a   : > { %v3965_v30 = vadd.f32 %v5799_v56, %v7956_v0  ;;  %v5864_v43 = vpop.f32.mrf.mxu1  ;;  %v667_v0 = vadd.bf16 1056980736, %v475_v32  ;;  %v499_v47 = vmul.bf16 1056980736, %v307_v27  ;;  %v692_v58 = vadd.bf16 1056980736, %v500_v21 }
 0x16b   : > { %v5801_v9 = vpop.f32.mrf.mxu0  ;;  %v872_v25 = vmax.bf16 %v6713_v45, %v680_v31  ;;  %v355_v21 = vld [vmem:[%s6890_s22 + $0x410] sm:$0xff] }
 0x16c   : > { %v8320_v11 = vadd.f32 %v5863_v46, %v3965_v30  ;;  %v5802_v55 = vadd.f32 %v5801_v9, %v5800_v16  ;;  %v5865_v54 = vpop.f32.mrf.mxu1  ;;  %v859_v22 = vmax.bf16 %v6713_v45, %v667_v0  ;;  %v5275_v16 = vcombine.high %v8323_v37, %v8327_v59 }
 0x16d   : > { %v5866_v26 = vadd.f32 %v5865_v54, %v5864_v43  ;;  %v5803_v63 = vpop.f32.mrf.mxu0  ;;  %4553 = vmatmul.mubr.bf16.gmra.mxu0 %v5414_v12  ;;  %v8334_v12 = vmin.bf16 %v6714_v51, %v836_v52  ;;  %v512_v30 = vmul.bf16 1056980736, %v320_v39  ;;  %v691_v52 = vadd.bf16 1056980736, %v499_v47 }
 0x16e   : > { %v3968_v40 = vadd.f32 %v5802_v55, %v7973_v29  ;;  %v5867_v15 = vpop.f32.mrf.mxu1  ;;  %4650 = vmatmul.mubr.bf16.gmra.mxu1 %v5416_v18  ;;  %4690 = vmatprep.mubr.bf16.mxu0 %v5251_v17  ;;  %v8337_v29 = vmin.bf16 %v6714_v51, %v848_v33  ;;  %v511_v18 = vmul.bf16 1056980736, %v319_v48  ;;  %v860_v17 = vmax.bf16 %v6713_v45, %v668_v3  ;;  %v343_v3 = vld [vmem:[%s6890_s22 + $0x3b0] sm:$0xff] }
 0x16f   : > { %v5804_v36 = vpop.f32.mrf.mxu0  ;;  %4787 = vmatprep.mubr.bf16.mxu1 %v5253_v53  ;;  %v8360_v53 = vmin.bf16 %v6714_v51, %v871_v14  ;;  %v5274_v48 = vcombine.low %v8323_v37, %v8327_v59  ;;  %v883_v28 = vmax.bf16 %v6713_v45, %v691_v52  ;;  %v884_v14 = vmax.bf16 %v6713_v45, %v692_v58 }
 0x170   : > { %v8339_v20 = vadd.f32 %v5866_v26, %v3968_v40  ;;  %v5805_v50 = vadd.f32 %v5804_v36, %v5803_v63  ;;  %v5868_v23 = vpop.f32.mrf.mxu1  ;;  %v5277_v19 = vcombine.high %v8334_v12, %v8337_v29  ;;  %v703_v33 = vadd.bf16 1056980736, %v511_v18 }
 0x171   : > { %v5869_v56 = vadd.f32 %v5868_v23, %v5867_v15  ;;  %v5806_v42 = vpop.f32.mrf.mxu0  ;;  %v8364_v0 = vmin.bf16 %v6714_v51, %v860_v17  ;;  %v8367_v26 = vmin.bf16 %v6714_v51, %v872_v25  ;;  %v704_v40 = vadd.bf16 1056980736, %v512_v30  ;;  %v331_v15 = vld [vmem:[%s6890_s22 + $0x350] sm:$0xff] }
 0x172   : > { %v3973_v32 = vadd.f32 %v5805_v50, %v7999_v61  ;;  %v5870_v46 = vpop.f32.mrf.mxu1  ;;  %v8357_v61 = vmin.bf16 %v6714_v51, %v859_v22  ;;  %v5276_v36 = vcombine.low %v8334_v12, %v8337_v29  ;;  %v344_v50 = vld [vmem:[%s6890_s22 + $0x3b8] sm:$0xff]  ;;  %v895_v39 = vmax.bf16 %v6713_v45, %v703_v33  ;;  %v367_v30 = vld [vmem:[%s6890_s22 + $0x470] sm:$0xff] }
 0x173   : > { %v5807_v35 = vpop.f32.mrf.mxu0  ;;  %v5301_v37 = vcombine.high %v8364_v0, %v8367_v26  ;;  %v523_v59 = vmul.bf16 1056980736, %v331_v15  ;;  %v535_v12 = vmul.bf16 1056980736, %v343_v3  ;;  %v896_v47 = vmax.bf16 %v6713_v45, %v704_v40  ;;  %v356_v33 = vld [vmem:[%s6890_s22 + $0x418] sm:$0xff] }
 0x174   : > { %v8354_v43 = vadd.f32 %v5869_v56, %v3973_v32  ;;  %v5808_v8 = vadd.f32 %v5807_v35, %v5806_v42  ;;  %v5871_v44 = vpop.f32.mrf.mxu1  ;;  %v5299_v22 = vcombine.high %v8357_v61, %v8360_v53  ;;  %v536_v32 = vmul.bf16 1056980736, %v344_v50 }
 0x175   : > { %v5872_v57 = vadd.f32 %v5871_v44, %v5870_v46  ;;  %v5889_v9 = vpop.f32.mrf.mxu0  ;;  %4691 = vmatmul.mubr.bf16.vlgmr.msra.gmra.mxu0 %v5250_v34  ;;  %v332_v34 = vld [vmem:[%s6890_s22 + $0x358] sm:$0xff]  ;;  %v5298_v35 = vcombine.low %v8357_v61, %v8360_v53  ;;  %v727_v52 = vadd.bf16 1056980736, %v535_v12  ;;  %v8404_v61 = vmin.bf16 %v6714_v51, %v884_v14 }
 0x176   : > { %v3976_v55 = vadd.f32 %v5808_v8, %v8038_v2  ;;  %v5953_v54 = vpop.f32.mrf.mxu1  ;;  %4788 = vmatmul.mubr.bf16.vlgmr.msra.gmra.mxu1 %v5252_v10  ;;  %4698 = vmatprep.mubr.bf16.mxu0 %v5275_v16  ;;  %v524_v18 = vmul.bf16 1056980736, %v332_v34  ;;  %v8407_v53 = vmin.bf16 %v6714_v51, %v896_v47  ;;  %v547_v3 = vmul.bf16 1056980736, %v355_v21  ;;  %v379_v21 = vld [vmem:[%s6890_s22 + $0x4d0] sm:$0xff] }
 0x177   : > { %v5890_v63 = vpop.f32.mrf.mxu0  ;;  %4795 = vmatprep.mubr.bf16.mxu1 %v5277_v19  ;;  %v8393_v19 = vmin.bf16 %v6714_v51, %v883_v28  ;;  %v548_v34 = vmul.bf16 1056980736, %v356_v33 }
 0x178   : > { %v8371_v31 = vadd.f32 %v5872_v57, %v3976_v55  ;;  %v5891_v2 = vadd.f32 %v5890_v63, %v5889_v9  ;;  %v5954_v27 = vpop.f32.mrf.mxu1  ;;  %v8399_v57 = vmin.bf16 %v6714_v51, %v895_v39  ;;  %v715_v9 = vadd.bf16 1056980736, %v523_v59  ;;  %v368_v55 = vld [vmem:[%s6890_s22 + $0x478] sm:$0xff] }
 0x179   : > { %v5955_v23 = vadd.f32 %v5954_v27, %v5953_v54  ;;  %v5892_v10 = vpop.f32.mrf.mxu0  ;;  %v716_v63 = vadd.bf16 1056980736, %v524_v18  ;;  %v560_v50 = vmul.bf16 1056980736, %v368_v55  ;;  %v919_v39 = vmax.bf16 %v6713_v45, %v727_v52 }
 0x17a   : > { %v4111_v56 = vadd.f32 %v5891_v2, %v8062_v62  ;;  %v5956_v42 = vpop.f32.mrf.mxu1  ;;  %v559_v2 = vmul.bf16 1056980736, %v367_v30  ;;  %v907_v28 = vmax.bf16 %v6713_v45, %v715_v9  ;;  %v739_v12 = vadd.bf16 1056980736, %v547_v3 }
 0x17b   : > { %v5893_v29 = vpop.f32.mrf.mxu0  ;;  %v740_v18 = vadd.bf16 1056980736, %v548_v34  ;;  %v571_v3 = vmul.bf16 1056980736, %v379_v21 }
 0x17c   : > { %v8388_v46 = vadd.f32 %v5955_v23, %v4111_v56  ;;  %v5894_v16 = vadd.f32 %v5893_v29, %v5892_v10  ;;  %v5957_v62 = vpop.f32.mrf.mxu1  ;;  %v751_v29 = vadd.bf16 1056980736, %v559_v2  ;;  %v931_v55 = vmax.bf16 %v6713_v45, %v739_v12 }
 0x17d   : > { %v5958_v17 = vadd.f32 %v5957_v62, %v5956_v42  ;;  %v5895_v25 = vpop.f32.mrf.mxu0  ;;  %4699 = vmatmul.mubr.bf16.gmra.mxu0 %v5274_v48  ;;  %v5325_v42 = vcombine.high %v8404_v61, %v8407_v53 }
 0x17e   : > { %v4114_v8 = vadd.f32 %v5894_v16, %v8087_v38  ;;  %v5959_v44 = vpop.f32.mrf.mxu1  ;;  %4796 = vmatmul.mubr.bf16.gmra.mxu1 %v5276_v36  ;;  %4706 = vmatprep.mubr.bf16.mxu0 %v5299_v22  ;;  %v728_v38 = vadd.bf16 1056980736, %v536_v32  ;;  %v5300_v36 = vcombine.low %v8364_v0, %v8367_v26  ;;  %v5323_v22 = vcombine.high %v8393_v19, %v8399_v57 }
 0x17f   : > { %v5896_v54 = vpop.f32.mrf.mxu0  ;;  %4803 = vmatprep.mubr.bf16.mxu1 %v5301_v37  ;;  %v908_v37 = vmax.bf16 %v6713_v45, %v716_v63  ;;  %v752_v32 = vadd.bf16 1056980736, %v560_v50  ;;  %v380_v63 = vld [vmem:[%s6890_s22 + $0x4d8] sm:$0xff] }
 0x180   : > { %v8409_v58 = vadd.f32 %v5958_v17, %v4114_v8  ;;  %v5897_v40 = vadd.f32 %v5896_v54, %v5895_v25  ;;  %v5960_v15 = vpop.f32.mrf.mxu1  ;;  %v920_v0 = vmax.bf16 %v6713_v45, %v728_v38  ;;  %v8426_v17 = vmin.bf16 %v6714_v51, %v907_v28  ;;  %v392_v38 = vld [vmem:[%s6890_s22 + $0x538] sm:$0xff] }
 0x181   : > { %v5961_v27 = vadd.f32 %v5960_v15, %v5959_v44  ;;  %v5898_v48 = vpop.f32.mrf.mxu0  ;;  %v8429_v25 = vmin.bf16 %v6714_v51, %v919_v39  ;;  %v8435_v8 = vmin.bf16 %v6714_v51, %v908_v37  ;;  %v391_v44 = vld [vmem:[%s6890_s22 + $0x530] sm:$0xff]  ;;  %v943_v54 = vmax.bf16 %v6713_v45, %v751_v29 }
 0x182   : > { %v4119_v23 = vadd.f32 %v5897_v40, %v8118_v1  ;;  %v5962_v10 = vpop.f32.mrf.mxu1  ;;  %v583_v34 = vmul.bf16 1056980736, %v391_v44  ;;  %v404_v44 = vld [vmem:[%s6890_s22 + $0x598] sm:$0xff] }
 0x183   : > { %v5899_v56 = vpop.f32.mrf.mxu0 }
 0x184   : > { %v8422_v26 = vadd.f32 %v5961_v27, %v4119_v23  ;;  %v5900_v1 = vadd.f32 %v5899_v56, %v5898_v48  ;;  %v5963_v59 = vpop.f32.mrf.mxu1  ;;  %v5324_v48 = vcombine.low %v8404_v61, %v8407_v53  ;;  %v775_v29 = vadd.bf16 1056980736, %v583_v34 }
 0x185   : > { %v5964_v14 = vadd.f32 %v5963_v59, %v5962_v10  ;;  %v5901_v47 = vpop.f32.mrf.mxu0  ;;  %4707 = vmatmul.mubr.bf16.gmra.mxu0 %v5298_v35  ;;  %v5322_v35 = vcombine.low %v8393_v19, %v8399_v57  ;;  %v932_v19 = vmax.bf16 %v6713_v45, %v740_v18  ;;  %v944_v57 = vmax.bf16 %v6713_v45, %v752_v32  ;;  %v403_v32 = vld [vmem:[%s6890_s22 + $0x590] sm:$0xff] }
 0x186   : > { %v4122_v16 = vadd.f32 %v5900_v1, %v8147_v49  ;;  %v5965_v62 = vpop.f32.mrf.mxu1  ;;  %4804 = vmatmul.mubr.bf16.gmra.mxu1 %v5300_v36  ;;  %4714 = vmatprep.mubr.bf16.mxu0 %v5323_v22  ;;  %v8438_v49 = vmin.bf16 %v6714_v51, %v920_v0  ;;  %v5347_v36 = vcombine.high %v8426_v17, %v8429_v25  ;;  %v572_v10 = vmul.bf16 1056980736, %v380_v63 }
 0x187   : > { %v5902_v30 = vpop.f32.mrf.mxu0  ;;  %4811 = vmatprep.mubr.bf16.mxu1 %v5325_v42  ;;  %v584_v22 = vmul.bf16 1056980736, %v392_v38  ;;  %v8462_v42 = vmin.bf16 %v6714_v51, %v943_v54  ;;  %v8465_v37 = vmin.bf16 %v6714_v51, %v932_v19  ;;  %v8468_v0 = vmin.bf16 %v6714_v51, %v944_v57 }
 0x188   : > { %v8441_v9 = vadd.f32 %v5964_v14, %v4122_v16  ;;  %v5903_v52 = vadd.f32 %v5902_v30, %v5901_v47  ;;  %v5966_v33 = vpop.f32.mrf.mxu1  ;;  %v5349_v23 = vcombine.high %v8435_v8, %v8438_v49  ;;  %v763_v1 = vadd.bf16 1056980736, %v571_v3  ;;  %v415_v16 = vld [vmem:[%s6890_s22 + $0x5f0] sm:$0xff] }
 0x189   : > { %v5967_v40 = vadd.f32 %v5966_v33, %v5965_v62  ;;  %v5904_v15 = vpop.f32.mrf.mxu0  ;;  %v764_v47 = vadd.bf16 1056980736, %v572_v10  ;;  %v776_v18 = vadd.bf16 1056980736, %v584_v22  ;;  %v5373_v63 = vcombine.high %v8465_v37, %v8468_v0 }
 0x18a   : > { %v4127_v2 = vadd.f32 %v5903_v52, %v8172_v60  ;;  %v5968_v27 = vpop.f32.mrf.mxu1  ;;  %v8459_v60 = vmin.bf16 %v6714_v51, %v931_v55  ;;  %v416_v52 = vld [vmem:[%s6890_s22 + $0x5f8] sm:$0xff]  ;;  %v955_v38 = vmax.bf16 %v6713_v45, %v763_v1  ;;  %v607_v19 = vmul.bf16 1056980736, %v415_v16  ;;  %s5228_s22 = sshll.u32 %s6860_s11, 3  ;;  %s207_s11 = sand.u32 1, %s6703_s16  }
 0x18b   : > { %v5905_v50 = vpop.f32.mrf.mxu0  ;;  %v968_v57 = vmax.bf16 %v6713_v45, %v776_v18  ;;  %v596_v3 = vmul.bf16 1056980736, %v404_v44  ;;  %v5372_v16 = vcombine.low %v8465_v37, %v8468_v0  ;;  %s8851_s13 = scalar_lea.vmem %s8958_s3, %s5228_s22  ;;  %s208_s20 = scalar_lea.vmem [#allocation2], %s207_s11 }
 0x18c   : > { %v8456_v28 = vadd.f32 %v5967_v40, %v4127_v2  ;;  %v5906_v39 = vadd.f32 %v5905_v50, %v5904_v15  ;;  %v5969_v56 = vpop.f32.mrf.mxu1  ;;  %v5371_v54 = vcombine.high %v8459_v60, %v8462_v42  ;;  %v608_v2 = vmul.bf16 1056980736, %v416_v52  ;;  %s5154_s23 = sshll.u32 %s208_s20, 4  ;;  %s5142_s19 = scalar_lea.sflag [#allocation3], %s207_s11  ;;  %s5155_s23 = int_to_ptr.vmem [resolvable:$true] %s5154_s23 }
 0x18d   : > { %v5970_v61 = vadd.f32 %v5969_v56, %v5968_v27  ;;  %v5907_v53 = vpop.f32.mrf.mxu0  ;;  %4715 = vmatmul.mubr.bf16.gmra.mxu0 %v5322_v35  ;;  %v5346_v35 = vcombine.low %v8426_v17, %v8429_v25  ;;  %v967_v17 = vmax.bf16 %v6713_v45, %v775_v29  ;;  %v595_v25 = vmul.bf16 1056980736, %v403_v32  ;;  %s6651_s30 = scalar_lea.vmem %s5155_s23, 16  ;;  %p6658_p0 = scmp.lt.s32.totalorder %s5155_s23, %s6656_s6 }
 0x18e   : > { %v4130_v59 = vadd.f32 %v5906_v39, %v8202_v41  ;;  %v5971_v12 = vpop.f32.mrf.mxu1  ;;  %4812 = vmatmul.mubr.bf16.gmra.mxu1 %v5324_v48  ;;  %4722 = vmatprep.mubr.bf16.mxu0 %v5347_v36  ;;  %v5348_v41 = vcombine.low %v8435_v8, %v8438_v49  ;;  %v956_v49 = vmax.bf16 %v6713_v45, %v764_v47  ;;  %v799_v56 = vadd.bf16 1056980736, %v607_v19  ;;  %p6652_p11 = scmp.ne.s32.totalorder %s5155_s23, %s6651_s30  ;;  %p6659_p1 = scmp.lt.s32.totalorder %s6657_s7, %s6651_s30 }
 0x18f   : > { %v5908_v14 = vpop.f32.mrf.mxu0  ;;  %4819 = vmatprep.mubr.bf16.mxu1 %v5349_v23  ;;  %v1159_v22 = vmin.bf16 %v6714_v51, %v967_v17  ;;  %v787_v39 = vadd.bf16 1056980736, %v595_v25  ;;  %v1160_v1 = vmin.bf16 %v6714_v51, %v968_v57  ;;  %v5370_v32 = vcombine.low %v8459_v60, %v8462_v42 }
 0x190   : > { %v8473_v62 = vadd.f32 %v5970_v61, %v4130_v59  ;;  %v5909_v21 = vadd.f32 %v5908_v14, %v5907_v53  ;;  %v5972_v30 = vpop.f32.mrf.mxu1  ;;  %v1148_v53 = vmin.bf16 %v6714_v51, %v956_v49  ;;  %v788_v59 = vadd.bf16 1056980736, %v596_v3  ;;  %p6653_p12 = pnand %p6652_p11, %p6778_p5  ;;  %p6660_p2 = por %p6659_p1, %p6658_p0 }
 0x191   : > { %v5973_v33 = vadd.f32 %v5972_v30, %v5971_v12  ;;  %v5910_v55 = vpop.f32.mrf.mxu0  ;;  %v800_v12 = vadd.bf16 1056980736, %v608_v2  ;;  %v991_v44 = vmax.bf16 %v6713_v45, %v799_v56 }
 0x192   : > { %v4135_v40 = vadd.f32 %v5909_v21, %v8218_v13  ;;  %v5974_v15 = vpop.f32.mrf.mxu1  ;;  %v8493_v13 = vmin.bf16 %v6714_v51, %v955_v38  ;;  %p6654_p13 = pneg %p6653_p12 }
 0x193   : > { %v5911_v8 = vpop.f32.mrf.mxu0 }
 0x194   : > { %v8490_v27 = vadd.f32 %v5973_v33, %v4135_v40  ;;  %v5912_v48 = vadd.f32 %v5911_v8, %v5910_v55  ;;  %v5975_v36 = vpop.f32.mrf.mxu1  ;;  %v5397_v33 = vcombine.high %v1148_v53, %v1160_v1  ;;  %v980_v55 = vmax.bf16 %v6713_v45, %v788_v59  ;;  %p6661_p3 = pnand %p6660_p2, %p6654_p13 }
 0x195   : > { %v5976_v34 = vadd.f32 %v5975_v36, %v5974_v15  ;;  %v5913_v50 = vpop.f32.mrf.mxu0  ;;  %4723 = vmatmul.mubr.bf16.gmra.mxu0 %v5346_v35  ;;  %v5395_v35 = vcombine.high %v8493_v13, %v1159_v22  ;;  %v1183_v15 = vmin.bf16 %v6714_v51, %v991_v44  ;;  %v5396_v36 = vcombine.low %v1148_v53, %v1160_v1 }
 0x196   : > { %v4138_v23 = vadd.f32 %v5912_v48, %v8237_v24  ;;  %v5977_v10 = vpop.f32.mrf.mxu1  ;;  %4820 = vmatmul.mubr.bf16.gmra.mxu1 %v5348_v41  ;;  %4730 = vmatprep.mubr.bf16.mxu0 %v5371_v54  ;;  %v979_v41 = vmax.bf16 %v6713_v45, %v787_v39  ;;  %v992_v54 = vmax.bf16 %v6713_v45, %v800_v12 }
 0x197   : > { %v5914_v61 = vpop.f32.mrf.mxu0  ;;  %4827 = vmatprep.mubr.bf16.mxu1 %v5373_v63  ;;  %v1172_v45 = vmin.bf16 %v6714_v51, %v980_v55 }
 0x198   : > { %v8499_v29 = vadd.f32 %v5976_v34, %v4138_v23  ;;  %v5915_v14 = vadd.f32 %v5914_v61, %v5913_v50  ;;  %v5978_v47 = vpop.f32.mrf.mxu1  ;;  %v1171_v40 = vmin.bf16 %v6714_v51, %v979_v41  ;;  %v1184_v25 = vmin.bf16 %v6714_v51, %v992_v54 }
 0x199   : > { %v5979_v24 = vadd.f32 %v5978_v47, %v5977_v10  ;;  %v5916_v18 = vpop.f32.mrf.mxu0 }
 0x19a   : > { %v4143_v21 = vadd.f32 %v5915_v14, %v8252_v5  ;;  %v5980_v30 = vpop.f32.mrf.mxu1  ;;  %v5419_v34 = vcombine.high %v1171_v40, %v1183_v15  ;;  %v5421_v23 = vcombine.high %v1172_v45, %v1184_v25  ;;  %v5418_v47 = vcombine.low %v1171_v40, %v1183_v15 }
 0x19b   : > { %v5917_v52 = vpop.f32.mrf.mxu0 }
 0x19c   : > { %v8511_v63 = vadd.f32 %v5979_v24, %v4143_v21  ;;  %v5918_v60 = vadd.f32 %v5917_v52, %v5916_v18  ;;  %v5981_v42 = vpop.f32.mrf.mxu1 }
 0x19d   : > { %v5982_v37 = vadd.f32 %v5981_v42, %v5980_v30  ;;  %v5919_v0 = vpop.f32.mrf.mxu0  ;;  %4731 = vmatmul.mubr.bf16.gmra.mxu0 %v5370_v32  ;;  %v5420_v32 = vcombine.low %v1172_v45, %v1184_v25 }
 0x19e   : > { %v4146_v5 = vadd.f32 %v5918_v60, %v8269_v7  ;;  %v5983_v38 = vpop.f32.mrf.mxu1  ;;  %4828 = vmatmul.mubr.bf16.gmra.mxu1 %v5372_v16  ;;  %4738 = vmatprep.mubr.bf16.mxu0 %v5395_v35  ;;  %v5394_v7 = vcombine.low %v8493_v13, %v1159_v22 }
 0x19f   : > { %v5920_v17 = vpop.f32.mrf.mxu0  ;;  %4835 = vmatprep.mubr.bf16.mxu1 %v5397_v33 }
 0x1a0   : > { %v8518_v19 = vadd.f32 %v5982_v37, %v4146_v5  ;;  %v5921_v8 = vadd.f32 %v5920_v17, %v5919_v0  ;;  %v5984_v49 = vpop.f32.mrf.mxu1 }
 0x1a1   : > { %v5985_v57 = vadd.f32 %v5984_v49, %v5983_v38  ;;  %v5922_v3 = vpop.f32.mrf.mxu0 }
 0x1a2   : > { %v4151_v2 = vadd.f32 %v5921_v8, %v8286_v4  ;;  %v5986_v48 = vpop.f32.mrf.mxu1 }
 0x1a3   : > { %v5923_v50 = vpop.f32.mrf.mxu0 }
 0x1a4   : > { %v8522_v10 = vadd.f32 %v5985_v57, %v4151_v2  ;;  %v5924_v39 = vadd.f32 %v5923_v50, %v5922_v3  ;;  %v5987_v56 = vpop.f32.mrf.mxu1 }
 0x1a5   : > { %v5988_v51 = vadd.f32 %v5987_v56, %v5986_v48  ;;  %v5925_v61 = vpop.f32.mrf.mxu0  ;;  %4739 = vmatmul.mubr.bf16.gmra.mxu0 %v5394_v7 }
 0x1a6   : > { %v4154_v59 = vadd.f32 %v5924_v39, %v8307_v6  ;;  %v5989_v12 = vpop.f32.mrf.mxu1  ;;  %4836 = vmatmul.mubr.bf16.gmra.mxu1 %v5396_v36  ;;  %4746 = vmatprep.mubr.bf16.mxu0 %v5419_v34 }
 0x1a7   : > { %v5926_v13 = vpop.f32.mrf.mxu0  ;;  %4843 = vmatprep.mubr.bf16.mxu1 %v5421_v23 }
 0x1a8   : > { %v8525_v4 = vadd.f32 %v5988_v51, %v4154_v59  ;;  %v5927_v22 = vadd.f32 %v5926_v13, %v5925_v61  ;;  %v5990_v53 = vpop.f32.mrf.mxu1 }
 0x1a9   : > { %v5991_v1 = vadd.f32 %v5990_v53, %v5989_v12  ;;  %v5928_v14 = vpop.f32.mrf.mxu0 }
 0x1aa   : > { %v4159_v24 = vadd.f32 %v5927_v22, %v8320_v11  ;;  %v5992_v18 = vpop.f32.mrf.mxu1 }
 0x1ab   : > { %v5929_v16 = vpop.f32.mrf.mxu0 }
 0x1ac   : > { %v8528_v21 = vadd.f32 %v5991_v1, %v4159_v24  ;;  %v5930_v6 = vadd.f32 %v5929_v16, %v5928_v14  ;;  %v5993_v30 = vpop.f32.mrf.mxu1 }
 0x1ad   : > { %v5994_v35 = vadd.f32 %v5993_v30, %v5992_v18  ;;  %v5931_v41 = vpop.f32.mrf.mxu0  ;;  %4747 = vmatmul.mubr.bf16.gmra.mxu0 %v5418_v47 }
 0x1ae   : > { %v4162_v44 = vadd.f32 %v5930_v6, %v8339_v20  ;;  %v5995_v52 = vpop.f32.mrf.mxu1  ;;  %4844 = vmatmul.mubr.bf16.gmra.mxu1 %v5420_v32 }
 0x1af   : > { %v5932_v33 = vpop.f32.mrf.mxu0 }
 0x1b0   : > { %v8531_v55 = vadd.f32 %v5994_v35, %v4162_v44  ;;  %v5933_v54 = vadd.f32 %v5932_v33, %v5931_v41  ;;  %v5996_v60 = vpop.f32.mrf.mxu1 }
 0x1b1   : > { %v5997_v11 = vadd.f32 %v5996_v60, %v5995_v52  ;;  %v5934_v42 = vpop.f32.mrf.mxu0 }
 0x1b2   : > { %v4167_v37 = vadd.f32 %v5933_v54, %v8354_v43  ;;  %v5998_v0 = vpop.f32.mrf.mxu1 }
 0x1b3   : > { %v5935_v5 = vpop.f32.mrf.mxu0 }
 0x1b4   : > { %v8534_v38 = vadd.f32 %v5997_v11, %v4167_v37  ;;  %v5936_v40 = vadd.f32 %v5935_v5, %v5934_v42  ;;  %v5999_v15 = vpop.f32.mrf.mxu1 }
 0x1b5   : > { %v6000_v17 = vadd.f32 %v5999_v15, %v5998_v0  ;;  %v6017_v45 = vpop.f32.mrf.mxu0 }
 0x1b6   : > { %v4170_v20 = vadd.f32 %v5936_v40, %v8371_v31  ;;  %v6081_v25 = vpop.f32.mrf.mxu1 }
 0x1b7   : > { %v6018_v8 = vpop.f32.mrf.mxu0 }
 0x1b8   : > { %v8537_v49 = vadd.f32 %v6000_v17, %v4170_v20  ;;  %v6019_v57 = vadd.f32 %v6018_v8, %v6017_v45  ;;  %v6082_v3 = vpop.f32.mrf.mxu1 }
 0x1b9   : > { %v6083_v7 = vadd.f32 %v6082_v3, %v6081_v25  ;;  %v6020_v2 = vpop.f32.mrf.mxu0 }
 0x1ba   : > { %v4305_v43 = vadd.f32 %v6019_v57, %v8388_v46  ;;  %v6084_v48 = vpop.f32.mrf.mxu1 }
 0x1bb   : > { %v6021_v36 = vpop.f32.mrf.mxu0 }
 0x1bc   : > { %v8540_v34 = vadd.f32 %v6083_v7, %v4305_v43  ;;  %v6022_v50 = vadd.f32 %v6021_v36, %v6020_v2  ;;  %v6085_v23 = vpop.f32.mrf.mxu1 }
 0x1bd   : > { %v6086_v39 = vadd.f32 %v6085_v23, %v6084_v48  ;;  %v6023_v56 = vpop.f32.mrf.mxu0 }
 0x1be   : > { %v4308_v31 = vadd.f32 %v6022_v50, %v8409_v58  ;;  %v6087_v51 = vpop.f32.mrf.mxu1 }
 0x1bf   : > { %v6024_v61 = vpop.f32.mrf.mxu0 }
 0x1c0   : > { %v8543_v59 = vadd.f32 %v6086_v39, %v4308_v31  ;;  %v6025_v12 = vadd.f32 %v6024_v61, %v6023_v56  ;;  %v6088_v13 = vpop.f32.mrf.mxu1 }
 0x1c1   : > { %v6089_v22 = vadd.f32 %v6088_v13, %v6087_v51  ;;  %v6026_v53 = vpop.f32.mrf.mxu0 }
 0x1c2   : > { %v4313_v46 = vadd.f32 %v6025_v12, %v8422_v26  ;;  %v6090_v1 = vpop.f32.mrf.mxu1 }
 0x1c3   : > { %v6027_v14 = vpop.f32.mrf.mxu0 }
 0x1c4   : > { %v8546_v47 = vadd.f32 %v6089_v22, %v4313_v46  ;;  %v6028_v24 = vadd.f32 %v6027_v14, %v6026_v53  ;;  %v6091_v18 = vpop.f32.mrf.mxu1 }
 0x1c5   : > { %v6092_v32 = vadd.f32 %v6091_v18, %v6090_v1  ;;  %v6029_v16 = vpop.f32.mrf.mxu0 }
 0x1c6   : > { %v4316_v58 = vadd.f32 %v6028_v24, %v8441_v9  ;;  %v6093_v6 = vpop.f32.mrf.mxu1 }
 0x1c7   : > { %v6030_v30 = vpop.f32.mrf.mxu0 }
 0x1c8   : > { %v8549_v35 = vadd.f32 %v6092_v32, %v4316_v58  ;;  %v6031_v41 = vadd.f32 %v6030_v30, %v6029_v16  ;;  %v6094_v44 = vpop.f32.mrf.mxu1 }
 0x1c9   : > { %v6095_v52 = vadd.f32 %v6094_v44, %v6093_v6  ;;  %v6032_v33 = vpop.f32.mrf.mxu0 }
 0x1ca   : > { %v4321_v26 = vadd.f32 %v6031_v41, %v8456_v28  ;;  %v6096_v54 = vpop.f32.mrf.mxu1 }
 0x1cb   : > { %v6033_v60 = vpop.f32.mrf.mxu0 }
 0x1cc   : > { %v8552_v11 = vadd.f32 %v6095_v52, %v4321_v26  ;;  %v6034_v42 = vadd.f32 %v6033_v60, %v6032_v33  ;;  %v6097_v37 = vpop.f32.mrf.mxu1 }
 0x1cd   : > { %v6098_v0 = vadd.f32 %v6097_v37, %v6096_v54  ;;  %v6035_v5 = vpop.f32.mrf.mxu0 }
 0x1ce   : > { %v4324_v9 = vadd.f32 %v6034_v42, %v8473_v62  ;;  %v6099_v40 = vpop.f32.mrf.mxu1 }
 0x1cf   : > { %v6036_v15 = vpop.f32.mrf.mxu0 }
 0x1d0   : > { %v8555_v17 = vadd.f32 %v6098_v0, %v4324_v9  ;;  %v6037_v45 = vadd.f32 %v6036_v15, %v6035_v5  ;;  %v6100_v20 = vpop.f32.mrf.mxu1 }
 0x1d1   : > { %v6101_v25 = vadd.f32 %v6100_v20, %v6099_v40  ;;  %v6038_v8 = vpop.f32.mrf.mxu0 }
 0x1d2   : > { %v4329_v28 = vadd.f32 %v6037_v45, %v8490_v27  ;;  %v6102_v57 = vpop.f32.mrf.mxu1 }
 0x1d3   : > { %v6039_v3 = vpop.f32.mrf.mxu0 }
 0x1d4   : > { %v8558_v7 = vadd.f32 %v6101_v25, %v4329_v28  ;;  %v6040_v2 = vadd.f32 %v6039_v3, %v6038_v8  ;;  %v6103_v43 = vpop.f32.mrf.mxu1 }
 0x1d5   : > { %v6104_v48 = vadd.f32 %v6103_v43, %v6102_v57  ;;  %v6041_v36 = vpop.f32.mrf.mxu0 }
 0x1d6   : > { %v4332_v62 = vadd.f32 %v6040_v2, %v8499_v29  ;;  %v6105_v50 = vpop.f32.mrf.mxu1 }
 0x1d7   : > { %v6042_v23 = vpop.f32.mrf.mxu0 }
 0x1d8   : > { %v8561_v39 = vadd.f32 %v6104_v48, %v4332_v62  ;;  %v6043_v56 = vadd.f32 %v6042_v23, %v6041_v36  ;;  %v6106_v31 = vpop.f32.mrf.mxu1 }
 0x1d9   : > { %v6107_v51 = vadd.f32 %v6106_v31, %v6105_v50  ;;  %v6044_v61 = vpop.f32.mrf.mxu0 }
 0x1da   : > { %v4337_v27 = vadd.f32 %v6043_v56, %v8511_v63  ;;  %v6108_v12 = vpop.f32.mrf.mxu1 }
 0x1db   : > { %v6045_v13 = vpop.f32.mrf.mxu0 }
 0x1dc   : > { %v8564_v22 = vadd.f32 %v6107_v51, %v4337_v27  ;;  %v6046_v53 = vadd.f32 %v6045_v13, %v6044_v61  ;;  %v6109_v46 = vpop.f32.mrf.mxu1 }
 0x1dd   : > { %v6110_v1 = vadd.f32 %v6109_v46, %v6108_v12  ;;  %v6047_v14 = vpop.f32.mrf.mxu0 }
 0x1de   : > { %v4340_v29 = vadd.f32 %v6046_v53, %v8518_v19  ;;  %v6111_v24 = vpop.f32.mrf.mxu1 }
 0x1df   : > { %v6048_v18 = vpop.f32.mrf.mxu0 }
 0x1e0   : > { %v8567_v32 = vadd.f32 %v6110_v1, %v4340_v29  ;;  %v6049_v16 = vadd.f32 %v6048_v18, %v6047_v14  ;;  %v6112_v58 = vpop.f32.mrf.mxu1 }
 0x1e1   : > { %v6113_v6 = vadd.f32 %v6112_v58, %v6111_v24  ;;  %v6050_v30 = vpop.f32.mrf.mxu0 }
 0x1e2   : > { %v4345_v63 = vadd.f32 %v6049_v16, %v8522_v10  ;;  %v6114_v41 = vpop.f32.mrf.mxu1 }
 0x1e3   : > { %v6051_v44 = vpop.f32.mrf.mxu0 }
 0x1e4   : > { %v8570_v52 = vadd.f32 %v6113_v6, %v4345_v63  ;;  %v6052_v33 = vadd.f32 %v6051_v44, %v6050_v30  ;;  %v6115_v26 = vpop.f32.mrf.mxu1 }
 0x1e5   : > { %v6116_v54 = vadd.f32 %v6115_v26, %v6114_v41  ;;  %v6053_v60 = vpop.f32.mrf.mxu0 }
 0x1e6   : > { %8962 = vst [vmem:[#allocation5_spill] sm:$0xff] %v8570_v52  ;;  %v4348_v19 = vadd.f32 %v6052_v33, %v8525_v4  ;;  %v6117_v42 = vpop.f32.mrf.mxu1 }
 0x1e7   : > { %v6054_v37 = vpop.f32.mrf.mxu0 }
 0x1e8   : > { %v8573_v0 = vadd.f32 %v6116_v54, %v4348_v19  ;;  %v6055_v5 = vadd.f32 %v6054_v37, %v6053_v60  ;;  %v6118_v9 = vpop.f32.mrf.mxu1 }
 0x1e9   : > { %v6119_v40 = vadd.f32 %v6118_v9, %v6117_v42  ;;  %v6056_v15 = vpop.f32.mrf.mxu0 }
 0x1ea   : > { %8963 = vst [vmem:[#allocation6_spill] sm:$0xff] %v8573_v0  ;;  %v4353_v10 = vadd.f32 %v6055_v5, %v8528_v21  ;;  %v6120_v45 = vpop.f32.mrf.mxu1 }
 0x1eb   : > { %v6057_v20 = vpop.f32.mrf.mxu0 }
 0x1ec   : > { %v8576_v25 = vadd.f32 %v6119_v40, %v4353_v10  ;;  %v6058_v8 = vadd.f32 %v6057_v20, %v6056_v15  ;;  %v6121_v28 = vpop.f32.mrf.mxu1 }
 0x1ed   : > { %v6122_v57 = vadd.f32 %v6121_v28, %v6120_v45  ;;  %v6059_v3 = vpop.f32.mrf.mxu0 }
 0x1ee   : > { %8964 = vst [vmem:[#allocation7_spill] sm:$0xff] %v8576_v25  ;;  %v4356_v4 = vadd.f32 %v6058_v8, %v8531_v55  ;;  %v6123_v2 = vpop.f32.mrf.mxu1 }
 0x1ef   : > { %v6060_v43 = vpop.f32.mrf.mxu0 }
 0x1f0   : > { %v8579_v48 = vadd.f32 %v6122_v57, %v4356_v4  ;;  %v6061_v36 = vadd.f32 %v6060_v43, %v6059_v3  ;;  %v6124_v62 = vpop.f32.mrf.mxu1 }
 0x1f1   : > { %v6125_v50 = vadd.f32 %v6124_v62, %v6123_v2  ;;  %v6062_v23 = vpop.f32.mrf.mxu0 }
 0x1f2   : > { %8965 = vst [vmem:[#allocation8_spill] sm:$0xff] %v8579_v48  ;;  %v4361_v21 = vadd.f32 %v6061_v36, %v8534_v38  ;;  %v6126_v56 = vpop.f32.mrf.mxu1 }
 0x1f3   : > { %v6063_v31 = vpop.f32.mrf.mxu0 }
 0x1f4   : > { %v8582_v51 = vadd.f32 %v6125_v50, %v4361_v21  ;;  %v6064_v61 = vadd.f32 %v6063_v31, %v6062_v23  ;;  %v6127_v27 = vpop.f32.mrf.mxu1 }
 0x1f5   : > { %v6128_v12 = vadd.f32 %v6127_v27, %v6126_v56  ;;  %v6145_v13 = vpop.f32.mrf.mxu0 }
 0x1f6   : > { %8966 = vst [vmem:[#allocation9_spill] sm:$0xff] %v8582_v51  ;;  %v4364_v55 = vadd.f32 %v6064_v61, %v8537_v49  ;;  %v8585_v53 = vpop.f32.mrf.mxu1 }
 0x1f7   : > { %v6146_v46 = vpop.f32.mrf.mxu0 }
 0x1f8   : > { %v8587_v1 = vadd.f32 %v6128_v12, %v4364_v55  ;;  %v8589_v14 = vpop.f32.mrf.mxu1 }
 0x1f9   : > { %v6148_v29 = vpop.f32.mrf.mxu0 }
 0x1fa   : > { %8967 = vst [vmem:[#allocation10_spill] sm:$0xff] %v8587_v1  ;;  %v8591_v24 = vpop.f32.mrf.mxu1 }
 0x1fb   : > { %v6149_v38 = vpop.f32.mrf.mxu0 }
 0x1fc   : > { %v8593_v18 = vpop.f32.mrf.mxu1 }
 0x1fd   : > { %v8595_v16 = vpop.f32.mrf.mxu0 }
 0x1fe   : > { %v8597_v58 = vpop.f32.mrf.mxu1 }
 0x1ff   : > { %v8599_v6 = vpop.f32.mrf.mxu0 }
 0x200   : > { %v8601_v49 = vpop.f32.mrf.mxu1 }
 0x201   : > { %v8603_v30 = vpop.f32.mrf.mxu0 }
 0x202   : > { %v8605_v63 = vpop.f32.mrf.mxu1 }
 0x203   : > { %v8607_v41 = vpop.f32.mrf.mxu0 }
 0x204   : > { %v8609_v44 = vpop.f32.mrf.mxu1 }
 0x205   : > { %v8611_v33 = vpop.f32.mrf.mxu0 }
 0x206   : > { %v8613_v26 = vpop.f32.mrf.mxu1 }
 0x207   : > { %v8615_v54 = vpop.f32.mrf.mxu0 }
 0x208   : > { %v8617_v60 = vpop.f32.mrf.mxu1 }
 0x209   : > { %v8619_v19 = vpop.f32.mrf.mxu0 }
 0x20a   : > { %v8621_v42 = vpop.f32.mrf.mxu1 }
 0x20b   : > { %v8623_v37 = vpop.f32.mrf.mxu0 }
 0x20c   : > { %v8625_v5 = vpop.f32.mrf.mxu1 }
 0x20d   : > { %v8627_v9 = vpop.f32.mrf.mxu0 }
 0x20e   : > { %v8629_v40 = vpop.f32.mrf.mxu1 }
 0x20f   : > { %v8631_v15 = vpop.f32.mrf.mxu0 }
 0x210   : > { %v8633_v10 = vpop.f32.mrf.mxu1 }
 0x211   : > { %v8635_v45 = vpop.f32.mrf.mxu0 }
 0x212   : > { %v8637_v20 = vpop.f32.mrf.mxu1 }
 0x213   : > { %v8639_v8 = vpop.f32.mrf.mxu0 }
 0x214   : > { %v8641_v28 = vpop.f32.mrf.mxu1 }
 0x215   : > { %v8643_v57 = vpop.f32.mrf.mxu0 }
 0x216   : > { %v8645_v3 = vpop.f32.mrf.mxu1 }
 0x217   : > { %v8647_v4 = vpop.f32.mrf.mxu0 }
 0x218   : > { %v8649_v2 = vpop.f32.mrf.mxu1 }
 0x219   : > { %v8651_v43 = vpop.f32.mrf.mxu0 }
 0x21a   : > { %v8653_v36 = vpop.f32.mrf.mxu1 }
 0x21b   : > { %v8655_v62 = vpop.f32.mrf.mxu0 }
 0x21c   : > { %v8657_v50 = vpop.f32.mrf.mxu1 }
 0x21d   : > { %8968 = vst [vmem:[#allocation11_spill] sm:$0xff] %v8657_v50  ;;  %v8659_v23 = vpop.f32.mrf.mxu0 }
 0x21e   : > { %v8661_v21 = vpop.f32.mrf.mxu1 }
 0x21f   : > { %8969 = vst [vmem:[#allocation12_spill] sm:$0xff] %v8661_v21  ;;  %v8663_v56 = vpop.f32.mrf.mxu0 }
 0x220   : > { %v8665_v31 = vpop.f32.mrf.mxu1 }
 0x221   : > { %8970 = vst [vmem:[#allocation13_spill] sm:$0xff] %v8665_v31  ;;  %v8667_v61 = vpop.f32.mrf.mxu0 }
 0x222   : > { %8971 = vst [vmem:[#allocation14_spill] sm:$0xff] %v8667_v61  ;;  %v8669_v27 = vpop.f32.mrf.mxu1 }
 0x223   : > { %8972 = vst [vmem:[#allocation15_spill] sm:$0xff] %v8669_v27  ;;  %v8671_v12 = vpop.f32.mrf.mxu0 }
 0x224   : > { %8973 = vst [vmem:[#allocation16_spill] sm:$0xff] %v8671_v12  ;;  %v8673_v55 = vpop.f32.mrf.mxu1 }
 0x225   : > { %8974 = vst [vmem:[#allocation17_spill] sm:$0xff] %v8673_v55  ;;  %v8675_v1 = vpop.f32.mrf.mxu0 }
 0x226   : > { %8975 = vst [vmem:[#allocation18_spill] sm:$0xff] %v8675_v1  ;;  %v8677_v51 = vpop.f32.mrf.mxu1  ;;  %v6147_v1 = vadd.f32 %v6146_v46, %v6145_v13 }
 0x227   : > { %8976 = vst [vmem:[#allocation19_spill] sm:$0xff] %v8677_v51  ;;  %v8679_v48 = vpop.f32.mrf.mxu0 }
 0x228   : > { %8977 = vst [vmem:[#allocation20_spill] sm:$0xff] %v8679_v48  ;;  %v8681_v25 = vpop.f32.mrf.mxu1 }
 0x229   : > { %8978 = vst [vmem:[#allocation21_spill] sm:$0xff] %v8681_v25  ;;  %v8683_v0 = vpop.f32.mrf.mxu0 }
 0x22a   : > { %8979 = vst [vmem:[#allocation22_spill] sm:$0xff] %v8683_v0  ;;  %v8685_v21 = vpop.f32.mrf.mxu1  ;;  %v6150_v0 = vadd.f32 %v6149_v38, %v6148_v29  ;;  %v6214_v38 = vadd.f32 %v8593_v18, %v8591_v24 }
 0x22b   : > { %8980 = vst [vmem:[#allocation23_spill] sm:$0xff] %v8685_v21  ;;  %v8687_v31 = vpop.f32.mrf.mxu0  ;;  %v4499_v21 = vadd.f32 %v6147_v1, %v8540_v34 }
 0x22c   : > { %8981 = vst [vmem:[#allocation24_spill] sm:$0xff] %v8687_v31  ;;  %v8689_v61 = vpop.f32.mrf.mxu1  ;;  %v4502_v13 = vadd.f32 %v6150_v0, %v8543_v59  ;;  %v6156_v59 = vadd.f32 %v8607_v41, %v8603_v30 }
 0x22d   : > { %8982 = vst [vmem:[#allocation25_spill] sm:$0xff] %v8689_v61  ;;  %v8691_v27 = vpop.f32.mrf.mxu0 }
 0x22e   : > { %8983 = vst [vmem:[#allocation26_spill] sm:$0xff] %v8691_v27  ;;  %v8693_v12 = vpop.f32.mrf.mxu1  ;;  %v4510_v30 = vadd.f32 %v6156_v59, %v8549_v35  ;;  %v6162_v35 = vadd.f32 %v8623_v37, %v8619_v19  ;;  %v6165_v19 = vadd.f32 %v8631_v15, %v8627_v9 }
 0x22f   : > { %8984 = vst [vmem:[#allocation27_spill] sm:$0xff] %v8693_v12  ;;  %v8695_v55 = vpop.f32.mrf.mxu0  ;;  %v6211_v12 = vadd.f32 %v8589_v14, %v8585_v53 }
 0x230   : > { %8985 = vst [vmem:[#allocation28_spill] sm:$0xff] %v8695_v55  ;;  %v8697_v51 = vpop.f32.mrf.mxu1  ;;  %v4599_v55 = vadd.f32 %v6214_v38, %v4502_v13  ;;  %v4523_v15 = vadd.f32 %v6165_v19, %v8558_v7  ;;  %v6171_v7 = vadd.f32 %v8647_v4, %v8643_v57  ;;  %v6174_v57 = vadd.f32 %v8655_v62, %v8651_v43 }
 0x231   : > { %8986 = vst [vmem:[#allocation29_spill] sm:$0xff] %v8697_v51  ;;  %v8699_v48 = vpop.f32.mrf.mxu0  ;;  %v4596_v51 = vadd.f32 %v6211_v12, %v4499_v21 }
 0x232   : > { %8987 = vst [vmem:[#allocation30_spill] sm:$0xff] %v8699_v48  ;;  %v8701_v25 = vpop.f32.mrf.mxu1  ;;  %v6153_v48 = vadd.f32 %v8599_v6, %v8595_v16  ;;  %v6217_v6 = vadd.f32 %v8601_v49, %v8597_v58  ;;  %v4534_v62 = vadd.f32 %v6174_v57, %v8567_v32  ;;  %v8993_v32 = vld [vmem:[#allocation14_spill] sm:$0xff] }
 0x233   : > { %8988 = vst [vmem:[#allocation31_spill] sm:$0xff] %v8701_v25  ;;  %v8703_v52 = vpop.f32.mrf.mxu0 }
 0x234   : > { %8989 = vst [vmem:[#allocation32_spill] sm:$0xff] %v8703_v52  ;;  %v8706_v31 = vpop.f32.mrf.mxu1  ;;  %v4507_v53 = vadd.f32 %v6153_v48, %v8546_v47  ;;  %v6159_v47 = vadd.f32 %v8615_v54, %v8611_v33 }
 0x235   : > { %8990 = vst [vmem:[#allocation33_spill] sm:$0xff] %v8706_v31  ;;  %v6273_v61 = vpop.f32.mrf.mxu0 }
 0x236   : > { %v6337_v27 = vpop.f32.mrf.mxu1  ;;  %v4515_v33 = vadd.f32 %v6159_v47, %v8552_v11 }
 0x237   : > { %v6274_v46 = vpop.f32.mrf.mxu0 }
 0x238   : > { %v6275_v25 = vadd.f32 %v6274_v46, %v6273_v61  ;;  %v6338_v29 = vpop.f32.mrf.mxu1  ;;  %v4604_v61 = vadd.f32 %v6217_v6, %v4507_v53 }
 0x239   : > { %v6276_v34 = vpop.f32.mrf.mxu0  ;;  %v6339_v31 = vadd.f32 %v6338_v29, %v6337_v27 }
 0x23a   : > { %v4693_v1 = vadd.f32 %v6275_v25, %v4596_v51  ;;  %v6340_v52 = vpop.f32.mrf.mxu1 }
 0x23b   : > { %v6277_v50 = vpop.f32.mrf.mxu0 }
 0x23c   : > { %v6278_v0 = vadd.f32 %v6277_v50, %v6276_v34  ;;  %v6341_v14 = vpop.f32.mrf.mxu1  ;;  %v8718_v21 = vadd.f32 %v6339_v31, %v4693_v1 }
 0x23d   : > { %v6279_v16 = vpop.f32.mrf.mxu0  ;;  %v6342_v18 = vadd.f32 %v6341_v14, %v6340_v52  ;;  %v6220_v52 = vadd.f32 %v8609_v44, %v8605_v63  ;;  %v6223_v63 = vadd.f32 %v8617_v60, %v8613_v26  ;;  %v4518_v14 = vadd.f32 %v6162_v35, %v8555_v17 }
 0x23e   : > { %v4696_v24 = vadd.f32 %v6278_v0, %v4599_v55  ;;  %v6343_v25 = vpop.f32.mrf.mxu1  ;;  %v4852_v51 = vmul.f32 %v8718_v21, %v8718_v21  ;;  %v6226_v60 = vadd.f32 %v8625_v5, %v8621_v42  ;;  %v6168_v17 = vadd.f32 %v8639_v8, %v8635_v45 }
 0x23f   : > { %v6280_v48 = vpop.f32.mrf.mxu0  ;;  %v4607_v13 = vadd.f32 %v6220_v52, %v4510_v30  ;;  %v4612_v59 = vadd.f32 %v6223_v63, %v4515_v33  ;;  %v6229_v42 = vadd.f32 %v8633_v10, %v8629_v40  ;;  %v6232_v40 = vadd.f32 %v8641_v28, %v8637_v20 }
 0x240   : > { %v8727_v41 = vadd.f32 %v6342_v18, %v4696_v24  ;;  %v6281_v50 = vadd.f32 %v6280_v48, %v6279_v16  ;;  %v6344_v31 = vpop.f32.mrf.mxu1  ;;  %4868 = vadd.xlane.f32.xlu0 %v4852_v51  ;;  %v4615_v9 = vadd.f32 %v6226_v60, %v4518_v14  ;;  %v4526_v45 = vadd.f32 %v6168_v17, %v8561_v39 }
 0x241   : > { %v6282_v27 = vpop.f32.mrf.mxu0  ;;  %v6345_v49 = vadd.f32 %v6344_v31, %v6343_v25  ;;  %v6235_v28 = vadd.f32 %v8649_v2, %v8645_v3  ;;  %v8991_v3 = vld [vmem:[#allocation11_spill] sm:$0xff] }
 0x242   : > { %v4701_v58 = vadd.f32 %v6281_v50, %v4604_v61  ;;  %v6346_v12 = vpop.f32.mrf.mxu1  ;;  %v4853_v55 = vmul.f32 %v8727_v41, %v8727_v41  ;;  %v4623_v35 = vadd.f32 %v6232_v40, %v4526_v45  ;;  %v6238_v2 = vadd.f32 %v8991_v3, %v8653_v36  ;;  %v8996_v36 = vld [vmem:[#allocation13_spill] sm:$0xff] }
 0x243   : > { %v6283_v54 = vpop.f32.mrf.mxu0 }
 0x244   : > { %v6284_v46 = vadd.f32 %v6283_v54, %v6282_v27  ;;  %v6347_v29 = vpop.f32.mrf.mxu1  ;;  %4870 = vadd.xlane.f32.xlu0 %v4853_v55  ;;  %v8736_v38 = vadd.f32 %v6345_v49, %v4701_v58  ;;  %v4620_v58 = vadd.f32 %v6229_v42, %v4523_v15 }
 0x245   : > { %v6285_v44 = vpop.f32.mrf.mxu0  ;;  %v6348_v1 = vadd.f32 %v6347_v29, %v6346_v12  ;;  %v4531_v29 = vadd.f32 %v6171_v7, %v8564_v22  ;;  %v6177_v22 = vadd.f32 %v8663_v56, %v8659_v23  ;;  %v8992_v23 = vld [vmem:[#allocation5_spill] sm:$0xff]  ;;  %v8998_v7 = vld [vmem:[#allocation18_spill] sm:$0xff] }
 0x246   : > { %v4704_v34 = vadd.f32 %v6284_v46, %v4607_v13  ;;  %v6349_v53 = vpop.f32.mrf.mxu1  ;;  %v4854_v11 = vmul.f32 %v8736_v38, %v8736_v38 }
 0x247   : > { %v6286_v0 = vpop.f32.mrf.mxu0  ;;  %v4628_v43 = vadd.f32 %v6235_v28, %v4531_v29  ;;  %v4539_v56 = vadd.f32 %v6177_v22, %v8992_v23 }
 0x248   : > { %v8745_v37 = vadd.f32 %v6348_v1, %v4704_v34  ;;  %v6287_v16 = vadd.f32 %v6286_v0, %v6285_v44  ;;  %v6350_v6 = vpop.f32.mrf.mxu1  ;;  %4872 = vadd.xlane.f32.xlu1 %v4854_v11 }
 0x249   : > { %v6288_v26 = vpop.f32.mrf.mxu0  ;;  %v6351_v18 = vadd.f32 %v6350_v6, %v6349_v53 }
 0x24a   : > { %v4709_v24 = vadd.f32 %v6287_v16, %v4612_v59  ;;  %v6352_v25 = vpop.f32.mrf.mxu1  ;;  %v4855_v51 = vmul.f32 %v8745_v37, %v8745_v37 }
 0x24b   : > { %v6289_v47 = vpop.f32.mrf.mxu0 }
 0x24c   : > { %v8754_v48 = vadd.f32 %v6351_v18, %v4709_v24  ;;  %v6290_v61 = vadd.f32 %v6289_v47, %v6288_v26  ;;  %v6353_v30 = vpop.f32.mrf.mxu1  ;;  %4874 = vadd.xlane.f32.xlu1 %v4855_v51  ;;  %v8994_v51 = vld [vmem:[#allocation16_spill] sm:$0xff] }
 0x24d   : > { %v6291_v50 = vpop.f32.mrf.mxu0  ;;  %v6354_v31 = vadd.f32 %v6353_v30, %v6352_v25  ;;  %v4631_v25 = vadd.f32 %v6238_v2, %v4534_v62  ;;  %v6180_v17 = vadd.f32 %v8994_v51, %v8993_v32 }
 0x24e   : > { %v4712_v5 = vadd.f32 %v6290_v61, %v4615_v9  ;;  %v6355_v27 = vpop.f32.mrf.mxu1  ;;  %v4856_v52 = vmul.f32 %v8754_v48, %v8754_v48  ;;  %v8995_v61 = vld [vmem:[#allocation12_spill] sm:$0xff] }
 0x24f   : > { %v6292_v8 = vpop.f32.mrf.mxu0  ;;  %v6241_v30 = vadd.f32 %v8996_v36, %v8995_v61  ;;  %v9011_v61 = vld [vmem:[#allocation25_spill] sm:$0xff] }
 0x250   : > { %v8763_v49 = vadd.f32 %v6354_v31, %v4712_v5  ;;  %v6293_v12 = vadd.f32 %v6292_v8, %v6291_v50  ;;  %v6356_v55 = vpop.f32.mrf.mxu1  ;;  %4876 = vadd.xlane.f32.xlu0 %v4856_v52  ;;  %v8997_v8 = vld [vmem:[#allocation6_spill] sm:$0xff] }
 0x251   : > { %v6294_v10 = vpop.f32.mrf.mxu0  ;;  %v6357_v54 = vadd.f32 %v6356_v55, %v6355_v27  ;;  %v4636_v52 = vadd.f32 %v6241_v30, %v4539_v56 }
 0x252   : > { %v4717_v33 = vadd.f32 %v6293_v12, %v4620_v58  ;;  %v6358_v13 = vpop.f32.mrf.mxu1  ;;  %v4857_v39 = vmul.f32 %v8763_v49, %v8763_v49  ;;  %v4542_v58 = vadd.f32 %v6180_v17, %v8997_v8  ;;  %v8999_v12 = vld [vmem:[#allocation20_spill] sm:$0xff] }
 0x253   : > { %v6295_v46 = vpop.f32.mrf.mxu0  ;;  %v6183_v55 = vadd.f32 %v8999_v12, %v8998_v7  ;;  %v9014_v7 = vld [vmem:[#allocation32_spill] sm:$0xff] }
 0x254   : > { %v8772_v4 = vadd.f32 %v6357_v54, %v4717_v33  ;;  %v6296_v63 = vadd.f32 %v6295_v46, %v6294_v10  ;;  %v6359_v44 = vpop.f32.mrf.mxu1  ;;  %4878 = vadd.xlane.f32.xlu1 %v4857_v39  ;;  %v9001_v39 = vld [vmem:[#allocation17_spill] sm:$0xff] }
 0x255   : > { %v6297_v20 = vpop.f32.mrf.mxu0  ;;  %v6360_v1 = vadd.f32 %v6359_v44, %v6358_v13  ;;  %v9000_v13 = vld [vmem:[#allocation15_spill] sm:$0xff]  ;;  %v9002_v44 = vld [vmem:[#allocation22_spill] sm:$0xff] }
 0x256   : > { %v4720_v34 = vadd.f32 %v6296_v63, %v4623_v35  ;;  %v6361_v53 = vpop.f32.mrf.mxu1  ;;  %v4858_v11 = vmul.f32 %v8772_v4, %v8772_v4  ;;  %v6244_v35 = vadd.f32 %v9001_v39, %v9000_v13  ;;  %v9015_v13 = vld [vmem:[#allocation27_spill] sm:$0xff]  ;;  %v9016_v39 = vld [vmem:[#allocation29_spill] sm:$0xff] }
 0x257   : > { %v6298_v59 = vpop.f32.mrf.mxu0 }
 0x258   : > { %v8781_v0 = vadd.f32 %v6360_v1, %v4720_v34  ;;  %v6299_v14 = vadd.f32 %v6298_v59, %v6297_v20  ;;  %v6362_v19 = vpop.f32.mrf.mxu1  ;;  %4880 = vadd.xlane.f32.xlu0 %v4858_v11  ;;  %v9003_v20 = vld [vmem:[#allocation24_spill] sm:$0xff]  ;;  %v4639_v1 = vadd.f32 %v6244_v35, %v4542_v58  ;;  %v9013_v58 = vld [vmem:[#allocation30_spill] sm:$0xff]  ;;  %v6253_v35 = vadd.f32 %v9016_v39, %v9015_v13 }
 0x259   : > { %v6300_v16 = vpop.f32.mrf.mxu0  ;;  %v6363_v26 = vadd.f32 %v6362_v19, %v6361_v53  ;;  %v6186_v28 = vadd.f32 %v9003_v20, %v9002_v44  ;;  %v9004_v53 = vld [vmem:[#allocation7_spill] sm:$0xff]  ;;  %v9006_v19 = vld [vmem:[#allocation21_spill] sm:$0xff]  ;;  %v6192_v12 = vadd.f32 %v9014_v7, %v9013_v58 }
 0x25a   : > { %v4725_v6 = vadd.f32 %v6299_v14, %v4628_v43  ;;  %v6364_v60 = vpop.f32.mrf.mxu1  ;;  %v4859_v24 = vmul.f32 %v8781_v0, %v8781_v0  ;;  %v4547_v11 = vadd.f32 %v6183_v55, %v9004_v53  ;;  %v9005_v14 = vld [vmem:[#allocation19_spill] sm:$0xff] }
 0x25b   : > { %v6301_v18 = vpop.f32.mrf.mxu0 }
 0x25c   : > { %v8790_v47 = vadd.f32 %v6363_v26, %v4725_v6  ;;  %v6302_v9 = vadd.f32 %v6301_v18, %v6300_v16  ;;  %v6365_v15 = vpop.f32.mrf.mxu1  ;;  %4882 = vadd.xlane.f32.xlu1 %v4859_v24  ;;  %v6247_v16 = vadd.f32 %v9006_v19, %v9005_v14  ;;  %v9008_v18 = vld [vmem:[#allocation26_spill] sm:$0xff] }
 0x25d   : > { %v6303_v50 = vpop.f32.mrf.mxu0  ;;  %v6366_v5 = vadd.f32 %v6365_v15, %v6364_v60  ;;  %v9007_v60 = vld [vmem:[#allocation8_spill] sm:$0xff]  ;;  %v9010_v15 = vld [vmem:[#allocation23_spill] sm:$0xff] }
 0x25e   : > { %v4728_v42 = vadd.f32 %v6302_v9, %v4631_v25  ;;  %v6367_v31 = vpop.f32.mrf.mxu1  ;;  %v4860_v27 = vmul.f32 %v8790_v47, %v8790_v47  ;;  %v4550_v24 = vadd.f32 %v6186_v28, %v9007_v60  ;;  %v4644_v56 = vadd.f32 %v6247_v16, %v4547_v11  ;;  %v9009_v25 = vld [vmem:[#allocation28_spill] sm:$0xff]  ;;  %v9017_v28 = vld [vmem:[#allocation10_spill] sm:$0xff] }
 0x25f   : > { %v6304_v45 = vpop.f32.mrf.mxu0  ;;  %v6189_v32 = vadd.f32 %v9009_v25, %v9008_v18  ;;  %v6250_v36 = vadd.f32 %v9011_v61, %v9010_v15 }
 0x260   : > { %v8799_v40 = vadd.f32 %v6366_v5, %v4728_v42  ;;  %v6305_v10 = vadd.f32 %v6304_v45, %v6303_v50  ;;  %v6368_v33 = vpop.f32.mrf.mxu1  ;;  %4884 = vadd.xlane.f32.xlu0 %v4860_v27  ;;  %v9012_v45 = vld [vmem:[#allocation9_spill] sm:$0xff] }
 0x261   : > { %v6306_v54 = vpop.f32.mrf.mxu0  ;;  %v6369_v29 = vadd.f32 %v6368_v33, %v6367_v31  ;;  %v4647_v27 = vadd.f32 %v6250_v36, %v4550_v24  ;;  %v4555_v8 = vadd.f32 %v6189_v32, %v9012_v45 }
 0x262   : > { %v4733_v46 = vadd.f32 %v6305_v10, %v4636_v52  ;;  %v6370_v57 = vpop.f32.mrf.mxu1  ;;  %v4861_v63 = vmul.f32 %v8799_v40, %v8799_v40 }
 0x263   : > { %v6307_v34 = vpop.f32.mrf.mxu0  ;;  %v4652_v20 = vadd.f32 %v6253_v35, %v4555_v8 }
 0x264   : > { %v8808_v22 = vadd.f32 %v6369_v29, %v4733_v46  ;;  %v6308_v59 = vadd.f32 %v6307_v34, %v6306_v54  ;;  %v6371_v43 = vpop.f32.mrf.mxu1  ;;  %4886 = vadd.xlane.f32.xlu1 %v4861_v63  ;;  %v4558_v34 = vadd.f32 %v6192_v12, %v9017_v28 }
 0x265   : > { %v6309_v62 = vpop.f32.mrf.mxu0  ;;  %v6372_v2 = vadd.f32 %v6371_v43, %v6370_v57  ;;  %v9018_v43 = vld [vmem:[#allocation31_spill] sm:$0xff] }
 0x266   : > { %v4736_v3 = vadd.f32 %v6308_v59, %v4639_v1  ;;  %v6373_v6 = vpop.f32.mrf.mxu1  ;;  %v4862_v26 = vmul.f32 %v8808_v22, %v8808_v22 }
 0x267   : > { %v6310_v23 = vpop.f32.mrf.mxu0 }
 0x268   : > { %v8817_v51 = vadd.f32 %v6372_v2, %v4736_v3  ;;  %v6311_v17 = vadd.f32 %v6310_v23, %v6309_v62  ;;  %v6374_v9 = vpop.f32.mrf.mxu1  ;;  %4888 = vadd.xlane.f32.xlu0 %v4862_v26  ;;  %v9019_v62 = vld [vmem:[#allocation33_spill] sm:$0xff] }
 0x269   : > { %v6312_v30 = vpop.f32.mrf.mxu0  ;;  %v6375_v42 = vadd.f32 %v6374_v9, %v6373_v6  ;;  %v6256_v14 = vadd.f32 %v9019_v62, %v9018_v43 }
 0x26a   : > { %v4741_v50 = vadd.f32 %v6311_v17, %v4644_v56  ;;  %v6376_v5 = vpop.f32.mrf.mxu1  ;;  %v4863_v31 = vmul.f32 %v8817_v51, %v8817_v51 }
 0x26b   : > { %v6313_v52 = vpop.f32.mrf.mxu0  ;;  %v4655_v26 = vadd.f32 %v6256_v14, %v4558_v34 }
 0x26c   : > { %v8826_v55 = vadd.f32 %v6375_v42, %v4741_v50  ;;  %v6314_v10 = vadd.f32 %v6313_v52, %v6312_v30  ;;  %v6377_v33 = vpop.f32.mrf.mxu1  ;;  %4890 = vadd.xlane.f32.xlu1 %v4863_v31  ;;  %v4948_v52 = vld [vmem:[%s8851_s13] sm:$0xff] }
 0x26d   : > { %v6315_v54 = vpop.f32.mrf.mxu0  ;;  %v6378_v29 = vadd.f32 %v6377_v33, %v6376_v5 }
 0x26e   : > { %v4744_v46 = vadd.f32 %v6314_v10, %v4647_v27  ;;  %v6379_v57 = vpop.f32.mrf.mxu1  ;;  %v4864_v63 = vmul.f32 %v8826_v55, %v8826_v55  ;;  %v4949_v10 = vld [vmem:[%s8851_s13 + $0x8] sm:$0xff] }
 0x26f   : > { %v6316_v44 = vpop.f32.mrf.mxu0 }
 0x270   : > { %v8833_v1 = vadd.f32 %v6378_v29, %v4744_v46  ;;  %v6317_v53 = vadd.f32 %v6316_v44, %v6315_v54  ;;  %v6380_v11 = vpop.f32.mrf.mxu1  ;;  %4892 = vadd.xlane.f32.xlu0 %v4864_v63  ;;  %v4950_v46 = vld [vmem:[%s8851_s13 + $0x10] sm:$0xff] }
 0x271   : > { %v6318_v59 = vpop.f32.mrf.mxu0  ;;  %v6381_v16 = vadd.f32 %v6380_v11, %v6379_v57 }
 0x272   : > { %v4749_v19 = vadd.f32 %v6317_v53, %v4652_v20  ;;  %v6382_v3 = vpop.f32.mrf.mxu1  ;;  %v4865_v2 = vmul.f32 %v8833_v1, %v8833_v1  ;;  %v4951_v20 = vld [vmem:[%s8851_s13 + $0x18] sm:$0xff] }
 0x273   : > { %v6319_v6 = vpop.f32.mrf.mxu0 }
 0x274   : > { %v8839_v60 = vadd.f32 %v6381_v16, %v4749_v19  ;;  %v6320_v24 = vadd.f32 %v6319_v6, %v6318_v59  ;;  %v6383_v23 = vpop.f32.mrf.mxu1  ;;  %4894 = vadd.xlane.f32.xlu1 %v4865_v2  ;;  %v4952_v59 = vld [vmem:[%s8851_s13 + $0x20] sm:$0xff]  ;;  %v4953_v16 = vld [vmem:[%s8851_s13 + $0x28] sm:$0xff] }
 0x275   : > { %v6384_v18 = vadd.f32 %v6383_v23, %v6382_v3 }
 0x276   : > { %v4752_v56 = vadd.f32 %v6320_v24, %v4655_v26  ;;  %v4866_v25 = vmul.f32 %v8839_v60, %v8839_v60  ;;  %v4954_v24 = vld [vmem:[%s8851_s13 + $0x30] sm:$0xff] }
 0x278   : > { %v8843_v32 = vadd.f32 %v6384_v18, %v4752_v56  ;;  %4896 = vadd.xlane.f32.xlu0 %v4866_v25 }
 0x27a   : > { %v4867_v17 = vmul.f32 %v8843_v32, %v8843_v32 }
 0x27c   : > { %4898 = vadd.xlane.f32.xlu1 %v4867_v17  ;;  %v4955_v17 = vld [vmem:[%s8851_s13 + $0x38] sm:$0xff] }
 0x2c9   : > { %v4869_v9 = vpop.xlane.xlu0 %4868 }
 0x2ca   : > { %v4900_v15 = vadd.f32 1e-12, %v4869_v9 }
 0x2cc   : > { %6619 = vrsqrt.f32 %v4900_v15 }
 0x2cd   : > { %v4871_v61 = vpop.xlane.xlu0 %4870 }
 0x2ce   : > { %v4901_v36 = vadd.f32 1e-12, %v4871_v61 }
 0x2d0   : > { %6621 = vrsqrt.f32 %v4901_v36 }
 0x2d1   : > { %v4873_v30 = vpop.xlane.xlu1 %4872 }
 0x2d2   : > { %v4902_v50 = vadd.f32 1e-12, %v4873_v30  ;;  %v4956_v30 = vld [vmem:[%s8851_s13 + $0x40] sm:$0xff] }
 0x2d4   : > { %6623 = vrsqrt.f32 %v4902_v50 }
 0x2d5   : > { %v4875_v42 = vpop.xlane.xlu1 %4874 }
 0x2d6   : > { %v4903_v5 = vadd.f32 1e-12, %v4875_v42 }
 0x2d8   : > { %6625 = vrsqrt.f32 %v4903_v5 }
 0x2d9   : > { %v6620_v31 = vpop.eup %6619  ;;  %v4877_v27 = vpop.xlane.xlu0 %4876 }
 0x2da   : > { %v4904_v45 = vadd.f32 1e-12, %v4877_v27  ;;  %v4932_v8 = vmul.f32 %v6620_v31, %v8718_v21  ;;  %v4957_v27 = vld [vmem:[%s8851_s13 + $0x48] sm:$0xff] }
 0x2dc   : > { %6627 = vrsqrt.f32 %v4904_v45  ;;  %v4964_v58 = vmul.f32 %v4948_v52, %v4932_v8 }
 0x2dd   : > { %v6622_v7 = vpop.eup %6621  ;;  %v4879_v12 = vpop.xlane.xlu1 %4878 }
 0x2de   : > { %v4905_v33 = vadd.f32 1e-12, %v4879_v12  ;;  %4980 = vadd.xlane.f32.xlu0 %v4964_v58  ;;  %v4933_v54 = vmul.f32 %v6622_v7, %v8727_v41  ;;  %v4958_v7 = vld [vmem:[%s8851_s13 + $0x50] sm:$0xff] }
 0x2e0   : > { %6629 = vrsqrt.f32 %v4905_v33  ;;  %v4965_v13 = vmul.f32 %v4949_v10, %v4933_v54 }
 0x2e1   : > { %v6624_v39 = vpop.eup %6623  ;;  %v4881_v35 = vpop.xlane.xlu0 %4880 }
 0x2e2   : > { %v4906_v29 = vadd.f32 1e-12, %v4881_v35  ;;  %4982 = vadd.xlane.f32.xlu1 %v4965_v13  ;;  %v4934_v21 = vmul.f32 %v6624_v39, %v8736_v38  ;;  %v4959_v13 = vld [vmem:[%s8851_s13 + $0x58] sm:$0xff] }
 0x2e4   : > { %6631 = vrsqrt.f32 %v4906_v29  ;;  %v4966_v57 = vmul.f32 %v4950_v46, %v4934_v21  ;;  %v4960_v29 = vld [vmem:[%s8851_s13 + $0x60] sm:$0xff] }
 0x2e5   : > { %v6626_v63 = vpop.eup %6625  ;;  %v4883_v44 = vpop.xlane.xlu1 %4882 }
 0x2e6   : > { %v4907_v28 = vadd.f32 1e-12, %v4883_v44  ;;  %4984 = vadd.xlane.f32.xlu0 %v4966_v57  ;;  %v4935_v41 = vmul.f32 %v6626_v63, %v8745_v37  ;;  %v4961_v63 = vld [vmem:[%s8851_s13 + $0x68] sm:$0xff] }
 0x2e8   : > { %6633 = vrsqrt.f32 %v4907_v28  ;;  %v4967_v34 = vmul.f32 %v4951_v20, %v4935_v41  ;;  %v4962_v41 = vld [vmem:[%s8851_s13 + $0x70] sm:$0xff] }
 0x2e9   : > { %v6628_v53 = vpop.eup %6627  ;;  %v4885_v11 = vpop.xlane.xlu0 %4884 }
 0x2ea   : > { %v4908_v43 = vadd.f32 1e-12, %v4885_v11  ;;  %4986 = vadd.xlane.f32.xlu1 %v4967_v34  ;;  %v4936_v38 = vmul.f32 %v6628_v53, %v8754_v48  ;;  %v4963_v11 = vld [vmem:[%s8851_s13 + $0x78] sm:$0xff] }
 0x2ec   : > { %6635 = vrsqrt.f32 %v4908_v43  ;;  %v4968_v62 = vmul.f32 %v4952_v59, %v4936_v38 }
 0x2ed   : > { %v6630_v14 = vpop.eup %6629  ;;  %v4887_v19 = vpop.xlane.xlu1 %4886 }
 0x2ee   : > { %v4909_v3 = vadd.f32 1e-12, %v4887_v19  ;;  %4988 = vadd.xlane.f32.xlu0 %v4968_v62  ;;  %v4937_v37 = vmul.f32 %v6630_v14, %v8763_v49  ;;  %v5028_v62 = vlaneseq }
 0x2f0   : > { %6637 = vrsqrt.f32 %v4909_v3  ;;  %v4969_v2 = vmul.f32 %v4953_v16, %v4937_v37 }
 0x2f1   : > { %v6632_v6 = vpop.eup %6631  ;;  %v4889_v26 = vpop.xlane.xlu0 %4888 }
 0x2f2   : > { %v4910_v23 = vadd.f32 1e-12, %v4889_v26  ;;  %4990 = vadd.xlane.f32.xlu1 %v4969_v2  ;;  %v4938_v48 = vmul.f32 %v6632_v6, %v8772_v4  ;;  %v8885_v6 = vshrl.u32 %v5028_v62, 7 }
 0x2f4   : > { %6639 = vrsqrt.f32 %v4910_v23  ;;  %v4970_v56 = vmul.f32 %v4954_v24, %v4938_v48 }
 0x2f5   : > { %v6634_v18 = vpop.eup %6633  ;;  %v4891_v25 = vpop.xlane.xlu1 %4890 }
 0x2f6   : > { %v4911_v9 = vadd.f32 1e-12, %v4891_v25  ;;  %4992 = vadd.xlane.f32.xlu0 %v4970_v56  ;;  %v4939_v49 = vmul.f32 %v6634_v18, %v8781_v0 }
 0x2f8   : > { %6641 = vrsqrt.f32 %v4911_v9  ;;  %v4971_v15 = vmul.f32 %v4955_v17, %v4939_v49 }
 0x2f9   : > { %v6636_v61 = vpop.eup %6635  ;;  %v4893_v36 = vpop.xlane.xlu0 %4892 }
 0x2fa   : > { %v4912_v50 = vadd.f32 1e-12, %v4893_v36  ;;  %4994 = vadd.xlane.f32.xlu1 %v4971_v15  ;;  %v4940_v4 = vmul.f32 %v6636_v61, %v8790_v47 }
 0x2fc   : > { %6643 = vrsqrt.f32 %v4912_v50  ;;  %v4972_v42 = vmul.f32 %v4956_v30, %v4940_v4 }
 0x2fd   : > { %v6638_v5 = vpop.eup %6637  ;;  %v4895_v31 = vpop.xlane.xlu1 %4894 }
 0x2fe   : > { %v4913_v52 = vadd.f32 1e-12, %v4895_v31  ;;  %4996 = vadd.xlane.f32.xlu0 %v4972_v42  ;;  %v4941_v0 = vmul.f32 %v6638_v5, %v8799_v40 }
 0x300   : > { %6645 = vrsqrt.f32 %v4913_v52  ;;  %v4973_v45 = vmul.f32 %v4957_v27, %v4941_v0 }
 0x301   : > { %v6640_v8 = vpop.eup %6639  ;;  %v4897_v58 = vpop.xlane.xlu0 %4896 }
 0x302   : > { %v4914_v12 = vadd.f32 1e-12, %v4897_v58  ;;  %4998 = vadd.xlane.f32.xlu1 %v4973_v45  ;;  %v4942_v47 = vmul.f32 %v6640_v8, %v8808_v22 }
 0x304   : > { %6647 = vrsqrt.f32 %v4914_v12  ;;  %v4974_v10 = vmul.f32 %v4958_v7, %v4942_v47 }
 0x305   : > { %v6642_v33 = vpop.eup %6641  ;;  %v4899_v54 = vpop.xlane.xlu1 %4898 }
 0x306   : > { %v4915_v39 = vadd.f32 1e-12, %v4899_v54  ;;  %5000 = vadd.xlane.f32.xlu0 %v4974_v10  ;;  %v4943_v40 = vmul.f32 %v6642_v33, %v8817_v51 }
 0x308   : > { %6649 = vrsqrt.f32 %v4915_v39  ;;  %v4975_v35 = vmul.f32 %v4959_v13, %v4943_v40 }
 0x309   : > { %v6644_v46 = vpop.eup %6643 }
 0x30a   : > { %5002 = vadd.xlane.f32.xlu1 %v4975_v35  ;;  %v4944_v21 = vmul.f32 %v6644_v46, %v8826_v55 }
 0x30c   : > { %v4976_v22 = vmul.f32 %v4960_v29, %v4944_v21 }
 0x30d   : > { %v6646_v57 = vpop.eup %6645 }
 0x30e   : > { %5004 = vadd.xlane.f32.xlu0 %v4976_v22  ;;  %v4945_v44 = vmul.f32 %v6646_v57, %v8833_v1  ;;  %v5029_v1 = vand.u32 127, %v5028_v62 }
 0x310   : > { %v4977_v20 = vmul.f32 %v4961_v63, %v4945_v44  ;;  %v5034_v3 = vadd.s32 4294967288, %v5029_v1  ;;  %v5041_v37 = vadd.s32 4294967280, %v5029_v1  ;;  %v5055_v26 = vadd.s32 4294967264, %v5029_v1 }
 0x311   : > { %v6648_v28 = vpop.eup %6647  ;;  %v5069_v56 = vadd.s32 4294967248, %v5029_v1  ;;  %v5032_v25 = vsub.s32 %v5029_v1, %v8885_v6  ;;  %v5076_v9 = vadd.s32 4294967240, %v5029_v1  ;;  %v5083_v15 = vadd.s32 4294967232, %v5029_v1 }
 0x312   : > { %5006 = vadd.xlane.f32.xlu1 %v4977_v20  ;;  %v4946_v51 = vmul.f32 %v6648_v28, %v8839_v60  ;;  %v5048_v60 = vadd.s32 4294967272, %v5029_v1  ;;  %v5037_v23 = vsub.s32 %v5034_v3, %v8885_v6  ;;  %v5044_v48 = vsub.s32 %v5041_v37, %v8885_v6 }
 0x313   : > { %v5058_v49 = vsub.s32 %v5055_v26, %v8885_v6  ;;  %v5090_v50 = vadd.s32 4294967224, %v5029_v1  ;;  %v5072_v42 = vsub.s32 %v5069_v56, %v8885_v6  ;;  %v5097_v31 = vadd.s32 4294967216, %v5029_v1 }
 0x314   : > { %v4978_v34 = vmul.f32 %v4962_v41, %v4946_v51  ;;  %v5051_v17 = vsub.s32 %v5048_v60, %v8885_v6  ;;  %v5079_v0 = vsub.s32 %v5076_v9, %v8885_v6  ;;  %v5104_v45 = vadd.s32 4294967208, %v5029_v1 }
 0x315   : > { %v6650_v53 = vpop.eup %6649  ;;  %v5086_v58 = vsub.s32 %v5083_v15, %v8885_v6  ;;  %v5111_v12 = vadd.s32 4294967200, %v5029_v1  ;;  %v5093_v33 = vsub.s32 %v5090_v50, %v8885_v6  ;;  %v5118_v54 = vadd.s32 4294967192, %v5029_v1 }
 0x316   : > { %5008 = vadd.xlane.f32.xlu0 %v4978_v34  ;;  %v4947_v59 = vmul.f32 %v6650_v53, %v8843_v32  ;;  %v5062_v32 = vadd.s32 4294967256, %v5029_v1  ;;  %v5100_v40 = vsub.s32 %v5097_v31, %v8885_v6  ;;  %v5125_v46 = vadd.s32 4294967184, %v5029_v1 }
 0x317   : > { %v5107_v22 = vsub.s32 %v5104_v45, %v8885_v6  ;;  %v5114_v44 = vsub.s32 %v5111_v12, %v8885_v6  ;;  %v5121_v51 = vsub.s32 %v5118_v54, %v8885_v6  ;;  %v5132_v34 = vadd.s32 4294967176, %v5029_v1 }
 0x318   : > { %v4979_v43 = vmul.f32 %v4963_v11, %v4947_v59  ;;  %v5065_v30 = vsub.s32 %v5062_v32, %v8885_v6 }
 0x319   : > { %v5135_v3 = vsub.s32 %v5132_v34, %v8885_v6 }
 0x31a   : > { %5010 = vadd.xlane.f32.xlu1 %v4979_v43  ;;  %v5128_v43 = vsub.s32 %v5125_v46, %v8885_v6 }
 0x367   : > { %v4981_v55 = vpop.xlane.xlu0 %4980 }
 0x368   : > { %v5033_v27 = vrot.slane %v4981_v55, %v5032_v25 }
 0x36b   : > { %v4983_v38 = vpop.xlane.xlu1 %4982 }
 0x36c   : > { %v5038_v36 = vrot.slane %v4983_v38, %v5037_v23 }
 0x36e   : > { %v5040_v47 = vsel %vm5039_vm0, %v5038_v36, %v5033_v27 }
 0x36f   : > { %v4985_v14 = vpop.xlane.xlu0 %4984 }
 0x370   : > { %v5045_v4 = vrot.slane %v4985_v14, %v5044_v48 }
 0x372   : > { %v5047_v13 = vsel %vm5046_vm1, %v5045_v4, %v5040_v47 }
 0x373   : > { %v4987_v19 = vpop.xlane.xlu1 %4986 }
 0x374   : > { %v5052_v52 = vrot.slane %v4987_v19, %v5051_v17 }
 0x376   : > { %v5054_v29 = vsel %vm5053_vm2, %v5052_v52, %v5047_v13 }
 0x377   : > { %v4989_v16 = vpop.xlane.xlu0 %4988 }
 0x378   : > { %v5059_v8 = vrot.slane %v4989_v16, %v5058_v49 }
 0x37a   : > { %v5061_v57 = vsel %vm5060_vm3, %v5059_v8, %v5054_v29 }
 0x37b   : > { %v4991_v2 = vpop.xlane.xlu1 %4990 }
 0x37c   : > { %v5066_v10 = vrot.slane %v4991_v2, %v5065_v30 }
 0x37e   : > { %v5068_v28 = vsel %vm5067_vm4, %v5066_v10, %v5061_v57 }
 0x37f   : > { %v4993_v24 = vpop.xlane.xlu0 %4992 }
 0x380   : > { %v5073_v39 = vrot.slane %v4993_v24, %v5072_v42 }
 0x382   : > { %v5075_v53 = vsel %vm5074_vm5, %v5073_v39, %v5068_v28 }
 0x383   : > { %v4995_v18 = vpop.xlane.xlu1 %4994 }
 0x384   : > { %v5080_v21 = vrot.slane %v4995_v18, %v5079_v0 }
 0x386   : > { %v5082_v55 = vsel %vm5081_vm6, %v5080_v21, %v5075_v53 }
 0x387   : > { %v4997_v61 = vpop.xlane.xlu0 %4996 }
 0x388   : > { %v5087_v63 = vrot.slane %v4997_v61, %v5086_v58 }
 0x38a   : > { %v5089_v62 = vsel %vm5088_vm7, %v5087_v63, %v5082_v55 }
 0x38b   : > { %v4999_v5 = vpop.xlane.xlu1 %4998 }
 0x38c   : > { %v5094_v41 = vrot.slane %v4999_v5, %v5093_v33 }
 0x38e   : > { %v5096_v16 = vsel %vm5095_vm8, %v5094_v41, %v5089_v62 }
 0x38f   : > { %v5001_v7 = vpop.xlane.xlu0 %5000 }
 0x390   : > { %v5101_v11 = vrot.slane %v5001_v7, %v5100_v40 }
 0x392   : > { %v5103_v37 = vsel %vm5102_vm9, %v5101_v11, %v5096_v16 }
 0x393   : > { %v5003_v35 = vpop.xlane.xlu1 %5002 }
 0x394   : > { %v5108_v38 = vrot.slane %v5003_v35, %v5107_v22 }
 0x396   : > { %v5110_v60 = vsel %vm5109_vm10, %v5108_v38, %v5103_v37 }
 0x397   : > { %v5005_v20 = vpop.xlane.xlu0 %5004 }
 0x398   : > { %v5115_v14 = vrot.slane %v5005_v20, %v5114_v44 }
 0x39a   : > { %v5117_v26 = vsel %vm5116_vm11, %v5115_v14, %v5110_v60 }
 0x39b   : > { %v5007_v59 = vpop.xlane.xlu1 %5006 }
 0x39c   : > { %v5122_v1 = vrot.slane %v5007_v59, %v5121_v51 }
 0x39e   : > { %v5124_v23 = vsel %vm5123_vm12, %v5122_v1, %v5117_v26 }
 0x39f   : > { %v5009_v19 = vpop.xlane.xlu0 %5008 }
 0x3a0   : > { %v5129_v2 = vrot.slane %v5009_v19, %v5128_v43 }
 0x3a2   : > { %v5131_v48 = vsel %vm5130_vm13, %v5129_v2, %v5124_v23 }
 0x3a3   : > { %v5011_v24 = vpop.xlane.xlu1 %5010 }
 0x3a4   : > { %v5136_v32 = vrot.slane %v5011_v24, %v5135_v3 }
 0x3a6   : > { %v5138_v6 = vsel %vm5137_vm14, %v5136_v32, %v5131_v48 }
 0x3a7   : > { %5140 = vst [vmem:[%s208_s20] sm:$0x1] %v5138_v6 }
 0x3a8   : > { %6664 = shalt.err (!%p6661_p3)
}
 0x3a9   : > { %s6665_s14 = scalar_lea.hbm %s8918_s29, 16  ;;  %s6669_s22 = scalar_lea.hbm %s8959_s4, 32 }
 0x3aa   : > { %p6666_p4 = scmp.ne.s32.totalorder %s8918_s29, %s6665_s14  ;;  %p6670_p9 = scmp.lt.s32.totalorder %s8918_s29, %s8959_s4 }
 0x3ab   : > { %p6671_p10 = scmp.lt.s32.totalorder %s6669_s22, %s6665_s14 }
 0x3ac   : > { %p6667_p7 = pnand %p6666_p4, %p6778_p5 }
 0x3ad   : > { %p6672_p11 = por %p6671_p10, %p6670_p9 }
 0x3ae   : > { %p6668_p8 = pneg %p6667_p7 }
 0x3b0   : > { %p6673_p12 = pnand %p6672_p11, %p6668_p8 }
 0x3b2   : > { %6676 = shalt.err (!%p6673_p12)
}
 0x3b3   : > { %6386 = dma.vmem_to_hbm [thread:$0]  (%p6778_p5), %s5155_s23, 16, %s8918_s29, %s5142_s19  }
 0x3b4 PF: > { %p6392_p13 = scmp.ge.s32.totalorder %s6711_s18, 2  ;;  %s5166_s13 = sand.u32 1, %s6699_s15  }
 0x3b5   : > { %s5167_s11 = scalar_lea.sflag [#allocation3], %s5166_s13 }
 0x3b6   : > { %p6389_p0 = pnand %p6392_p13, %p6782_p6 }
 0x3b8   : > { %p6390_p1 = pneg %p6389_p0 }
 0x3ba   : > { %6694 = dma.done.wait (%p6390_p1), %s5167_s11, 16  }
 0x3bb   : > { %6696 = vsyncadd (%p6390_p1), %s5167_s11, 4294967280  ;;  %p14_p2 = scmp.ge.s32.totalorder %s6764_s21, 4   ;;  %s9020_s15 = smov %s6703_s16 }
 0x3bc   : > { %s9021_s16 = smov %s6707_s17  ;;  %s9022_s17 = smov %s6776_s24 }
 0x3bd   : > { %s9023_s18 = smov %s6764_s21  ;;  %16 = sbr.rel (!%p14_p2) target bundleno = 3 (0x3), region = 74 }
 0x3c2   :  { %5171 = vsyncpa [#allocation3], 1 }
 0x3c3   :  { %5173 = vsyncpa [#allocation3 + $0x1], 1 }

</bundles_post_ra>
